<compile_context>
chip_gen: v7x
topology: tpu7x:2x2x1
jax: 0.10.0
libtpu: 0.0.40
codegen_flags: <defaults>
</compile_context>

<pallas_src>
import numpy as np
import jax
import jax.numpy as jnp
from jax.experimental import pallas as pl
from jax.experimental.pallas import tpu as pltpu

EPS = 1e-5  # nn.BatchNorm2d default


# ------------------------------ fused kernel ------------------------------

def _upblock_kernel(scat_ref, up_ref, skip_ref, wt_ref, bt_ref,
                    w1_ref, s1_ref, w2_ref, s2_ref, o_ref, zpad1, zpad2):
    # scat_ref : (4, H*W, Hu*Wu)   constant 0/1 sub-pixel routing matrices
    # up_ref   : (1, Hu, Wu, Cin)  low-res input (NHWC block)
    # skip_ref : (1, H,  W,  Cskip) skip connection (H = 2*Hu, W = 2*Wu)
    # wt_ref   : (4*Cin, Cup)      packed ConvTranspose2d weight, rows (ky,kx,ci)
    # bt_ref   : (1, Cup)
    # w1_ref   : (9*Ctot, Cmid)    conv1 weight (BN1 scale folded), rows (ky,kx,ci)
    # s1_ref   : (1, Cmid)         conv1 bias + BN1 folded shift
    # w2_ref   : (9*Cmid, Cout)    conv2 weight (BN2 scale folded)
    # s2_ref   : (1, Cout)
    # o_ref    : (1, H, W, Cout)
    # zpad1    : VMEM (H+2, W+2, Ctot) scratch (padded conv1 input)
    # zpad2    : VMEM (H+2, W+2, Cmid) scratch (padded conv2 input)
    f32 = jnp.float32
    Hu, Wu, Cin = up_ref.shape[1], up_ref.shape[2], up_ref.shape[3]
    H, W, Cskip = skip_ref.shape[1], skip_ref.shape[2], skip_ref.shape[3]
    Cup = wt_ref.shape[1]
    Ctot = Cup + Cskip
    Cmid = s1_ref.shape[1]
    Cout = s2_ref.shape[1]
    HW = H * W

    # ---- ConvTranspose2d(k=2, s=2) fused with the sub-pixel interleave.
    # scat_ref[k] routes up-pixel (h, w) to flattened output pixel
    # (2h+ky)*W + (2w+kx) for tap k = ky*2+kx; applied to the *input* so no
    # extra rounding class is introduced.  One weight matmul produces the
    # already-interleaved upsampled image.
    x = up_ref[0].reshape(Hu * Wu, Cin).astype(f32)                 # (P, Cin)
    xg = jnp.concatenate(
        [jnp.dot(scat_ref[k], x, preferred_element_type=f32) for k in range(4)],
        axis=-1)                                                    # (HW, 4*Cin)
    up = jnp.dot(xg, wt_ref[...], preferred_element_type=f32) + bt_ref[0]  # (HW, Cup)

    # ---- channel concat with the skip + pad=1 borders, entirely in VMEM.
    zpad1[...] = jnp.zeros_like(zpad1)
    z = jnp.concatenate([up.reshape(H, W, Cup), skip_ref[0].astype(f32)],
                        axis=-1)                                    # (H, W, Ctot)
    zpad1[1:H + 1, 1:W + 1, :] = z

    # ---- ConvBlock 1: 3x3 conv as ONE matmul on an (HW, 9*Ctot) patch matrix;
    # BN scale already folded into w1, so epilogue is just +shift, relu.
    p1 = jnp.concatenate(
        [zpad1[ky:ky + H, kx:kx + W, :].reshape(HW, Ctot)
         for ky in range(3) for kx in range(3)], axis=-1)           # (HW, 9*Ctot)
    y1 = jnp.dot(p1, w1_ref[...], preferred_element_type=f32) + s1_ref[0]
    y1 = jnp.maximum(y1, 0.0)                                       # (HW, Cmid)

    # ---- ConvBlock 2 (same scheme).
    zpad2[...] = jnp.zeros_like(zpad2)
    zpad2[1:H + 1, 1:W + 1, :] = y1.reshape(H, W, Cmid)
    p2 = jnp.concatenate(
        [zpad2[ky:ky + H, kx:kx + W, :].reshape(HW, Cmid)
         for ky in range(3) for kx in range(3)], axis=-1)           # (HW, 9*Cmid)
    y2 = jnp.dot(p2, w2_ref[...], preferred_element_type=f32) + s2_ref[0]
    y2 = jnp.maximum(y2, 0.0)                                       # (HW, Cout)

    o_ref[0] = y2.reshape(H, W, Cout).astype(o_ref.dtype)


# ------------------------------ wrapper ------------------------------

def _subpixel_scatter(Hu, Wu):
    """S[k, q, p] = 1 iff flattened output pixel q = (2h+ky)*W + (2w+kx)
    receives deconv tap k = ky*2+kx applied to up-pixel p = h*Wu + w."""
    H, W = 2 * Hu, 2 * Wu
    S = np.zeros((4, H * W, Hu * Wu), np.float32)
    for ky in range(2):
        for kx in range(2):
            k = ky * 2 + kx
            for h in range(Hu):
                for w in range(Wu):
                    S[k, (2 * h + ky) * W + (2 * w + kx), h * Wu + w] = 1.0
    return jnp.asarray(S)


def upblock_forward(p, up_x, down_x):
    """up_x: (N, Hu, Wu, Cin) NHWC; down_x: (N, 2Hu, 2Wu, Cskip) NHWC."""
    N, Hu, Wu, Cin = up_x.shape
    _, H, W, Cskip = down_x.shape
    assert H == 2 * Hu and W == 2 * Wu
    Cup = p["wt"].shape[1]
    Ctot = Cup + Cskip
    Cmid = p["w1"].shape[0]
    Cout = p["w2"].shape[0]
    HW = H * W

    # --- pack / fold parameters (tiny, done once per call in XLA) ---
    # ConvTranspose2d weight (Cin, Cout, 2, 2) -> rows ordered (ky, kx, ci)
    wt_k = jnp.transpose(p["wt"], (2, 3, 0, 1)).reshape(4 * Cin, Cup)
    bt = p["bt"].reshape(1, Cup)

    sc1 = p["g1"] / jnp.sqrt(p["v1"] + EPS)
    w1_k = jnp.transpose(p["w1"], (2, 3, 1, 0)).reshape(9 * Ctot, Cmid) * sc1[None, :]
    s1 = ((p["b1"] - p["m1"]) * sc1 + p["be1"]).reshape(1, Cmid)

    sc2 = p["g2"] / jnp.sqrt(p["v2"] + EPS)
    w2_k = jnp.transpose(p["w2"], (2, 3, 1, 0)).reshape(9 * Cmid, Cout) * sc2[None, :]
    s2 = ((p["b2"] - p["m2"]) * sc2 + p["be2"]).reshape(1, Cout)

    scat = _subpixel_scatter(Hu, Wu)

    return pl.pallas_call(
        _upblock_kernel,
        out_shape=jax.ShapeDtypeStruct((N, H, W, Cout), up_x.dtype),
        grid_spec=pltpu.PrefetchScalarGridSpec(
            num_scalar_prefetch=0,
            grid=(N,),
            in_specs=[
                pl.BlockSpec((4, HW, Hu * Wu), lambda n: (0, 0, 0)),
                pl.BlockSpec((1, Hu, Wu, Cin), lambda n: (n, 0, 0, 0)),
                pl.BlockSpec((1, H, W, Cskip), lambda n: (n, 0, 0, 0)),
                pl.BlockSpec((4 * Cin, Cup), lambda n: (0, 0)),
                pl.BlockSpec((1, Cup), lambda n: (0, 0)),
                pl.BlockSpec((9 * Ctot, Cmid), lambda n: (0, 0)),
                pl.BlockSpec((1, Cmid), lambda n: (0, 0)),
                pl.BlockSpec((9 * Cmid, Cout), lambda n: (0, 0)),
                pl.BlockSpec((1, Cout), lambda n: (0, 0)),
            ],
            out_specs=pl.BlockSpec((1, H, W, Cout), lambda n: (n, 0, 0, 0)),
            scratch_shapes=[pltpu.VMEM((H + 2, W + 2, Ctot), jnp.float32),
                            pltpu.VMEM((H + 2, W + 2, Cmid), jnp.float32)],
        ),
        compiler_params=pltpu.CompilerParams(
            dimension_semantics=("parallel",)),
    )(scat, up_x, down_x, wt_k, bt, w1_k, s1, w2_k, s2)


# ------------------ pure-JAX reference (verification only) ------------------

def ref_upblock(p, up_x, down_x):
    N, Hu, Wu, Ci = up_x.shape
    Co = p["wt"].shape[1]
    t = jnp.einsum('nyxi,iokl->nykxlo', up_x, p["wt"])
    x = t.reshape(N, 2 * Hu, 2 * Wu, Co) + p["bt"]
    x = jnp.concatenate([x, down_x], axis=-1)

    def cbr(x, w, b, g, be, m, v):
        w_hwio = jnp.transpose(w, (2, 3, 1, 0))
        y = jax.lax.conv_general_dilated(
            x, w_hwio, (1, 1), ((1, 1), (1, 1)),
            dimension_numbers=('NHWC', 'HWIO', 'NHWC')) + b
        y = (y - m) / jnp.sqrt(v + EPS) * g + be
        return jnp.maximum(y, 0.0)

    x = cbr(x, p["w1"], p["b1"], p["g1"], p["be1"], p["m1"], p["v1"])
    x = cbr(x, p["w2"], p["b2"], p["g2"], p["be2"], p["m2"], p["v2"])
    return x


# ------------------------------ main ------------------------------

if __name__ == "__main__":
    # UpBlock(in_channels=8, out_channels=4); skip connection has out_channels chans.
    in_ch, out_ch, skip_ch = 8, 4, 4
    N, Hu, Wu = 2, 8, 8              # up_x spatial; down_x is (2*Hu, 2*Wu)

    key = jax.random.PRNGKey(0)
    ks = jax.random.split(key, 16)
    u = lambda k, s, a=0.3: jax.random.uniform(k, s, jnp.float32, -a, a)

    params = {
        # ConvTranspose2d(in_ch, out_ch, k=2, s=2): weight (Cin, Cout, 2, 2)
        "wt": u(ks[0], (in_ch, out_ch, 2, 2)), "bt": u(ks[1], (out_ch,)),
        # ConvBlock 1: Conv2d(in_ch, out_ch, 3, pad=1) + BN(out_ch)
        "w1": u(ks[2], (out_ch, in_ch, 3, 3)), "b1": u(ks[3], (out_ch,)),
        "g1": jax.random.uniform(ks[4], (out_ch,), jnp.float32, 0.5, 1.5),
        "be1": u(ks[5], (out_ch,)),
        "m1": u(ks[6], (out_ch,)),
        "v1": jax.random.uniform(ks[7], (out_ch,), jnp.float32, 0.5, 1.5),
        # ConvBlock 2: Conv2d(out_ch, out_ch, 3, pad=1) + BN(out_ch)
        "w2": u(ks[8], (out_ch, out_ch, 3, 3)), "b2": u(ks[9], (out_ch,)),
        "g2": jax.random.uniform(ks[10], (out_ch,), jnp.float32, 0.5, 1.5),
        "be2": u(ks[11], (out_ch,)),
        "m2": u(ks[12], (out_ch,)),
        "v2": jax.random.uniform(ks[13], (out_ch,), jnp.float32, 0.5, 1.5),
    }

    up_x = jax.random.normal(ks[14], (N, Hu, Wu, in_ch), jnp.float32)          # NHWC
    down_x = jax.random.normal(ks[15], (N, 2 * Hu, 2 * Wu, skip_ch), jnp.float32)

    out = jax.block_until_ready(upblock_forward(params, up_x, down_x))
    ref = jax.block_until_ready(ref_upblock(params, up_x, down_x))

    assert out.shape == (N, 2 * Hu, 2 * Wu, out_ch), out.shape
    assert np.allclose(np.asarray(out), np.asarray(ref), rtol=1e-3, atol=1e-3), (
        float(np.max(np.abs(np.asarray(out) - np.asarray(ref)))))

    print("KERNEL_OK")
</pallas_src>

<mosaic_0001>
module attributes {stable_mosaic.version = 11 : i64} {
  func.func @_upblock_kernel(%arg0: i32, %arg1: memref<4x256x64xf32, #tpu.memory_space<vmem>>, %arg2: memref<1x8x8x8xf32, #tpu.memory_space<vmem>>, %arg3: memref<1x16x16x4xf32, #tpu.memory_space<vmem>>, %arg4: memref<32x4xf32, #tpu.memory_space<vmem>>, %arg5: memref<1x4xf32, #tpu.memory_space<vmem>>, %arg6: memref<72x4xf32, #tpu.memory_space<vmem>>, %arg7: memref<1x4xf32, #tpu.memory_space<vmem>>, %arg8: memref<36x4xf32, #tpu.memory_space<vmem>>, %arg9: memref<1x4xf32, #tpu.memory_space<vmem>>, %arg10: memref<1x16x16x4xf32, #tpu.memory_space<vmem>>, %arg11: memref<18x18x8xf32, #tpu.memory_space<vmem>>, %arg12: memref<18x18x4xf32, #tpu.memory_space<vmem>>) attributes {dimension_semantics = [#tpu.dimension_semantics<parallel>], iteration_bounds = array<i64: 2>, scalar_prefetch = 0 : i64, scratch_operands = 2 : i64, tpu.core_type = #tpu.core_type<tc>, window_params = [{pipeline_mode = #tpu.pipeline_mode<synchronous>, transform_indices = @transform_0, window_bounds = array<i64: 4, 256, 64>}, {transform_indices = @transform_1, window_bounds = array<i64: 1, 8, 8, 8>}, {transform_indices = @transform_2, window_bounds = array<i64: 1, 16, 16, 4>}, {pipeline_mode = #tpu.pipeline_mode<synchronous>, transform_indices = @transform_3, window_bounds = array<i64: 32, 4>}, {pipeline_mode = #tpu.pipeline_mode<synchronous>, transform_indices = @transform_4, window_bounds = array<i64: 1, 4>}, {pipeline_mode = #tpu.pipeline_mode<synchronous>, transform_indices = @transform_5, window_bounds = array<i64: 72, 4>}, {pipeline_mode = #tpu.pipeline_mode<synchronous>, transform_indices = @transform_6, window_bounds = array<i64: 1, 4>}, {pipeline_mode = #tpu.pipeline_mode<synchronous>, transform_indices = @transform_7, window_bounds = array<i64: 36, 4>}, {pipeline_mode = #tpu.pipeline_mode<synchronous>, transform_indices = @transform_8, window_bounds = array<i64: 1, 4>}, {transform_indices = @transform_9, window_bounds = array<i64: 1, 16, 16, 4>}]} {
    %c0 = arith.constant 0 : index
    %c0_0 = arith.constant 0 : index
    %c0_1 = arith.constant 0 : index
    %c0_2 = arith.constant 0 : index
    %0 = vector.load %arg2[%c0, %c0_0, %c0_1, %c0_2] : memref<1x8x8x8xf32, #tpu.memory_space<vmem>>, vector<1x8x8x8xf32>
    %1 = vector.shape_cast %0 : vector<1x8x8x8xf32> to vector<8x8x8xf32>
    %2 = vector.shape_cast %1 : vector<8x8x8xf32> to vector<64x8xf32>
    %c0_3 = arith.constant 0 : index
    %c0_4 = arith.constant 0 : index
    %c0_5 = arith.constant 0 : index
    %3 = vector.load %arg1[%c0_3, %c0_4, %c0_5] : memref<4x256x64xf32, #tpu.memory_space<vmem>>, vector<1x256x64xf32>
    %4 = vector.shape_cast %3 : vector<1x256x64xf32> to vector<256x64xf32>
    %cst = arith.constant dense<0.000000e+00> : vector<256x8xf32>
    %5 = tpu.matmul %4, %2, %cst {dimension_numbers = #tpu.dot_dimension_numbers<[1], [0], [0], [1], [0, 0, 1, 1], [], []>} : vector<256x64xf32>, vector<64x8xf32>, vector<256x8xf32> -> vector<256x8xf32>
    %c1 = arith.constant 1 : index
    %c0_6 = arith.constant 0 : index
    %c0_7 = arith.constant 0 : index
    %6 = vector.load %arg1[%c1, %c0_6, %c0_7] : memref<4x256x64xf32, #tpu.memory_space<vmem>>, vector<1x256x64xf32>
    %7 = vector.shape_cast %6 : vector<1x256x64xf32> to vector<256x64xf32>
    %cst_8 = arith.constant dense<0.000000e+00> : vector<256x8xf32>
    %8 = tpu.matmul %7, %2, %cst_8 {dimension_numbers = #tpu.dot_dimension_numbers<[1], [0], [0], [1], [0, 0, 1, 1], [], []>} : vector<256x64xf32>, vector<64x8xf32>, vector<256x8xf32> -> vector<256x8xf32>
    %c2 = arith.constant 2 : index
    %c0_9 = arith.constant 0 : index
    %c0_10 = arith.constant 0 : index
    %9 = vector.load %arg1[%c2, %c0_9, %c0_10] : memref<4x256x64xf32, #tpu.memory_space<vmem>>, vector<1x256x64xf32>
    %10 = vector.shape_cast %9 : vector<1x256x64xf32> to vector<256x64xf32>
    %cst_11 = arith.constant dense<0.000000e+00> : vector<256x8xf32>
    %11 = tpu.matmul %10, %2, %cst_11 {dimension_numbers = #tpu.dot_dimension_numbers<[1], [0], [0], [1], [0, 0, 1, 1], [], []>} : vector<256x64xf32>, vector<64x8xf32>, vector<256x8xf32> -> vector<256x8xf32>
    %c3 = arith.constant 3 : index
    %c0_12 = arith.constant 0 : index
    %c0_13 = arith.constant 0 : index
    %12 = vector.load %arg1[%c3, %c0_12, %c0_13] : memref<4x256x64xf32, #tpu.memory_space<vmem>>, vector<1x256x64xf32>
    %13 = vector.shape_cast %12 : vector<1x256x64xf32> to vector<256x64xf32>
    %cst_14 = arith.constant dense<0.000000e+00> : vector<256x8xf32>
    %14 = tpu.matmul %13, %2, %cst_14 {dimension_numbers = #tpu.dot_dimension_numbers<[1], [0], [0], [1], [0, 0, 1, 1], [], []>} : vector<256x64xf32>, vector<64x8xf32>, vector<256x8xf32> -> vector<256x8xf32>
    %15 = tpu.concatenate %5, %8, %11, %14 in 1 : vector<256x8xf32>, vector<256x8xf32>, vector<256x8xf32>, vector<256x8xf32> -> vector<256x32xf32>
    %c0_15 = arith.constant 0 : index
    %c0_16 = arith.constant 0 : index
    %16 = vector.load %arg4[%c0_15, %c0_16] : memref<32x4xf32, #tpu.memory_space<vmem>>, vector<32x4xf32>
    %cst_17 = arith.constant dense<0.000000e+00> : vector<256x4xf32>
    %17 = tpu.matmul %15, %16, %cst_17 {dimension_numbers = #tpu.dot_dimension_numbers<[1], [0], [0], [1], [0, 0, 1, 1], [], []>} : vector<256x32xf32>, vector<32x4xf32>, vector<256x4xf32> -> vector<256x4xf32>
    %c0_18 = arith.constant 0 : index
    %c0_19 = arith.constant 0 : index
    %18 = vector.load %arg5[%c0_18, %c0_19] : memref<1x4xf32, #tpu.memory_space<vmem>>, vector<1x4xf32>
    %19 = vector.shape_cast %18 : vector<1x4xf32> to vector<4xf32>
    %20 = vector.shape_cast %19 : vector<4xf32> to vector<1x4xf32>
    %21 = vector.broadcast %20 : vector<1x4xf32> to vector<256x4xf32>
    %22 = arith.addf %17, %21 : vector<256x4xf32>
    %cst_20 = arith.constant 0.000000e+00 : f32
    %23 = vector.broadcast %cst_20 : f32 to vector<18x18x8xf32>
    %c0_21 = arith.constant 0 : index
    %c0_22 = arith.constant 0 : index
    %c0_23 = arith.constant 0 : index
    %24 = vector.load %arg11[%c0_21, %c0_22, %c0_23] : memref<18x18x8xf32, #tpu.memory_space<vmem>>, vector<18x18x8xf32>
    tpu.vector_store %arg11[%c0_21, %c0_22, %c0_23], %23 {strides = array<i32>} : memref<18x18x8xf32, #tpu.memory_space<vmem>>, vector<18x18x8xf32>,
    %25 = vector.shape_cast %22 : vector<256x4xf32> to vector<16x16x4xf32>
    %c0_24 = arith.constant 0 : index
    %c0_25 = arith.constant 0 : index
    %c0_26 = arith.constant 0 : index
    %c0_27 = arith.constant 0 : index
    %26 = vector.load %arg3[%c0_24, %c0_25, %c0_26, %c0_27] : memref<1x16x16x4xf32, #tpu.memory_space<vmem>>, vector<1x16x16x4xf32>
    %27 = vector.shape_cast %26 : vector<1x16x16x4xf32> to vector<16x16x4xf32>
    %28 = tpu.concatenate %25, %27 in 2 : vector<16x16x4xf32>, vector<16x16x4xf32> -> vector<16x16x8xf32>
    %c1_28 = arith.constant 1 : index
    %c1_29 = arith.constant 1 : index
    %c0_30 = arith.constant 0 : index
    %29 = vector.load %arg11[%c1_28, %c1_29, %c0_30] : memref<18x18x8xf32, #tpu.memory_space<vmem>>, vector<16x16x8xf32>
    tpu.vector_store %arg11[%c1_28, %c1_29, %c0_30], %28 {strides = array<i32>} : memref<18x18x8xf32, #tpu.memory_space<vmem>>, vector<16x16x8xf32>,
    %c0_31 = arith.constant 0 : index
    %c0_32 = arith.constant 0 : index
    %c0_33 = arith.constant 0 : index
    %30 = vector.load %arg11[%c0_31, %c0_32, %c0_33] : memref<18x18x8xf32, #tpu.memory_space<vmem>>, vector<16x16x8xf32>
    %31 = vector.shape_cast %30 : vector<16x16x8xf32> to vector<256x8xf32>
    %c0_34 = arith.constant 0 : index
    %c1_35 = arith.constant 1 : index
    %c0_36 = arith.constant 0 : index
    %32 = vector.load %arg11[%c0_34, %c1_35, %c0_36] : memref<18x18x8xf32, #tpu.memory_space<vmem>>, vector<16x16x8xf32>
    %33 = vector.shape_cast %32 : vector<16x16x8xf32> to vector<256x8xf32>
    %c0_37 = arith.constant 0 : index
    %c2_38 = arith.constant 2 : index
    %c0_39 = arith.constant 0 : index
    %34 = vector.load %arg11[%c0_37, %c2_38, %c0_39] : memref<18x18x8xf32, #tpu.memory_space<vmem>>, vector<16x16x8xf32>
    %35 = vector.shape_cast %34 : vector<16x16x8xf32> to vector<256x8xf32>
    %c1_40 = arith.constant 1 : index
    %c0_41 = arith.constant 0 : index
    %c0_42 = arith.constant 0 : index
    %36 = vector.load %arg11[%c1_40, %c0_41, %c0_42] : memref<18x18x8xf32, #tpu.memory_space<vmem>>, vector<16x16x8xf32>
    %37 = vector.shape_cast %36 : vector<16x16x8xf32> to vector<256x8xf32>
    %c1_43 = arith.constant 1 : index
    %c1_44 = arith.constant 1 : index
    %c0_45 = arith.constant 0 : index
    %38 = vector.load %arg11[%c1_43, %c1_44, %c0_45] : memref<18x18x8xf32, #tpu.memory_space<vmem>>, vector<16x16x8xf32>
    %39 = vector.shape_cast %38 : vector<16x16x8xf32> to vector<256x8xf32>
    %c1_46 = arith.constant 1 : index
    %c2_47 = arith.constant 2 : index
    %c0_48 = arith.constant 0 : index
    %40 = vector.load %arg11[%c1_46, %c2_47, %c0_48] : memref<18x18x8xf32, #tpu.memory_space<vmem>>, vector<16x16x8xf32>
    %41 = vector.shape_cast %40 : vector<16x16x8xf32> to vector<256x8xf32>
    %c2_49 = arith.constant 2 : index
    %c0_50 = arith.constant 0 : index
    %c0_51 = arith.constant 0 : index
    %42 = vector.load %arg11[%c2_49, %c0_50, %c0_51] : memref<18x18x8xf32, #tpu.memory_space<vmem>>, vector<16x16x8xf32>
    %43 = vector.shape_cast %42 : vector<16x16x8xf32> to vector<256x8xf32>
    %c2_52 = arith.constant 2 : index
    %c1_53 = arith.constant 1 : index
    %c0_54 = arith.constant 0 : index
    %44 = vector.load %arg11[%c2_52, %c1_53, %c0_54] : memref<18x18x8xf32, #tpu.memory_space<vmem>>, vector<16x16x8xf32>
    %45 = vector.shape_cast %44 : vector<16x16x8xf32> to vector<256x8xf32>
    %c2_55 = arith.constant 2 : index
    %c2_56 = arith.constant 2 : index
    %c0_57 = arith.constant 0 : index
    %46 = vector.load %arg11[%c2_55, %c2_56, %c0_57] : memref<18x18x8xf32, #tpu.memory_space<vmem>>, vector<16x16x8xf32>
    %47 = vector.shape_cast %46 : vector<16x16x8xf32> to vector<256x8xf32>
    %48 = tpu.concatenate %31, %33, %35, %37, %39, %41, %43, %45, %47 in 1 : vector<256x8xf32>, vector<256x8xf32>, vector<256x8xf32>, vector<256x8xf32>, vector<256x8xf32>, vector<256x8xf32>, vector<256x8xf32>, vector<256x8xf32>, vector<256x8xf32> -> vector<256x72xf32>
    %c0_58 = arith.constant 0 : index
    %c0_59 = arith.constant 0 : index
    %49 = vector.load %arg6[%c0_58, %c0_59] : memref<72x4xf32, #tpu.memory_space<vmem>>, vector<72x4xf32>
    %cst_60 = arith.constant dense<0.000000e+00> : vector<256x4xf32>
    %50 = tpu.matmul %48, %49, %cst_60 {dimension_numbers = #tpu.dot_dimension_numbers<[1], [0], [0], [1], [0, 0, 1, 1], [], []>} : vector<256x72xf32>, vector<72x4xf32>, vector<256x4xf32> -> vector<256x4xf32>
    %c0_61 = arith.constant 0 : index
    %c0_62 = arith.constant 0 : index
    %51 = vector.load %arg7[%c0_61, %c0_62] : memref<1x4xf32, #tpu.memory_space<vmem>>, vector<1x4xf32>
    %52 = vector.shape_cast %51 : vector<1x4xf32> to vector<4xf32>
    %53 = vector.shape_cast %52 : vector<4xf32> to vector<1x4xf32>
    %54 = vector.broadcast %53 : vector<1x4xf32> to vector<256x4xf32>
    %55 = arith.addf %50, %54 : vector<256x4xf32>
    %cst_63 = arith.constant 0.000000e+00 : f32
    %56 = vector.broadcast %cst_63 : f32 to vector<256x4xf32>
    %57 = arith.maximumf %55, %56 : vector<256x4xf32>
    %cst_64 = arith.constant 0.000000e+00 : f32
    %58 = vector.broadcast %cst_64 : f32 to vector<18x18x4xf32>
    %c0_65 = arith.constant 0 : index
    %c0_66 = arith.constant 0 : index
    %c0_67 = arith.constant 0 : index
    %59 = vector.load %arg12[%c0_65, %c0_66, %c0_67] : memref<18x18x4xf32, #tpu.memory_space<vmem>>, vector<18x18x4xf32>
    tpu.vector_store %arg12[%c0_65, %c0_66, %c0_67], %58 {strides = array<i32>} : memref<18x18x4xf32, #tpu.memory_space<vmem>>, vector<18x18x4xf32>,
    %60 = vector.shape_cast %57 : vector<256x4xf32> to vector<16x16x4xf32>
    %c1_68 = arith.constant 1 : index
    %c1_69 = arith.constant 1 : index
    %c0_70 = arith.constant 0 : index
    %61 = vector.load %arg12[%c1_68, %c1_69, %c0_70] : memref<18x18x4xf32, #tpu.memory_space<vmem>>, vector<16x16x4xf32>
    tpu.vector_store %arg12[%c1_68, %c1_69, %c0_70], %60 {strides = array<i32>} : memref<18x18x4xf32, #tpu.memory_space<vmem>>, vector<16x16x4xf32>,
    %c0_71 = arith.constant 0 : index
    %c0_72 = arith.constant 0 : index
    %c0_73 = arith.constant 0 : index
    %62 = vector.load %arg12[%c0_71, %c0_72, %c0_73] : memref<18x18x4xf32, #tpu.memory_space<vmem>>, vector<16x16x4xf32>
    %63 = vector.shape_cast %62 : vector<16x16x4xf32> to vector<256x4xf32>
    %c0_74 = arith.constant 0 : index
    %c1_75 = arith.constant 1 : index
    %c0_76 = arith.constant 0 : index
    %64 = vector.load %arg12[%c0_74, %c1_75, %c0_76] : memref<18x18x4xf32, #tpu.memory_space<vmem>>, vector<16x16x4xf32>
    %65 = vector.shape_cast %64 : vector<16x16x4xf32> to vector<256x4xf32>
    %c0_77 = arith.constant 0 : index
    %c2_78 = arith.constant 2 : index
    %c0_79 = arith.constant 0 : index
    %66 = vector.load %arg12[%c0_77, %c2_78, %c0_79] : memref<18x18x4xf32, #tpu.memory_space<vmem>>, vector<16x16x4xf32>
    %67 = vector.shape_cast %66 : vector<16x16x4xf32> to vector<256x4xf32>
    %c1_80 = arith.constant 1 : index
    %c0_81 = arith.constant 0 : index
    %c0_82 = arith.constant 0 : index
    %68 = vector.load %arg12[%c1_80, %c0_81, %c0_82] : memref<18x18x4xf32, #tpu.memory_space<vmem>>, vector<16x16x4xf32>
    %69 = vector.shape_cast %68 : vector<16x16x4xf32> to vector<256x4xf32>
    %c1_83 = arith.constant 1 : index
    %c1_84 = arith.constant 1 : index
    %c0_85 = arith.constant 0 : index
    %70 = vector.load %arg12[%c1_83, %c1_84, %c0_85] : memref<18x18x4xf32, #tpu.memory_space<vmem>>, vector<16x16x4xf32>
    %71 = vector.shape_cast %70 : vector<16x16x4xf32> to vector<256x4xf32>
    %c1_86 = arith.constant 1 : index
    %c2_87 = arith.constant 2 : index
    %c0_88 = arith.constant 0 : index
    %72 = vector.load %arg12[%c1_86, %c2_87, %c0_88] : memref<18x18x4xf32, #tpu.memory_space<vmem>>, vector<16x16x4xf32>
    %73 = vector.shape_cast %72 : vector<16x16x4xf32> to vector<256x4xf32>
    %c2_89 = arith.constant 2 : index
    %c0_90 = arith.constant 0 : index
    %c0_91 = arith.constant 0 : index
    %74 = vector.load %arg12[%c2_89, %c0_90, %c0_91] : memref<18x18x4xf32, #tpu.memory_space<vmem>>, vector<16x16x4xf32>
    %75 = vector.shape_cast %74 : vector<16x16x4xf32> to vector<256x4xf32>
    %c2_92 = arith.constant 2 : index
    %c1_93 = arith.constant 1 : index
    %c0_94 = arith.constant 0 : index
    %76 = vector.load %arg12[%c2_92, %c1_93, %c0_94] : memref<18x18x4xf32, #tpu.memory_space<vmem>>, vector<16x16x4xf32>
    %77 = vector.shape_cast %76 : vector<16x16x4xf32> to vector<256x4xf32>
    %c2_95 = arith.constant 2 : index
    %c2_96 = arith.constant 2 : index
    %c0_97 = arith.constant 0 : index
    %78 = vector.load %arg12[%c2_95, %c2_96, %c0_97] : memref<18x18x4xf32, #tpu.memory_space<vmem>>, vector<16x16x4xf32>
    %79 = vector.shape_cast %78 : vector<16x16x4xf32> to vector<256x4xf32>
    %80 = tpu.concatenate %63, %65, %67, %69, %71, %73, %75, %77, %79 in 1 : vector<256x4xf32>, vector<256x4xf32>, vector<256x4xf32>, vector<256x4xf32>, vector<256x4xf32>, vector<256x4xf32>, vector<256x4xf32>, vector<256x4xf32>, vector<256x4xf32> -> vector<256x36xf32>
    %c0_98 = arith.constant 0 : index
    %c0_99 = arith.constant 0 : index
    %81 = vector.load %arg8[%c0_98, %c0_99] : memref<36x4xf32, #tpu.memory_space<vmem>>, vector<36x4xf32>
    %cst_100 = arith.constant dense<0.000000e+00> : vector<256x4xf32>
    %82 = tpu.matmul %80, %81, %cst_100 {dimension_numbers = #tpu.dot_dimension_numbers<[1], [0], [0], [1], [0, 0, 1, 1], [], []>} : vector<256x36xf32>, vector<36x4xf32>, vector<256x4xf32> -> vector<256x4xf32>
    %c0_101 = arith.constant 0 : index
    %c0_102 = arith.constant 0 : index
    %83 = vector.load %arg9[%c0_101, %c0_102] : memref<1x4xf32, #tpu.memory_space<vmem>>, vector<1x4xf32>
    %84 = vector.shape_cast %83 : vector<1x4xf32> to vector<4xf32>
    %85 = vector.shape_cast %84 : vector<4xf32> to vector<1x4xf32>
    %86 = vector.broadcast %85 : vector<1x4xf32> to vector<256x4xf32>
    %87 = arith.addf %82, %86 : vector<256x4xf32>
    %cst_103 = arith.constant 0.000000e+00 : f32
    %88 = vector.broadcast %cst_103 : f32 to vector<256x4xf32>
    %89 = arith.maximumf %87, %88 : vector<256x4xf32>
    %90 = vector.shape_cast %89 : vector<256x4xf32> to vector<16x16x4xf32>
    %c0_104 = arith.constant 0 : index
    %c0_105 = arith.constant 0 : index
    %c0_106 = arith.constant 0 : index
    %c0_107 = arith.constant 0 : index
    %91 = vector.load %arg10[%c0_104, %c0_105, %c0_106, %c0_107] : memref<1x16x16x4xf32, #tpu.memory_space<vmem>>, vector<1x16x16x4xf32>
    %92 = vector.shape_cast %91 : vector<1x16x16x4xf32> to vector<16x16x4xf32>
    %93 = vector.shape_cast %90 : vector<16x16x4xf32> to vector<1x16x16x4xf32>
    tpu.vector_store %arg10[%c0_104, %c0_105, %c0_106, %c0_107], %93 {strides = array<i32>} : memref<1x16x16x4xf32, #tpu.memory_space<vmem>>, vector<1x16x16x4xf32>,
    return
  }
  func.func @transform_0(%arg0: i32) -> (i32, i32, i32) {
    %c0_i32 = arith.constant 0 : i32
    %c0_i32_0 = arith.constant 0 : i32
    %c0_i32_1 = arith.constant 0 : i32
    %c0_i32_2 = arith.constant 0 : i32
    return %c0_i32, %c0_i32_0, %c0_i32_1 : i32, i32, i32
  }
  func.func @transform_1(%arg0: i32) -> (i32, i32, i32, i32) {
    %c0_i32 = arith.constant 0 : i32
    %c0_i32_0 = arith.constant 0 : i32
    %c0_i32_1 = arith.constant 0 : i32
    %c0_i32_2 = arith.constant 0 : i32
    return %arg0, %c0_i32, %c0_i32_0, %c0_i32_1 : i32, i32, i32, i32
  }
  func.func @transform_2(%arg0: i32) -> (i32, i32, i32, i32) {
    %c0_i32 = arith.constant 0 : i32
    %c0_i32_0 = arith.constant 0 : i32
    %c0_i32_1 = arith.constant 0 : i32
    %c0_i32_2 = arith.constant 0 : i32
    return %arg0, %c0_i32, %c0_i32_0, %c0_i32_1 : i32, i32, i32, i32
  }
  func.func @transform_3(%arg0: i32) -> (i32, i32) {
    %c0_i32 = arith.constant 0 : i32
    %c0_i32_0 = arith.constant 0 : i32
    %c0_i32_1 = arith.constant 0 : i32
    return %c0_i32, %c0_i32_0 : i32, i32
  }
  func.func @transform_4(%arg0: i32) -> (i32, i32) {
    %c0_i32 = arith.constant 0 : i32
    %c0_i32_0 = arith.constant 0 : i32
    %c0_i32_1 = arith.constant 0 : i32
    return %c0_i32, %c0_i32_0 : i32, i32
  }
  func.func @transform_5(%arg0: i32) -> (i32, i32) {
    %c0_i32 = arith.constant 0 : i32
    %c0_i32_0 = arith.constant 0 : i32
    %c0_i32_1 = arith.constant 0 : i32
    return %c0_i32, %c0_i32_0 : i32, i32
  }
  func.func @transform_6(%arg0: i32) -> (i32, i32) {
    %c0_i32 = arith.constant 0 : i32
    %c0_i32_0 = arith.constant 0 : i32
    %c0_i32_1 = arith.constant 0 : i32
    return %c0_i32, %c0_i32_0 : i32, i32
  }
  func.func @transform_7(%arg0: i32) -> (i32, i32) {
    %c0_i32 = arith.constant 0 : i32
    %c0_i32_0 = arith.constant 0 : i32
    %c0_i32_1 = arith.constant 0 : i32
    return %c0_i32, %c0_i32_0 : i32, i32
  }
  func.func @transform_8(%arg0: i32) -> (i32, i32) {
    %c0_i32 = arith.constant 0 : i32
    %c0_i32_0 = arith.constant 0 : i32
    %c0_i32_1 = arith.constant 0 : i32
    return %c0_i32, %c0_i32_0 : i32, i32
  }
  func.func @transform_9(%arg0: i32) -> (i32, i32, i32, i32) {
    %c0_i32 = arith.constant 0 : i32
    %c0_i32_0 = arith.constant 0 : i32
    %c0_i32_1 = arith.constant 0 : i32
    %c0_i32_2 = arith.constant 0 : i32
    return %arg0, %c0_i32, %c0_i32_0, %c0_i32_1 : i32, i32, i32, i32
  }
}

</mosaic_0001>

<bundles_post_ra>
// kernel: tpu_custom_call.1
= control target key start
LH: loop header
LB: loop body
LE: loop exit
PB: predicated region body
PF: predicated region fallthrough
CT: control target
= control target key end

     0   :  { %s8193_s30 = smov 0   ;;  %s12580_s0 = inlined_call_operand.vmem [shape: f32[4,256,64], index: 0, kind: input, shape index: {}]   ;;  %s12581_s1 = inlined_call_operand.vmem [shape: f32[2,8,8,8], index: 1, kind: input, shape index: {}]   ;;  %s12582_s2 = inlined_call_operand.vmem [shape: f32[2,16,16,4], index: 2, kind: input, shape index: {}]   ;;  %s12583_s3 = inlined_call_operand.vmem [shape: f32[32,4], index: 3, kind: input, shape index: {}]   ;;  %s12584_s4 = inlined_call_operand.vmem [shape: f32[1,4], index: 4, kind: input, shape index: {}]   ;;  %s12585_s5 = inlined_call_operand.vmem [shape: f32[72,4], index: 5, kind: input, shape index: {}]   ;;  %s12586_s6 = inlined_call_operand.vmem [shape: f32[1,4], index: 6, kind: input, shape index: {}]   ;;  %s12587_s7 = inlined_call_operand.vmem [shape: f32[36,4], index: 7, kind: input, shape index: {}]   ;;  %s12588_s8 = inlined_call_operand.vmem [shape: f32[1,4], index: 8, kind: input, shape index: {}]   ;;  %s12589_s9 = inlined_call_operand.vmem [shape: f32[2,16,16,4], index: 9, kind: output, shape index: {}]  }
   0x1 LB: > { %s6945_s10 = sadd.s32 4294967295, %s8128_s30   ;;  %p6949_p0 = scmp.ge.s32.totalorder %s8128_s30, 1  ;;  %s8128_s30 = sphi %s8193_s30, %s19_s30  }
   0x2   : > { %p297_p1 = scmp.lt.s32.totalorder %s8128_s30, 3 }
   0x4   : > { %p298_p2 = pnand %p6949_p0, %p297_p1 }
   0x6   : > { %301 = sbr.rel (%p298_p2) target bundleno = 2119 (0x847), region = 56 }
   0xd   : > { %p338_p3 = scmp.lt.s32.totalorder %s6945_s10, 1  ;;  %v361_v0 = vld [vmem:[%s12580_s0] sm:$0xff]  ;;  %vm393_vm0 = vcmask 523264   ;;  %v362_v14 = vld [vmem:[%s12580_s0 + $0x8] sm:$0xff]  ;;  %v363_v16 = vld [vmem:[%s12580_s0 + $0x10] sm:$0xff]  ;;  %s8130_s26 = smov 4  }
   0xe   : > { %v377_v1 = vld [vmem:[%s12580_s0 + $0x80] sm:$0xff]  ;;  %7575 = vmatprep.mubr.msk.f32.mxu0 %vm393_vm0, %v361_v0  ;;  %v378_v15 = vld [vmem:[%s12580_s0 + $0x88] sm:$0xff]  ;;  %v379_v17 = vld [vmem:[%s12580_s0 + $0x90] sm:$0xff]  ;;  %vm2161_vm1 = vcmask 64512   ;;  %vm2595_vm2 = vcmask 58368   ;;  %s8132_s29 = smov 8  }
   0xf   : > { %7599 = vmatprep.mubr.msk.f32.mxu1 %vm393_vm0, %v377_v1  ;;  %s12806_s10 = smov (!%p338_p3, %s6945_s10), 1  ;;  %v364_v18 = vld [vmem:[%s12580_s0 + $0x18] sm:$0xff]  ;;  %v365_v20 = vld [vmem:[%s12580_s0 + $0x20] sm:$0xff]  ;;  %v366_v22 = vld [vmem:[%s12580_s0 + $0x28] sm:$0xff]  ;;  %s8134_s21 = smov 48   ;;  %vm2227_vm3 = vcmask 195584  }
  0x10   : > { %s7282_s15 = sshll.u32 %s12806_s10, 6  ;;  %v380_v19 = vld [vmem:[%s12580_s0 + $0x98] sm:$0xff]  ;;  %v381_v21 = vld [vmem:[%s12580_s0 + $0xa0] sm:$0xff]  ;;  %v382_v23 = vld [vmem:[%s12580_s0 + $0xa8] sm:$0xff]  ;;  %s7283_s20 = sshll.u32 %s12806_s10, 8  ;;  %vm2194_vm4 = vcmask 130048  }
  0x11   : > { %s342_s18 = scalar_lea.vmem %s12581_s1, %s7282_s15  ;;  %v367_v24 = vld [vmem:[%s12580_s0 + $0x30] sm:$0xff]  ;;  %s8301_s27 = scalar_lea.vmem %s12582_s2, %s7283_s20  ;;  %v368_v26 = vld [vmem:[%s12580_s0 + $0x38] sm:$0xff]  ;;  %v369_v28 = vld [vmem:[%s12580_s0 + $0x40] sm:$0xff]  ;;  %vm2271_vm5 = vcmask 261120   ;;  %vm2808_vm6 = vcmask 31744   ;;  %vm4315_vm7 = vcmask 326656  }
  0x12   : > { %v353_v2 = vld [vmem:[%s342_s18] sm:$0xff]  ;;  %v354_v3 = vld [vmem:[%s342_s18 + $0x8] sm:$0xff]  ;;  %v355_v4 = vld [vmem:[%s342_s18 + $0x10] sm:$0xff]  ;;  %s8133_s15 = smov 16   ;;  %s8135_s13 = smov 24   ;;  %vm4348_vm8 = vcmask 392192  }
  0x13   : > { %v8215_v5 = vpack.c.bf16 %v354_v3, %v353_v2  ;;  %v356_v6 = vld [vmem:[%s342_s18 + $0x18] sm:$0xff]  ;;  %v357_v8 = vld [vmem:[%s342_s18 + $0x20] sm:$0xff]  ;;  %v358_v9 = vld [vmem:[%s342_s18 + $0x28] sm:$0xff]  ;;  %s8136_s17 = smov 32   ;;  %s8138_s25 = smov 56   ;;  %vm4381_vm9 = vcmask 457728  }
  0x14   : > { %v8217_v7 = vpack.c.bf16 %v356_v6, %v355_v4  ;;  %v8225_v10 = vpack.c.bf16 %v358_v9, %v357_v8  ;;  %v359_v11 = vld [vmem:[%s342_s18 + $0x30] sm:$0xff]  ;;  %v360_v12 = vld [vmem:[%s342_s18 + $0x38] sm:$0xff]  ;;  %v385_v29 = vld [vmem:[%s12580_s0 + $0xc0] sm:$0xff]  ;;  %s8137_s18 = smov 40   ;;  %s8139_s12 = smov 64   ;;  %vm4462_vm10 = vcmask 588800  }
  0x15   : > { %7996 = vmatprep.subr.bf16.mxu0 %v8215_v5  ;;  %8091 = vmatprep.subr.bf16.mxu1 %v8215_v5  ;;  %v8231_v13 = vpack.c.bf16 %v360_v12, %v359_v11  ;;  %v383_v25 = vld [vmem:[%s12580_s0 + $0xb0] sm:$0xff]  ;;  %v384_v27 = vld [vmem:[%s12580_s0 + $0xb8] sm:$0xff]  ;;  %v2648_v30 = vld [vmem:[%s8301_s27] sm:$0xff]  ;;  %vm4818_vm11 = vcmask 25600   ;;  %s8142_s19 = smov 28   ;;  %vm6585_vm12 = vcmask 1043456  }
  0x16   : > { %7998 = vmatpush3.bf16.msra.mxu0 %v8215_v5  ;;  %8095 = vmatpush3.bf16.msra.mxu1 %v8215_v5  ;;  %v370_v31 = vld [vmem:[%s12580_s0 + $0x48] sm:$0xff]  ;;  %v371_v33 = vld [vmem:[%s12580_s0 + $0x50] sm:$0xff]  ;;  %v372_v37 = vld [vmem:[%s12580_s0 + $0x58] sm:$0xff]  ;;  %vm6281_vm13 = vcmask 97280   ;;  %vm6346_vm14 = vcmask 162816   ;;  %vm6411_vm15 = vcmask 228352  }
  0x17   : > { %8000 = vmatprep.subr.bf16.mxu0 %v8217_v7  ;;  %8092 = vmatprep.subr.bf16.mxu1 %v8217_v7  ;;  %v386_v32 = vld [vmem:[%s12580_s0 + $0xc8] sm:$0xff]  ;;  %v387_v34 = vld [vmem:[%s12580_s0 + $0xd0] sm:$0xff]  ;;  %v388_v38 = vld [vmem:[%s12580_s0 + $0xd8] sm:$0xff] }
  0x18   : > { %2712 = vrot.lane.b32.xlu0 %v2648_v30, %s8130_s26  ;;  %v2649_v35 = vld [vmem:[%s8301_s27 + $0x8] sm:$0xff]  ;;  %v2650_v36 = vld [vmem:[%s8301_s27 + $0x10] sm:$0xff]  ;;  %v373_v39 = vld [vmem:[%s12580_s0 + $0x60] sm:$0xff] }
  0x19   : > { %v389_v40 = vld [vmem:[%s12580_s0 + $0xe0] sm:$0xff]  ;;  %2714 = vrot.lane.b32.xlu1 %v2649_v35, %s8130_s26  ;;  %v2651_v41 = vld [vmem:[%s8301_s27 + $0x18] sm:$0xff]  ;;  %v374_v43 = vld [vmem:[%s12580_s0 + $0x68] sm:$0xff] }
  0x1a   : > { %8002 = vmatpush3.bf16.msra.mxu0 %v8217_v7  ;;  %8096 = vmatpush3.bf16.msra.mxu1 %v8217_v7  ;;  %v2652_v42 = vld [vmem:[%s8301_s27 + $0x20] sm:$0xff]  ;;  %v390_v44 = vld [vmem:[%s12580_s0 + $0xe8] sm:$0xff]  ;;  %v375_v45 = vld [vmem:[%s12580_s0 + $0x70] sm:$0xff] }
  0x1b   : > { %8004 = vmatprep.subr.bf16.mxu0 %v8225_v10  ;;  %8093 = vmatprep.subr.bf16.mxu1 %v8225_v10  ;;  %v391_v46 = vld [vmem:[%s12580_s0 + $0xf0] sm:$0xff]  ;;  %v2653_v47 = vld [vmem:[%s8301_s27 + $0x28] sm:$0xff]  ;;  %v376_v49 = vld [vmem:[%s12580_s0 + $0x78] sm:$0xff] }
  0x1c   : > { %2716 = vrot.lane.b32.xlu0 %v2650_v36, %s8130_s26  ;;  %v2654_v48 = vld [vmem:[%s8301_s27 + $0x30] sm:$0xff]  ;;  %v392_v50 = vld [vmem:[%s12580_s0 + $0xf8] sm:$0xff]  ;;  %v6988_v51 = vld [vmem:[%s12580_s0 + $0x100] sm:$0xff] }
  0x1d   : > { %2718 = vrot.lane.b32.xlu1 %v2651_v41, %s8130_s26  ;;  %v7052_v52 = vld [vmem:[%s12580_s0 + $0x200] sm:$0xff]  ;;  %v2655_v53 = vld [vmem:[%s8301_s27 + $0x38] sm:$0xff]  ;;  %v6989_v55 = vld [vmem:[%s12580_s0 + $0x108] sm:$0xff] }
  0x1e   : > { %8006 = vmatpush3.bf16.msra.mxu0 %v8225_v10  ;;  %8097 = vmatpush3.bf16.msra.mxu1 %v8225_v10  ;;  %v2656_v54 = vld [vmem:[%s8301_s27 + $0x40] sm:$0xff]  ;;  %v7053_v56 = vld [vmem:[%s12580_s0 + $0x208] sm:$0xff]  ;;  %v6990_v57 = vld [vmem:[%s12580_s0 + $0x110] sm:$0xff] }
  0x1f   : > { %8008 = vmatprep.subr.bf16.mxu0 %v8231_v13  ;;  %8094 = vmatprep.subr.bf16.mxu1 %v8231_v13  ;;  %v7054_v58 = vld [vmem:[%s12580_s0 + $0x210] sm:$0xff]  ;;  %v2657_v59 = vld [vmem:[%s8301_s27 + $0x48] sm:$0xff]  ;;  %v6991_v61 = vld [vmem:[%s12580_s0 + $0x118] sm:$0xff] }
  0x20   : > { %2720 = vrot.lane.b32.xlu0 %v2652_v42, %s8130_s26  ;;  %v2658_v60 = vld [vmem:[%s8301_s27 + $0x50] sm:$0xff]  ;;  %v7055_v62 = vld [vmem:[%s12580_s0 + $0x218] sm:$0xff]  ;;  %v6992_v63 = vld [vmem:[%s12580_s0 + $0x120] sm:$0xff] }
  0x21   : > { %2722 = vrot.lane.b32.xlu1 %v2653_v47, %s8130_s26  ;;  %v7056_v0 = vld [vmem:[%s12580_s0 + $0x220] sm:$0xff]  ;;  %v2659_v1 = vld [vmem:[%s8301_s27 + $0x58] sm:$0xff]  ;;  %v6993_v3 = vld [vmem:[%s12580_s0 + $0x128] sm:$0xff] }
  0x22   : > { %8010 = vmatpush3.bf16.msra.mxu0 %v8231_v13  ;;  %8098 = vmatpush3.bf16.msra.mxu1 %v8231_v13  ;;  %v2660_v2 = vld [vmem:[%s8301_s27 + $0x60] sm:$0xff]  ;;  %v7057_v4 = vld [vmem:[%s12580_s0 + $0x228] sm:$0xff]  ;;  %v7058_v6 = vld [vmem:[%s12580_s0 + $0x230] sm:$0xff] }
  0x23   : > { %8012 = vmatprep.subr.bf16.mxu1 %v8215_v5  ;;  %8028 = vmatprep.subr.bf16.mxu0 %v8215_v5  ;;  %v2661_v8 = vld [vmem:[%s8301_s27 + $0x68] sm:$0xff]  ;;  %v2662_v9 = vld [vmem:[%s8301_s27 + $0x70] sm:$0xff]  ;;  %v7059_v11 = vld [vmem:[%s12580_s0 + $0x238] sm:$0xff] }
  0x24   : > { %2724 = vrot.lane.b32.xlu0 %v2654_v48, %s8130_s26  ;;  %v6996_v12 = vld [vmem:[%s12580_s0 + $0x140] sm:$0xff]  ;;  %v7066_v30 = vld [vmem:[%s12580_s0 + $0x270] sm:$0xff]  ;;  %v7007_v42 = vld [vmem:[%s12580_s0 + $0x198] sm:$0xff] }
  0x25   : > { %7576 = vmatmul.mubr.msk.f32.vlgmr.msra.gmra.mrb[0].mxu0 %vm393_vm0, %v362_v14  ;;  %7600 = vmatmul.mubr.msk.f32.vlgmr.msra.gmra.mrb[0].mxu1 %vm393_vm0, %v378_v15  ;;  %v7060_v14 = vld [vmem:[%s12580_s0 + $0x240] sm:$0xff]  ;;  %v2663_v15 = vld [vmem:[%s8301_s27 + $0x78] sm:$0xff]  ;;  %v7070_v41 = vld [vmem:[%s12580_s0 + $0x290] sm:$0xff] }
  0x26   : > { %8014 = vmatpush3.bf16.msra.mxu1 %v8215_v5  ;;  %8030 = vmatpush3.bf16.msra.mxu0 %v8215_v5  ;;  %v7004_v35 = vld [vmem:[%s12580_s0 + $0x180] sm:$0xff]  ;;  %v7073_v47 = vld [vmem:[%s12580_s0 + $0x2a8] sm:$0xff]  ;;  %v7010_v48 = vld [vmem:[%s12580_s0 + $0x1b0] sm:$0xff] }
  0x27   : > { %7578 = vmatprep.mubr.msk.f32.mxu0 %vm393_vm0, %v363_v16  ;;  %7602 = vmatprep.mubr.msk.f32.mxu1 %vm393_vm0, %v379_v17  ;;  %v2664_v16 = vld [vmem:[%s8301_s27 + $0x80] sm:$0xff]  ;;  %v7061_v17 = vld [vmem:[%s12580_s0 + $0x248] sm:$0xff] }
  0x28   : > { %8016 = vmatprep.subr.bf16.mxu1 %v8217_v7  ;;  %8032 = vmatprep.subr.bf16.mxu0 %v8217_v7  ;;  %v7068_v36 = vld [vmem:[%s12580_s0 + $0x280] sm:$0xff] }
  0x29   : > { %7579 = vmatmul.mubr.msk.f32.gmra.mrb[2].mxu0 %vm393_vm0, %v364_v18  ;;  %7603 = vmatmul.mubr.msk.f32.gmra.mrb[2].mxu1 %vm393_vm0, %v380_v19  ;;  %v6998_v18 = vld [vmem:[%s12580_s0 + $0x150] sm:$0xff] }
  0x2a   : > { %7581 = vmatprep.mubr.msk.f32.mxu0 %vm393_vm0, %v365_v20  ;;  %7605 = vmatprep.mubr.msk.f32.mxu1 %vm393_vm0, %v381_v21  ;;  %v7062_v19 = vld [vmem:[%s12580_s0 + $0x250] sm:$0xff]  ;;  %v2665_v20 = vld [vmem:[%s8301_s27 + $0x88] sm:$0xff] }
  0x2b   : > { %8018 = vmatpush3.bf16.msra.mxu1 %v8217_v7  ;;  %8034 = vmatpush3.bf16.msra.mxu0 %v8217_v7  ;;  %v2666_v21 = vld [vmem:[%s8301_s27 + $0x90] sm:$0xff] }
  0x2c   : > { %8020 = vmatprep.subr.bf16.mxu1 %v8225_v10  ;;  %8036 = vmatprep.subr.bf16.mxu0 %v8225_v10 }
  0x2d   : > { %7582 = vmatmul.mubr.msk.f32.gmra.mrb[4].mxu0 %vm393_vm0, %v366_v22  ;;  %7606 = vmatmul.mubr.msk.f32.gmra.mrb[4].mxu1 %vm393_vm0, %v382_v23  ;;  %v6999_v22 = vld [vmem:[%s12580_s0 + $0x158] sm:$0xff]  ;;  %v7000_v23 = vld [vmem:[%s12580_s0 + $0x160] sm:$0xff] }
  0x2e   : > { %7584 = vmatprep.mubr.msk.f32.mxu0 %vm393_vm0, %v367_v24  ;;  %7608 = vmatprep.mubr.msk.f32.mxu1 %vm393_vm0, %v383_v25  ;;  %v7064_v24 = vld [vmem:[%s12580_s0 + $0x260] sm:$0xff]  ;;  %v2667_v25 = vld [vmem:[%s8301_s27 + $0x98] sm:$0xff] }
  0x2f   : > { %8022 = vmatpush3.bf16.msra.mxu1 %v8225_v10  ;;  %8038 = vmatpush3.bf16.msra.mxu0 %v8225_v10 }
  0x30   : > { %8024 = vmatprep.subr.bf16.mxu1 %v8231_v13  ;;  %8040 = vmatprep.subr.bf16.mxu0 %v8231_v13 }
  0x31   : > { %7585 = vmatmul.mubr.msk.f32.gmra.mrb[6].mxu0 %vm393_vm0, %v368_v26  ;;  %7609 = vmatmul.mubr.msk.f32.gmra.mrb[6].mxu1 %vm393_vm0, %v384_v27  ;;  %v2668_v26 = vld [vmem:[%s8301_s27 + $0xa0] sm:$0xff]  ;;  %v7001_v27 = vld [vmem:[%s12580_s0 + $0x168] sm:$0xff] }
  0x32   : > { %7587 = vmatprep.mubr.msk.f32.mxu0 %vm393_vm0, %v369_v28  ;;  %7611 = vmatprep.mubr.msk.f32.mxu1 %vm393_vm0, %v385_v29  ;;  %v7065_v28 = vld [vmem:[%s12580_s0 + $0x268] sm:$0xff]  ;;  %v7002_v29 = vld [vmem:[%s12580_s0 + $0x170] sm:$0xff] }
  0x33   : > { %8026 = vmatpush3.bf16.msra.mxu1 %v8231_v13  ;;  %8042 = vmatpush3.bf16.msra.mxu0 %v8231_v13 }
  0x34   : > { %8044 = vmatprep.subr.bf16.mxu1 %v8215_v5  ;;  %2726 = vrot.lane.b32.xlu1 %v2655_v53, %s8130_s26  ;;  %v7076_v53 = vld [vmem:[%s12580_s0 + $0x2c0] sm:$0xff] }
  0x35   : > { %7588 = vmatmul.mubr.msk.f32.gmra.mrb[8].mxu0 %vm393_vm0, %v370_v31  ;;  %7612 = vmatmul.mubr.msk.f32.gmra.mrb[8].mxu1 %vm393_vm0, %v386_v32  ;;  %v2669_v31 = vld [vmem:[%s8301_s27 + $0xa8] sm:$0xff]  ;;  %v2670_v32 = vld [vmem:[%s8301_s27 + $0xb0] sm:$0xff] }
  0x36   : > { %7590 = vmatprep.mubr.msk.f32.mxu0 %vm393_vm0, %v371_v33  ;;  %7614 = vmatprep.mubr.msk.f32.mxu1 %vm393_vm0, %v387_v34  ;;  %v7003_v33 = vld [vmem:[%s12580_s0 + $0x178] sm:$0xff] }
  0x37   : > { %2728 = vrot.lane.b32.xlu0 %v2656_v54, %s8130_s26  ;;  %v7067_v34 = vld [vmem:[%s12580_s0 + $0x278] sm:$0xff]  ;;  %v7013_v54 = vld [vmem:[%s12580_s0 + $0x1c8] sm:$0xff] }
  0x38   : > { %2730 = vrot.lane.b32.xlu1 %v2657_v59, %s8130_s26  ;;  %v7079_v59 = vld [vmem:[%s12580_s0 + $0x2d8] sm:$0xff] }
  0x39   : > { %7591 = vmatmul.mubr.msk.f32.gmra.mrb[10].mxu0 %vm393_vm0, %v372_v37  ;;  %7615 = vmatmul.mubr.msk.f32.gmra.mrb[10].mxu1 %vm393_vm0, %v388_v38  ;;  %v2671_v37 = vld [vmem:[%s8301_s27 + $0xb8] sm:$0xff]  ;;  %v7005_v38 = vld [vmem:[%s12580_s0 + $0x188] sm:$0xff] }
  0x3a   : > { %7593 = vmatprep.mubr.msk.f32.mxu0 %vm393_vm0, %v373_v39  ;;  %7617 = vmatprep.mubr.msk.f32.mxu1 %vm393_vm0, %v389_v40  ;;  %v7069_v39 = vld [vmem:[%s12580_s0 + $0x288] sm:$0xff]  ;;  %v7006_v40 = vld [vmem:[%s12580_s0 + $0x190] sm:$0xff] }
  0x3b   : > { %2732 = vrot.lane.b32.xlu0 %v2658_v60, %s8130_s26  ;;  %v7016_v60 = vld [vmem:[%s12580_s0 + $0x1e0] sm:$0xff] }
  0x3c   : > { %2734 = vrot.lane.b32.xlu1 %v2659_v1, %s8130_s26  ;;  %v7081_v1 = vld [vmem:[%s12580_s0 + $0x2e8] sm:$0xff] }
  0x3d   : > { %7594 = vmatmul.mubr.msk.f32.gmra.mrb[12].mxu0 %vm393_vm0, %v374_v43  ;;  %7618 = vmatmul.mubr.msk.f32.gmra.mrb[12].mxu1 %vm393_vm0, %v390_v44  ;;  %v7071_v43 = vld [vmem:[%s12580_s0 + $0x298] sm:$0xff]  ;;  %v7008_v44 = vld [vmem:[%s12580_s0 + $0x1a0] sm:$0xff] }
  0x3e   : > { %7596 = vmatprep.mubr.msk.f32.mxu0 %vm393_vm0, %v375_v45  ;;  %7620 = vmatprep.mubr.msk.f32.mxu1 %vm393_vm0, %v391_v46  ;;  %v7072_v45 = vld [vmem:[%s12580_s0 + $0x2a0] sm:$0xff]  ;;  %v7009_v46 = vld [vmem:[%s12580_s0 + $0x1a8] sm:$0xff] }
  0x3f   : > { %2736 = vrot.lane.b32.xlu0 %v2660_v2, %s8130_s26  ;;  %v7018_v2 = vld [vmem:[%s12580_s0 + $0x1f0] sm:$0xff] }
  0x40   : > { %2738 = vrot.lane.b32.xlu1 %v2661_v8, %s8130_s26  ;;  %v7083_v8 = vld [vmem:[%s12580_s0 + $0x2f8] sm:$0xff] }
  0x41   : > { %7597 = vmatmul.mubr.msk.f32.gmra.mrb[14].mxu0 %vm393_vm0, %v376_v49  ;;  %7621 = vmatmul.mubr.msk.f32.gmra.mrb[14].mxu1 %vm393_vm0, %v392_v50  ;;  %v7074_v49 = vld [vmem:[%s12580_s0 + $0x2b0] sm:$0xff]  ;;  %v7011_v50 = vld [vmem:[%s12580_s0 + $0x1b8] sm:$0xff] }
  0x42   : > { %7639 = vmatprep.mubr.msk.f32.mxu1 %vm393_vm0, %v6988_v51  ;;  %7703 = vmatprep.mubr.msk.f32.mxu0 %vm393_vm0, %v7052_v52  ;;  %v7075_v51 = vld [vmem:[%s12580_s0 + $0x2b8] sm:$0xff]  ;;  %v7012_v52 = vld [vmem:[%s12580_s0 + $0x1c0] sm:$0xff] }
  0x43   : > { %2740 = vrot.lane.b32.xlu0 %v2662_v9, %s8130_s26  ;;  %v7116_v9 = vld [vmem:[%s12580_s0 + $0x300] sm:$0xff] }
  0x44   : > { %2742 = vrot.lane.b32.xlu1 %v2663_v15, %s8130_s26  ;;  %v7118_v15 = vld [vmem:[%s12580_s0 + $0x310] sm:$0xff] }
  0x45   : > { %7640 = vmatmul.mubr.msk.f32.vlgmr.msra.gmra.mrb[16].mxu1 %vm393_vm0, %v6989_v55  ;;  %7704 = vmatmul.mubr.msk.f32.vlgmr.msra.gmra.mrb[16].mxu0 %vm393_vm0, %v7053_v56  ;;  %v7077_v55 = vld [vmem:[%s12580_s0 + $0x2c8] sm:$0xff]  ;;  %v7014_v56 = vld [vmem:[%s12580_s0 + $0x1d0] sm:$0xff] }
  0x46   : > { %7642 = vmatprep.mubr.msk.f32.mxu1 %vm393_vm0, %v6990_v57  ;;  %7706 = vmatprep.mubr.msk.f32.mxu0 %vm393_vm0, %v7054_v58  ;;  %v7078_v57 = vld [vmem:[%s12580_s0 + $0x2d0] sm:$0xff]  ;;  %v7015_v58 = vld [vmem:[%s12580_s0 + $0x1d8] sm:$0xff] }
  0x47   : > { %8046 = vmatpush3.bf16.msra.mxu1 %v8215_v5  ;;  %v6994_v5 = vld [vmem:[%s12580_s0 + $0x130] sm:$0xff]  ;;  %2744 = vrot.lane.b32.xlu0 %v2664_v16, %s8130_s26 }
  0x48   : > { %8048 = vmatprep.subr.bf16.mxu1 %v8217_v7  ;;  %2746 = vrot.lane.b32.xlu1 %v2665_v20, %s8130_s26  ;;  %v2678_v16 = vld [vmem:[%s8301_s27 + $0xf0] sm:$0xff]  ;;  %v7121_v20 = vld [vmem:[%s12580_s0 + $0x328] sm:$0xff] }
  0x49   : > { %7643 = vmatmul.mubr.msk.f32.gmra.mrb[18].mxu1 %vm393_vm0, %v6991_v61  ;;  %7707 = vmatmul.mubr.msk.f32.gmra.mrb[18].mxu0 %vm393_vm0, %v7055_v62  ;;  %v7080_v61 = vld [vmem:[%s12580_s0 + $0x2e0] sm:$0xff] }
  0x4a   : > { %7645 = vmatprep.mubr.msk.f32.mxu1 %vm393_vm0, %v6992_v63  ;;  %7709 = vmatprep.mubr.msk.f32.mxu0 %vm393_vm0, %v7056_v0  ;;  %v2672_v62 = vld [vmem:[%s8301_s27 + $0xc0] sm:$0xff]  ;;  %v2673_v63 = vld [vmem:[%s8301_s27 + $0xc8] sm:$0xff] }
  0x4b   : > { %8050 = vmatpush3.bf16.msra.mxu1 %v8217_v7  ;;  %v6995_v7 = vld [vmem:[%s12580_s0 + $0x138] sm:$0xff]  ;;  %2748 = vrot.lane.b32.xlu0 %v2666_v21, %s8130_s26  ;;  %v7017_v0 = vld [vmem:[%s12580_s0 + $0x1e8] sm:$0xff] }
  0x4c   : > { %8052 = vmatprep.subr.bf16.mxu1 %v8225_v10  ;;  %2750 = vrot.lane.b32.xlu1 %v2667_v25, %s8130_s26  ;;  %v7124_v25 = vld [vmem:[%s12580_s0 + $0x340] sm:$0xff] }
  0x4d   : > { %7646 = vmatmul.mubr.msk.f32.gmra.mrb[20].mxu1 %vm393_vm0, %v6993_v3  ;;  %7710 = vmatmul.mubr.msk.f32.gmra.mrb[20].mxu0 %vm393_vm0, %v7057_v4  ;;  %v7082_v3 = vld [vmem:[%s12580_s0 + $0x2f0] sm:$0xff] }
  0x4e   : > { %7648 = vmatprep.mubr.msk.f32.mxu1 %vm393_vm0, %v6994_v5  ;;  %7712 = vmatprep.mubr.msk.f32.mxu0 %vm393_vm0, %v7058_v6  ;;  %v2674_v4 = vld [vmem:[%s8301_s27 + $0xd0] sm:$0xff]  ;;  %v2675_v5 = vld [vmem:[%s8301_s27 + $0xd8] sm:$0xff] }
  0x4f   : > { %8054 = vmatpush3.bf16.msra.mxu1 %v8225_v10  ;;  %v6997_v10 = vld [vmem:[%s12580_s0 + $0x148] sm:$0xff]  ;;  %2752 = vrot.lane.b32.xlu0 %v2668_v26, %s8130_s26  ;;  %v7019_v6 = vld [vmem:[%s12580_s0 + $0x1f8] sm:$0xff] }
  0x50   : > { %8056 = vmatprep.subr.bf16.mxu1 %v8231_v13  ;;  %2754 = vrot.lane.b32.xlu1 %v2669_v31, %s8130_s26  ;;  %v7125_v26 = vld [vmem:[%s12580_s0 + $0x348] sm:$0xff]  ;;  %v7128_v31 = vld [vmem:[%s12580_s0 + $0x360] sm:$0xff] }
  0x51   : > { %7649 = vmatmul.mubr.msk.f32.gmra.mrb[22].mxu1 %vm393_vm0, %v6995_v7  ;;  %7713 = vmatmul.mubr.msk.f32.gmra.mrb[22].mxu0 %vm393_vm0, %v7059_v11  ;;  %v2676_v7 = vld [vmem:[%s8301_s27 + $0xe0] sm:$0xff]  ;;  %v2677_v11 = vld [vmem:[%s8301_s27 + $0xe8] sm:$0xff] }
  0x52   : > { %7651 = vmatprep.mubr.msk.f32.mxu1 %vm393_vm0, %v6996_v12  ;;  %7715 = vmatprep.mubr.msk.f32.mxu0 %vm393_vm0, %v7060_v14  ;;  %v7117_v12 = vld [vmem:[%s12580_s0 + $0x308] sm:$0xff]  ;;  %v12590_v14 = vmov 0.0  }
  0x53   : > { %8058 = vmatpush3.bf16.msra.mxu1 %v8231_v13  ;;  %v7063_v13 = vld [vmem:[%s12580_s0 + $0x258] sm:$0xff]  ;;  %2756 = vrot.lane.b32.xlu0 %v2670_v32, %s8130_s26  ;;  %2593 = vst.msk [vmem:[#allocation2] sm:$0xff] %vm2161_vm1, %v12590_v14  ;;  %2594 = vst.msk [vmem:[#allocation2 + $0x8] sm:$0xff] %vm2161_vm1, %v12590_v14  ;;  %v7129_v32 = vld [vmem:[%s12580_s0 + $0x368] sm:$0xff] }
  0x54   : > { %2758 = vrot.lane.b32.xlu1 %v2671_v37, %s8130_s26  ;;  %2597 = vst.msk [vmem:[#allocation2 + $0x18] sm:$0xff] %vm2161_vm1, %v12590_v14  ;;  %2598 = vst.msk [vmem:[#allocation2 + $0x20] sm:$0xff] %vm2161_vm1, %v12590_v14  ;;  %v7134_v37 = vld [vmem:[%s12580_s0 + $0x390] sm:$0xff] }
  0x55   : > { %7652 = vmatmul.mubr.msk.f32.gmra.mrb[24].mxu1 %vm393_vm0, %v6997_v10  ;;  %7716 = vmatmul.mubr.msk.f32.gmra.mrb[24].mxu0 %vm393_vm0, %v7061_v17  ;;  %2600 = vst.msk [vmem:[#allocation2 + $0x30] sm:$0xff] %vm2161_vm1, %v12590_v14  ;;  %2601 = vst.msk [vmem:[#allocation2 + $0x38] sm:$0xff] %vm2161_vm1, %v12590_v14  ;;  %v2679_v10 = vld [vmem:[%s8301_s27 + $0xf8] sm:$0xff] }
  0x56   : > { %7654 = vmatprep.mubr.msk.f32.mxu1 %vm393_vm0, %v6998_v18  ;;  %7718 = vmatprep.mubr.msk.f32.mxu0 %vm393_vm0, %v7062_v19  ;;  %2603 = vst.msk [vmem:[#allocation2 + $0x48] sm:$0xff] %vm2161_vm1, %v12590_v14  ;;  %2604 = vst.msk [vmem:[#allocation2 + $0x50] sm:$0xff] %vm2161_vm1, %v12590_v14  ;;  %v7119_v17 = vld [vmem:[%s12580_s0 + $0x318] sm:$0xff]  ;;  %v7120_v18 = vld [vmem:[%s12580_s0 + $0x320] sm:$0xff] }
  0x57   : > { %2760 = vrot.lane.b32.xlu0 %v2672_v62, %s8130_s26  ;;  %2606 = vst.msk [vmem:[#allocation2 + $0x60] sm:$0xff] %vm2161_vm1, %v12590_v14  ;;  %2607 = vst.msk [vmem:[#allocation2 + $0x68] sm:$0xff] %vm2161_vm1, %v12590_v14 }
  0x58   : > { %2762 = vrot.lane.b32.xlu1 %v2673_v63, %s8130_s26  ;;  %2609 = vst.msk [vmem:[#allocation2 + $0x78] sm:$0xff] %vm2161_vm1, %v12590_v14  ;;  %2610 = vst.msk [vmem:[#allocation2 + $0x80] sm:$0xff] %vm2161_vm1, %v12590_v14 }
  0x59   : > { %7655 = vmatmul.mubr.msk.f32.gmra.mrb[26].mxu1 %vm393_vm0, %v6999_v22  ;;  %7719 = vmatmul.mubr.msk.f32.gmra.mrb[26].mxu0 %vm393_vm0, %v7063_v13  ;;  %2612 = vst.msk [vmem:[#allocation2 + $0x90] sm:$0xff] %vm2161_vm1, %v12590_v14  ;;  %2613 = vst.msk [vmem:[#allocation2 + $0x98] sm:$0xff] %vm2161_vm1, %v12590_v14  ;;  %v7122_v22 = vld [vmem:[%s12580_s0 + $0x330] sm:$0xff] }
  0x5a   : > { %7657 = vmatprep.mubr.msk.f32.mxu1 %vm393_vm0, %v7000_v23  ;;  %7721 = vmatprep.mubr.msk.f32.mxu0 %vm393_vm0, %v7064_v24  ;;  %2615 = vst.msk [vmem:[#allocation2 + $0xa8] sm:$0xff] %vm2161_vm1, %v12590_v14  ;;  %2616 = vst.msk [vmem:[#allocation2 + $0xb0] sm:$0xff] %vm2161_vm1, %v12590_v14  ;;  %v2906_v19 = vld [vmem:[#allocation2 + $0x1] sm:$0xff]  ;;  %v7123_v24 = vld [vmem:[%s12580_s0 + $0x338] sm:$0xff] }
  0x5b   : > { %2764 = vrot.lane.b32.xlu0 %v2674_v4, %s8130_s26  ;;  %2618 = vst.msk [vmem:[#allocation2 + $0xc0] sm:$0xff] %vm2161_vm1, %v12590_v14  ;;  %2619 = vst.msk [vmem:[#allocation2 + $0xc8] sm:$0xff] %vm2161_vm1, %v12590_v14  ;;  %v2938_v13 = vld [vmem:[#allocation2 + $0x2] sm:$0xff] }
  0x5c   : > { %2766 = vrot.lane.b32.xlu1 %v2675_v5, %s8130_s26  ;;  %2621 = vst.msk [vmem:[#allocation2 + $0xd8] sm:$0xff] %vm2161_vm1, %v12590_v14  ;;  %2622 = vst.msk [vmem:[#allocation2 + $0xe0] sm:$0xff] %vm2161_vm1, %v12590_v14 }
  0x5d   : > { %7658 = vmatmul.mubr.msk.f32.gmra.mrb[28].mxu1 %vm393_vm0, %v7001_v27  ;;  %7722 = vmatmul.mubr.msk.f32.gmra.mrb[28].mxu0 %vm393_vm0, %v7065_v28  ;;  %2624 = vst.msk [vmem:[#allocation2 + $0xf0] sm:$0xff] %vm2161_vm1, %v12590_v14  ;;  %2625 = vst.msk [vmem:[#allocation2 + $0xf8] sm:$0xff] %vm2161_vm1, %v12590_v14  ;;  %v7126_v27 = vld [vmem:[%s12580_s0 + $0x350] sm:$0xff] }
  0x5e   : > { %7660 = vmatprep.mubr.msk.f32.mxu1 %vm393_vm0, %v7002_v29  ;;  %7724 = vmatprep.mubr.msk.f32.mxu0 %vm393_vm0, %v7066_v30  ;;  %2627 = vst.msk [vmem:[#allocation2 + $0x108] sm:$0xff] %vm2161_vm1, %v12590_v14  ;;  %2628 = vst.msk [vmem:[#allocation2 + $0x110] sm:$0xff] %vm2161_vm1, %v12590_v14  ;;  %v7127_v30 = vld [vmem:[%s12580_s0 + $0x358] sm:$0xff] }
  0x5f   : > { %2630 = vst.msk [vmem:[#allocation2 + $0x120] sm:$0xff] %vm2161_vm1, %v12590_v14  ;;  %2631 = vst.msk [vmem:[#allocation2 + $0x128] sm:$0xff] %vm2161_vm1, %v12590_v14  ;;  %2768 = vrot.lane.b32.xlu0 %v2676_v7, %s8130_s26 }
  0x60   : > { %2633 = vst.msk [vmem:[#allocation2 + $0x138] sm:$0xff] %vm2161_vm1, %v12590_v14  ;;  %2634 = vst.msk [vmem:[#allocation2 + $0x140] sm:$0xff] %vm2161_vm1, %v12590_v14  ;;  %2770 = vrot.lane.b32.xlu1 %v2677_v11, %s8130_s26 }
  0x61   : > { %7661 = vmatmul.mubr.msk.f32.gmra.mrb[30].mxu1 %vm393_vm0, %v7003_v33  ;;  %7725 = vmatmul.mubr.msk.f32.gmra.mrb[30].mxu0 %vm393_vm0, %v7067_v34  ;;  %2636 = vst.msk [vmem:[#allocation2 + $0x150] sm:$0xff] %vm2161_vm1, %v12590_v14  ;;  %2637 = vst.msk [vmem:[#allocation2 + $0x158] sm:$0xff] %vm2161_vm1, %v12590_v14  ;;  %v7130_v33 = vld [vmem:[%s12580_s0 + $0x370] sm:$0xff]  ;;  %v7131_v34 = vld [vmem:[%s12580_s0 + $0x378] sm:$0xff] }
  0x62   : > { %7663 = vmatprep.mubr.msk.f32.mxu1 %vm393_vm0, %v7004_v35  ;;  %7727 = vmatprep.mubr.msk.f32.mxu0 %vm393_vm0, %v7068_v36  ;;  %2639 = vst.msk [vmem:[#allocation2 + $0x168] sm:$0xff] %vm2161_vm1, %v12590_v14  ;;  %2640 = vst.msk [vmem:[#allocation2 + $0x170] sm:$0xff] %vm2161_vm1, %v12590_v14  ;;  %v7132_v35 = vld [vmem:[%s12580_s0 + $0x380] sm:$0xff]  ;;  %v7133_v36 = vld [vmem:[%s12580_s0 + $0x388] sm:$0xff] }
  0x63   : > { %2642 = vst.msk [vmem:[#allocation2 + $0x180] sm:$0xff] %vm2161_vm1, %v12590_v14  ;;  %2643 = vst.msk [vmem:[#allocation2 + $0x188] sm:$0xff] %vm2161_vm1, %v12590_v14  ;;  %2772 = vrot.lane.b32.xlu0 %v2678_v16, %s8130_s26 }
  0x64   : > { %2645 = vst.msk [vmem:[#allocation2 + $0x198] sm:$0xff] %vm2161_vm1, %v12590_v14  ;;  %2646 = vst.msk [vmem:[#allocation2 + $0x1a0] sm:$0xff] %vm2161_vm1, %v12590_v14  ;;  %2774 = vrot.lane.b32.xlu1 %v2679_v10, %s8130_s26 }
  0x65   : > { %7664 = vmatmul.mubr.msk.f32.gmra.mrb[32].mxu1 %vm393_vm0, %v7005_v38  ;;  %7728 = vmatmul.mubr.msk.f32.gmra.mrb[32].mxu0 %vm393_vm0, %v7069_v39  ;;  %2596 = vst.msk [vmem:[#allocation2 + $0x10] sm:$0x3] %vm2595_vm2, %v12590_v14  ;;  %2599 = vst.msk [vmem:[#allocation2 + $0x28] sm:$0x3] %vm2595_vm2, %v12590_v14  ;;  %v7135_v38 = vld [vmem:[%s12580_s0 + $0x398] sm:$0xff]  ;;  %v7136_v39 = vld [vmem:[%s12580_s0 + $0x3a0] sm:$0xff] }
  0x66   : > { %7666 = vmatprep.mubr.msk.f32.mxu1 %vm393_vm0, %v7006_v40  ;;  %7730 = vmatprep.mubr.msk.f32.mxu0 %vm393_vm0, %v7070_v41  ;;  %2602 = vst.msk [vmem:[#allocation2 + $0x40] sm:$0x3] %vm2595_vm2, %v12590_v14  ;;  %2605 = vst.msk [vmem:[#allocation2 + $0x58] sm:$0x3] %vm2595_vm2, %v12590_v14  ;;  %v7137_v40 = vld [vmem:[%s12580_s0 + $0x3a8] sm:$0xff]  ;;  %v7138_v41 = vld [vmem:[%s12580_s0 + $0x3b0] sm:$0xff] }
  0x67   : > { %2608 = vst.msk [vmem:[#allocation2 + $0x70] sm:$0x3] %vm2595_vm2, %v12590_v14  ;;  %2611 = vst.msk [vmem:[#allocation2 + $0x88] sm:$0x3] %vm2595_vm2, %v12590_v14  ;;  %3195 = vrot.lane.b32.xlu0 %v2906_v19, %s8132_s29 }
  0x68   : > { %2614 = vst.msk [vmem:[#allocation2 + $0xa0] sm:$0x3] %vm2595_vm2, %v12590_v14  ;;  %2617 = vst.msk [vmem:[#allocation2 + $0xb8] sm:$0x3] %vm2595_vm2, %v12590_v14 }
  0x69   : > { %7667 = vmatmul.mubr.msk.f32.gmra.mrb[34].mxu1 %vm393_vm0, %v7007_v42  ;;  %7731 = vmatmul.mubr.msk.f32.gmra.mrb[34].mxu0 %vm393_vm0, %v7071_v43  ;;  %2620 = vst.msk [vmem:[#allocation2 + $0xd0] sm:$0x3] %vm2595_vm2, %v12590_v14  ;;  %2623 = vst.msk [vmem:[#allocation2 + $0xe8] sm:$0x3] %vm2595_vm2, %v12590_v14  ;;  %v7139_v42 = vld [vmem:[%s12580_s0 + $0x3b8] sm:$0xff]  ;;  %v7140_v43 = vld [vmem:[%s12580_s0 + $0x3c0] sm:$0xff] }
  0x6a   : > { %7669 = vmatprep.mubr.msk.f32.mxu1 %vm393_vm0, %v7008_v44  ;;  %7733 = vmatprep.mubr.msk.f32.mxu0 %vm393_vm0, %v7072_v45  ;;  %2626 = vst.msk [vmem:[#allocation2 + $0x100] sm:$0x3] %vm2595_vm2, %v12590_v14  ;;  %2629 = vst.msk [vmem:[#allocation2 + $0x118] sm:$0x3] %vm2595_vm2, %v12590_v14  ;;  %v7141_v44 = vld [vmem:[%s12580_s0 + $0x3c8] sm:$0xff]  ;;  %v7142_v45 = vld [vmem:[%s12580_s0 + $0x3d0] sm:$0xff] }
  0x6b   : > { %2632 = vst.msk [vmem:[#allocation2 + $0x130] sm:$0x3] %vm2595_vm2, %v12590_v14  ;;  %2635 = vst.msk [vmem:[#allocation2 + $0x148] sm:$0x3] %vm2595_vm2, %v12590_v14  ;;  %3323 = vrot.lane.b32.xlu0 %v2938_v13, %s8133_s15  ;;  %v3098_v28 = vld [vmem:[#allocation2 + $0x1a0] sm:$0xff]  ;;  %v3097_v29 = vld [vmem:[#allocation2 + $0x198] sm:$0xff] }
  0x6c   : > { %2638 = vst.msk [vmem:[#allocation2 + $0x160] sm:$0x3] %vm2595_vm2, %v12590_v14  ;;  %2641 = vst.msk [vmem:[#allocation2 + $0x178] sm:$0x3] %vm2595_vm2, %v12590_v14  ;;  %v2907_v21 = vld [vmem:[#allocation2 + $0x9] sm:$0xff] }
  0x6d   : > { %7670 = vmatmul.mubr.msk.f32.gmra.mrb[36].mxu1 %vm393_vm0, %v7009_v46  ;;  %7734 = vmatmul.mubr.msk.f32.gmra.mrb[36].mxu0 %vm393_vm0, %v7073_v47  ;;  %2644 = vst.msk [vmem:[#allocation2 + $0x190] sm:$0x3] %vm2595_vm2, %v12590_v14  ;;  %2647 = vst.msk [vmem:[#allocation2 + $0x1a8] sm:$0x3] %vm2595_vm2, %v12590_v14  ;;  %v2939_v23 = vld [vmem:[#allocation2 + $0xa] sm:$0xff]  ;;  %v7143_v46 = vld [vmem:[%s12580_s0 + $0x3d8] sm:$0xff] }
  0x6e   : > { %7672 = vmatprep.mubr.msk.f32.mxu1 %vm393_vm0, %v7010_v48  ;;  %7736 = vmatprep.mubr.msk.f32.mxu0 %vm393_vm0, %v7074_v49  ;;  %v7144_v47 = vld [vmem:[%s12580_s0 + $0x3e0] sm:$0xff]  ;;  %v7145_v48 = vld [vmem:[%s12580_s0 + $0x3e8] sm:$0xff]  ;;  %v7146_v49 = vld [vmem:[%s12580_s0 + $0x3f0] sm:$0xff] }
  0x6f   : > { %3197 = vrot.lane.b32.xlu1 %v2907_v21, %s8132_s29  ;;  %3895 = vrot.lane.b32.xlu0 %v3097_v29, %s8134_s21 }
  0x71   : > { %7673 = vmatmul.mubr.msk.f32.gmra.mrb[38].mxu1 %vm393_vm0, %v7011_v50  ;;  %7737 = vmatmul.mubr.msk.f32.gmra.mrb[38].mxu0 %vm393_vm0, %v7075_v51  ;;  %v7147_v50 = vld [vmem:[%s12580_s0 + $0x3f8] sm:$0xff] }
  0x72   : > { %7675 = vmatprep.mubr.msk.f32.mxu1 %vm393_vm0, %v7012_v52  ;;  %7739 = vmatprep.mubr.msk.f32.mxu0 %vm393_vm0, %v7076_v53 }
  0x73   : > { %3325 = vrot.lane.b32.xlu1 %v2939_v23, %s8133_s15 }
  0x75   : > { %7676 = vmatmul.mubr.msk.f32.gmra.mrb[40].mxu1 %vm393_vm0, %v7013_v54  ;;  %7740 = vmatmul.mubr.msk.f32.gmra.mrb[40].mxu0 %vm393_vm0, %v7077_v55 }
  0x76   : > { %7678 = vmatprep.mubr.msk.f32.mxu1 %vm393_vm0, %v7014_v56  ;;  %7742 = vmatprep.mubr.msk.f32.mxu0 %vm393_vm0, %v7078_v57 }
  0x77   : > { %3897 = vrot.lane.b32.xlu1 %v3098_v28, %s8134_s21 }
  0x79   : > { %7679 = vmatmul.mubr.msk.f32.gmra.mrb[42].mxu1 %vm393_vm0, %v7015_v58  ;;  %7743 = vmatmul.mubr.msk.f32.gmra.mrb[42].mxu0 %vm393_vm0, %v7079_v59 }
  0x7a   : > { %7681 = vmatprep.mubr.msk.f32.mxu1 %vm393_vm0, %v7016_v60  ;;  %7745 = vmatprep.mubr.msk.f32.mxu0 %vm393_vm0, %v7080_v61 }
  0x7d   : > { %7682 = vmatmul.mubr.msk.f32.gmra.mrb[44].mxu1 %vm393_vm0, %v7017_v0  ;;  %7746 = vmatmul.mubr.msk.f32.gmra.mrb[44].mxu0 %vm393_vm0, %v7081_v1 }
  0x7e   : > { %7684 = vmatprep.mubr.msk.f32.mxu1 %vm393_vm0, %v7018_v2  ;;  %7748 = vmatprep.mubr.msk.f32.mxu0 %vm393_vm0, %v7082_v3 }
  0x81   : > { %7685 = vmatmul.mubr.msk.f32.gmra.mrb[46].mxu1 %vm393_vm0, %v7019_v6  ;;  %7749 = vmatmul.mubr.msk.f32.gmra.mrb[46].mxu0 %vm393_vm0, %v7083_v8 }
  0x82   : > { %7767 = vmatprep.mubr.msk.f32.mxu1 %vm393_vm0, %v7116_v9 }
  0x85   : > { %7768 = vmatmul.mubr.msk.f32.vlgmr.msra.gmra.mrb[48].mxu1 %vm393_vm0, %v7117_v12 }
  0x86   : > { %7770 = vmatprep.mubr.msk.f32.mxu1 %vm393_vm0, %v7118_v15 }
  0x89   : > { %7771 = vmatmul.mubr.msk.f32.gmra.mrb[50].mxu1 %vm393_vm0, %v7119_v17 }
  0x8a   : > { %7773 = vmatprep.mubr.msk.f32.mxu1 %vm393_vm0, %v7120_v18  ;;  %v8985_v3 = vpop.permute.xlu0 %2712 }
  0x8b   : > { %12610 = vst [vmem:[#allocation10_spill] sm:$0xff] %v8985_v3  ;;  %v8987_v4 = vpop.permute.xlu1 %2714 }
  0x8c   : > { %12611 = vst [vmem:[#allocation11_spill] sm:$0xff] %v8987_v4 }
  0x8d   : > { %7774 = vmatmul.mubr.msk.f32.gmra.mrb[52].mxu1 %vm393_vm0, %v7121_v20 }
  0x8e   : > { %7776 = vmatprep.mubr.msk.f32.mxu1 %vm393_vm0, %v7122_v22  ;;  %v9005_v16 = vpop.permute.xlu0 %2716 }
  0x8f   : > { %12616 = vst [vmem:[#allocation16_spill] sm:$0xff] %v9005_v16  ;;  %v9007_v10 = vpop.permute.xlu1 %2718 }
  0x90   : > { %12617 = vst [vmem:[#allocation17_spill] sm:$0xff] %v9007_v10 }
  0x91   : > { %7777 = vmatmul.mubr.msk.f32.gmra.mrb[54].mxu1 %vm393_vm0, %v7123_v24 }
  0x92   : > { %7779 = vmatprep.mubr.msk.f32.mxu1 %vm393_vm0, %v7124_v25  ;;  %v9025_v24 = vpop.permute.xlu0 %2720 }
  0x93   : > { %12622 = vst [vmem:[#allocation22_spill] sm:$0xff] %v9025_v24  ;;  %v9027_v25 = vpop.permute.xlu1 %2722 }
  0x94   : > { %12623 = vst [vmem:[#allocation23_spill] sm:$0xff] %v9027_v25 }
  0x95   : > { %7780 = vmatmul.mubr.msk.f32.gmra.mrb[56].mxu1 %vm393_vm0, %v7125_v26 }
  0x96   : > { %7782 = vmatprep.mubr.msk.f32.mxu1 %vm393_vm0, %v7126_v27 }
  0x99   : > { %7783 = vmatmul.mubr.msk.f32.gmra.mrb[58].mxu1 %vm393_vm0, %v7127_v30 }
  0x9a   : > { %7785 = vmatprep.mubr.msk.f32.mxu1 %vm393_vm0, %v7128_v31 }
  0x9d   : > { %7786 = vmatmul.mubr.msk.f32.gmra.mrb[60].mxu1 %vm393_vm0, %v7129_v32 }
  0x9e   : > { %7788 = vmatprep.mubr.msk.f32.mxu1 %vm393_vm0, %v7130_v33 }
  0xa1   : > { %7789 = vmatmul.mubr.msk.f32.gmra.mrb[62].mxu1 %vm393_vm0, %v7131_v34  ;;  %v9033_v34 = vpop.permute.xlu0 %2724 }
  0xa2   : > { %7791 = vmatprep.mubr.msk.f32.mxu1 %vm393_vm0, %v7132_v35  ;;  %12624 = vst [vmem:[#allocation24_spill] sm:$0xff] %v9033_v34 }
  0xa5   : > { %7792 = vmatmul.mubr.msk.f32.gmra.mrb[64].mxu1 %vm393_vm0, %v7133_v36 }
  0xa6   : > { %7794 = vmatprep.mubr.msk.f32.mxu1 %vm393_vm0, %v7134_v37  ;;  %v9035_v35 = vpop.permute.xlu1 %2726 }
  0xa7   : > { %12625 = vst [vmem:[#allocation25_spill] sm:$0xff] %v9035_v35 }
  0xa9   : > { %7795 = vmatmul.mubr.msk.f32.gmra.mrb[66].mxu1 %vm393_vm0, %v7135_v38 }
  0xaa   : > { %7797 = vmatprep.mubr.msk.f32.mxu1 %vm393_vm0, %v7136_v39 }
  0xad   : > { %7798 = vmatmul.mubr.msk.f32.gmra.mrb[68].mxu1 %vm393_vm0, %v7137_v40 }
  0xae   : > { %7800 = vmatprep.mubr.msk.f32.mxu1 %vm393_vm0, %v7138_v41 }
  0xb1   : > { %7801 = vmatmul.mubr.msk.f32.gmra.mrb[70].mxu1 %vm393_vm0, %v7139_v42 }
  0xb2   : > { %7803 = vmatprep.mubr.msk.f32.mxu1 %vm393_vm0, %v7140_v43 }
  0xb5   : > { %7804 = vmatmul.mubr.msk.f32.gmra.mrb[72].mxu1 %vm393_vm0, %v7141_v44  ;;  %v9041_v44 = vpop.permute.xlu0 %2728 }
  0xb6   : > { %7806 = vmatprep.mubr.msk.f32.mxu1 %vm393_vm0, %v7142_v45  ;;  %12626 = vst [vmem:[#allocation26_spill] sm:$0xff] %v9041_v44  ;;  %v9043_v45 = vpop.permute.xlu1 %2730 }
  0xb7   : > { %12627 = vst [vmem:[#allocation27_spill] sm:$0xff] %v9043_v45 }
  0xb9   : > { %7807 = vmatmul.mubr.msk.f32.gmra.mrb[74].mxu1 %vm393_vm0, %v7143_v46 }
  0xba   : > { %7809 = vmatprep.mubr.msk.f32.mxu1 %vm393_vm0, %v7144_v47 }
  0xbd   : > { %7810 = vmatmul.mubr.msk.f32.gmra.mrb[76].mxu1 %vm393_vm0, %v7145_v48 }
  0xbe   : > { %7812 = vmatprep.mubr.msk.f32.mxu1 %vm393_vm0, %v7146_v49 }
  0xc1   : > { %7813 = vmatmul.mubr.msk.f32.gmra.mrb[78].mxu1 %vm393_vm0, %v7147_v50 }
  0xf8   : > { %v8953_v51 = vpop.f32.mrb[0].mxu1  ;;  %v8955_v52 = vpop.f32.mrb[0].mxu0 }
  0xf9   : > { %v8957_v53 = vpop.f32.mrb[1].mxu1  ;;  %v8959_v54 = vpop.f32.mrb[1].mxu0 }
  0xfc   : > { %v8961_v55 = vpop.f32.mrb[2].mxu1  ;;  %v8963_v56 = vpop.f32.mrb[2].mxu0 }
  0xfd   : > { %12604 = vst [vmem:[#allocation4_spill] sm:$0xff] %v8961_v55  ;;  %v8965_v57 = vpop.f32.mrb[3].mxu1  ;;  %v8967_v58 = vpop.f32.mrb[3].mxu0 }
  0xfe   : > { %12605 = vst [vmem:[#allocation5_spill] sm:$0xff] %v8965_v57 }
 0x100   : > { %v8969_v59 = vpop.f32.mrb[4].mxu1  ;;  %v8971_v60 = vpop.f32.mrb[4].mxu0 }
 0x101   : > { %12606 = vst [vmem:[#allocation6_spill] sm:$0xff] %v8969_v59  ;;  %v8973_v61 = vpop.f32.mrb[5].mxu1  ;;  %v8975_v62 = vpop.f32.mrb[5].mxu0 }
 0x102   : > { %12607 = vst [vmem:[#allocation7_spill] sm:$0xff] %v8973_v61 }
 0x104   : > { %v8977_v63 = vpop.f32.mrb[6].mxu1  ;;  %v8979_v0 = vpop.f32.mrb[6].mxu0 }
 0x105   : > { %12608 = vst [vmem:[#allocation8_spill] sm:$0xff] %v8977_v63  ;;  %v8981_v1 = vpop.f32.mrb[7].mxu1  ;;  %v8983_v2 = vpop.f32.mrb[7].mxu0 }
 0x106   : > { %12609 = vst [vmem:[#allocation9_spill] sm:$0xff] %v8981_v1 }
 0x108   : > { %v8989_v5 = vpop.f32.mrb[8].mxu1  ;;  %v8991_v6 = vpop.f32.mrb[8].mxu0 }
 0x109   : > { %12612 = vst [vmem:[#allocation12_spill] sm:$0xff] %v8989_v5  ;;  %v8993_v8 = vpop.f32.mrb[9].mxu1  ;;  %v8995_v9 = vpop.f32.mrb[9].mxu0 }
 0x10a   : > { %12613 = vst [vmem:[#allocation13_spill] sm:$0xff] %v8993_v8 }
 0x10c   : > { %v8997_v7 = vpop.f32.mrb[10].mxu1  ;;  %v8999_v11 = vpop.f32.mrb[10].mxu0 }
 0x10d   : > { %12614 = vst [vmem:[#allocation14_spill] sm:$0xff] %v8997_v7  ;;  %v9001_v12 = vpop.f32.mrb[11].mxu1  ;;  %v9003_v15 = vpop.f32.mrb[11].mxu0 }
 0x10e   : > { %12615 = vst [vmem:[#allocation15_spill] sm:$0xff] %v9001_v12 }
 0x110   : > { %v9009_v17 = vpop.f32.mrb[12].mxu1  ;;  %v9011_v18 = vpop.f32.mrb[12].mxu0 }
 0x111   : > { %12618 = vst [vmem:[#allocation18_spill] sm:$0xff] %v9009_v17  ;;  %v9013_v19 = vpop.f32.mrb[13].mxu1  ;;  %v9015_v20 = vpop.f32.mrb[13].mxu0 }
 0x112   : > { %12619 = vst [vmem:[#allocation19_spill] sm:$0xff] %v9013_v19 }
 0x114   : > { %v9017_v21 = vpop.f32.mrb[14].mxu1  ;;  %v9019_v22 = vpop.f32.mrb[14].mxu0 }
 0x115   : > { %12620 = vst [vmem:[#allocation20_spill] sm:$0xff] %v9017_v21  ;;  %v9021_v13 = vpop.f32.mrb[15].mxu1  ;;  %v9023_v23 = vpop.f32.mrb[15].mxu0 }
 0x116   : > { %12621 = vst [vmem:[#allocation21_spill] sm:$0xff] %v9021_v13 }
 0x118   : > { %v7641_v26 = vpop.f32.mrb[16].mxu1  ;;  %v7705_v27 = vpop.f32.mrb[16].mxu0 }
 0x119   : > { %1811 = vrot.lane.b32.xlu0 %v7641_v26, %s8132_s29  ;;  %v910_v28 = vpop.f32.mrb[17].mxu1  ;;  %1939 = vrot.lane.b32.xlu1 %v7705_v27, %s8133_s15  ;;  %v1264_v29 = vpop.f32.mrb[17].mxu0 }
 0x11c   : > { %v7644_v30 = vpop.f32.mrb[18].mxu1  ;;  %v7708_v31 = vpop.f32.mrb[18].mxu0 }
 0x11d   : > { %1809 = vrot.lane.b32.xlu0 %v910_v28, %s8132_s29  ;;  %1815 = vrot.lane.b32.xlu1 %v7644_v30, %s8132_s29  ;;  %v920_v32 = vpop.f32.mrb[19].mxu1  ;;  %v1274_v33 = vpop.f32.mrb[19].mxu0 }
 0x11e   : > { %v9051_v30 = vpop.permute.xlu1 %2734 }
 0x11f   : > { %12629 = vst [vmem:[#allocation29_spill] sm:$0xff] %v9051_v30 }
 0x120   : > { %v7647_v36 = vpop.f32.mrb[20].mxu1  ;;  %v7711_v37 = vpop.f32.mrb[20].mxu0 }
 0x121   : > { %1937 = vrot.lane.b32.xlu0 %v1264_v29, %s8133_s15  ;;  %1943 = vrot.lane.b32.xlu1 %v7708_v31, %s8133_s15  ;;  %v930_v38 = vpop.f32.mrb[21].mxu1  ;;  %v1284_v39 = vpop.f32.mrb[21].mxu0 }
 0x122   : > { %v9049_v29 = vpop.permute.xlu0 %2732 }
 0x123   : > { %12628 = vst [vmem:[#allocation28_spill] sm:$0xff] %v9049_v29  ;;  %v9059_v29 = vpop.permute.xlu1 %2738 }
 0x124   : > { %v7650_v40 = vpop.f32.mrb[22].mxu1  ;;  %v7714_v41 = vpop.f32.mrb[22].mxu0  ;;  %12631 = vst [vmem:[#allocation31_spill] sm:$0xff] %v9059_v29 }
 0x125   : > { %1813 = vrot.lane.b32.xlu1 %v920_v32, %s8132_s29  ;;  %1941 = vrot.lane.b32.xlu0 %v1274_v33, %s8133_s15  ;;  %v940_v42 = vpop.f32.mrb[23].mxu1  ;;  %v1294_v43 = vpop.f32.mrb[23].mxu0 }
 0x126   : > { %v9057_v44 = vpop.permute.xlu0 %2736 }
 0x127   : > { %12630 = vst [vmem:[#allocation30_spill] sm:$0xff] %v9057_v44  ;;  %v9075_v35 = vpop.permute.xlu1 %2742 }
 0x128   : > { %v7653_v46 = vpop.f32.mrb[24].mxu1  ;;  %v7717_v47 = vpop.f32.mrb[24].mxu0  ;;  %12633 = vst [vmem:[#allocation33_spill] sm:$0xff] %v9075_v35 }
 0x129   : > { %1819 = vrot.lane.b32.xlu1 %v7647_v36, %s8132_s29  ;;  %1817 = vrot.lane.b32.xlu0 %v930_v38, %s8132_s29  ;;  %v950_v48 = vpop.f32.mrb[25].mxu1  ;;  %v1304_v49 = vpop.f32.mrb[25].mxu0 }
 0x12a   : > { %v9073_v29 = vpop.permute.xlu0 %2740 }
 0x12b   : > { %12632 = vst [vmem:[#allocation32_spill] sm:$0xff] %v9073_v29 }
 0x12c   : > { %v7656_v50 = vpop.f32.mrb[26].mxu1  ;;  %v7720_v26 = vpop.f32.mrb[26].mxu0 }
 0x12d   : > { %1947 = vrot.lane.b32.xlu1 %v7711_v37, %s8133_s15  ;;  %1945 = vrot.lane.b32.xlu0 %v1284_v39, %s8133_s15  ;;  %v960_v27 = vpop.f32.mrb[27].mxu1  ;;  %v1314_v28 = vpop.f32.mrb[27].mxu0 }
 0x12e   : > { %v9097_v16 = vpop.permute.xlu0 %2744 }
 0x12f   : > { %12634 = vst [vmem:[#allocation34_spill] sm:$0xff] %v9097_v16 }
 0x130   : > { %v7659_v31 = vpop.f32.mrb[28].mxu1  ;;  %v7723_v32 = vpop.f32.mrb[28].mxu0 }
 0x131   : > { %1823 = vrot.lane.b32.xlu1 %v7650_v40, %s8132_s29  ;;  %1821 = vrot.lane.b32.xlu0 %v940_v42, %s8132_s29  ;;  %v970_v33 = vpop.f32.mrb[29].mxu1  ;;  %v1324_v36 = vpop.f32.mrb[29].mxu0 }
 0x132   : > { %v9127_v21 = vpop.permute.xlu0 %2748 }
 0x133   : > { %12636 = vst [vmem:[#allocation36_spill] sm:$0xff] %v9127_v21 }
 0x134   : > { %v7662_v38 = vpop.f32.mrb[30].mxu1  ;;  %v7726_v14 = vpop.f32.mrb[30].mxu0 }
 0x135   : > { %1951 = vrot.lane.b32.xlu1 %v7714_v41, %s8133_s15  ;;  %1949 = vrot.lane.b32.xlu0 %v1294_v43, %s8133_s15  ;;  %v980_v37 = vpop.f32.mrb[31].mxu1  ;;  %v1334_v39 = vpop.f32.mrb[31].mxu0 }
 0x138   : > { %v7665_v30 = vpop.f32.mrb[32].mxu1  ;;  %v9061_v45 = vpop.f32.mrb[32].mxu0 }
 0x139   : > { %1827 = vrot.lane.b32.xlu1 %v7653_v46, %s8132_s29  ;;  %1825 = vrot.lane.b32.xlu0 %v950_v48, %s8132_s29  ;;  %v990_v40 = vpop.f32.mrb[33].mxu1  ;;  %v1344_v42 = vpop.f32.mrb[33].mxu0 }
 0x13c   : > { %v9065_v34 = vpop.f32.mrb[34].mxu1  ;;  %v9067_v41 = vpop.f32.mrb[34].mxu0 }
 0x13d   : > { %1955 = vrot.lane.b32.xlu1 %v7717_v47, %s8133_s15  ;;  %1953 = vrot.lane.b32.xlu0 %v1304_v49, %s8133_s15  ;;  %v1000_v43 = vpop.f32.mrb[35].mxu1  ;;  %v9071_v44 = vpop.f32.mrb[35].mxu0 }
 0x140   : > { %v9077_v46 = vpop.f32.mrb[36].mxu1  ;;  %v9079_v48 = vpop.f32.mrb[36].mxu0 }
 0x141   : > { %1831 = vrot.lane.b32.xlu1 %v7656_v50, %s8132_s29  ;;  %1829 = vrot.lane.b32.xlu0 %v960_v27, %s8132_s29  ;;  %v9083_v24 = vpop.f32.mrb[37].mxu1  ;;  %v9085_v47 = vpop.f32.mrb[37].mxu0 }
 0x142   : > { %v9099_v50 = vpop.permute.xlu1 %2746 }
 0x143   : > { %12635 = vst [vmem:[#allocation35_spill] sm:$0xff] %v9099_v50 }
 0x144   : > { %v9087_v49 = vpop.f32.mrb[38].mxu1  ;;  %v9089_v25 = vpop.f32.mrb[38].mxu0 }
 0x145   : > { %1959 = vrot.lane.b32.xlu1 %v7720_v26, %s8133_s15  ;;  %1957 = vrot.lane.b32.xlu0 %v1314_v28, %s8133_s15  ;;  %v9093_v29 = vpop.f32.mrb[39].mxu1  ;;  %v9095_v35 = vpop.f32.mrb[39].mxu0 }
 0x146   : > { %v9129_v19 = vpop.permute.xlu1 %2750 }
 0x147   : > { %12637 = vst [vmem:[#allocation37_spill] sm:$0xff] %v9129_v19 }
 0x148   : > { %v9101_v27 = vpop.f32.mrb[40].mxu1  ;;  %v9103_v10 = vpop.f32.mrb[40].mxu0 }
 0x149   : > { %1835 = vrot.lane.b32.xlu1 %v7659_v31, %s8132_s29  ;;  %1833 = vrot.lane.b32.xlu0 %v970_v33, %s8132_s29  ;;  %v9107_v3 = vpop.f32.mrb[41].mxu1  ;;  %v9109_v26 = vpop.f32.mrb[41].mxu0  ;;  %v2260_v31 = vld [vmem:[%s12583_s3] sm:$0xff]  ;;  %v2261_v33 = vld [vmem:[%s12583_s3 + $0x8] sm:$0xff] }
 0x14a   : > { %v8059_v13 = vpack.c.bf16 %v2261_v33, %v2260_v31 }
 0x14c   : > { %v9111_v28 = vpop.f32.mrb[42].mxu1  ;;  %v9113_v4 = vpop.f32.mrb[42].mxu0  ;;  %8060 = vmatprep.subr.bf16.mxu0 %v8059_v13 }
 0x14d   : > { %1963 = vrot.lane.b32.xlu1 %v7723_v32, %s8133_s15  ;;  %1961 = vrot.lane.b32.xlu0 %v1324_v36, %s8133_s15  ;;  %v9117_v16 = vpop.f32.mrb[43].mxu1  ;;  %v9119_v50 = vpop.f32.mrb[43].mxu0 }
 0x14e   : > { %8062 = vmatpush3.bf16.msra.mxu0 %v8059_v13 }
 0x150   : > { %v9131_v32 = vpop.f32.mrb[44].mxu1  ;;  %v9133_v36 = vpop.f32.mrb[44].mxu0 }
 0x151   : > { %1839 = vrot.lane.b32.xlu1 %v7662_v38, %s8132_s29  ;;  %1837 = vrot.lane.b32.xlu0 %v980_v37, %s8132_s29  ;;  %v9137_v17 = vpop.f32.mrb[45].mxu1  ;;  %v9139_v12 = vpop.f32.mrb[45].mxu0 }
 0x152   : > { %v9151_v38 = vpop.permute.xlu1 %2754  ;;  %v9153_v37 = vpop.permute.xlu0 %2752 }
 0x153   : > { %12638 = vst [vmem:[#allocation38_spill] sm:$0xff] %v9151_v38  ;;  %12639 = vst [vmem:[#allocation39_spill] sm:$0xff] %v9153_v37 }
 0x154   : > { %v9141_v7 = vpop.f32.mrb[46].mxu1  ;;  %v9143_v31 = vpop.f32.mrb[46].mxu0 }
 0x155   : > { %1967 = vrot.lane.b32.xlu1 %v7726_v14, %s8133_s15  ;;  %1965 = vrot.lane.b32.xlu0 %v1334_v39, %s8133_s15  ;;  %v9147_v33 = vpop.f32.mrb[47].mxu1  ;;  %v9149_v21 = vpop.f32.mrb[47].mxu0 }
 0x156   : > { %v9161_v8 = vpop.permute.xlu1 %2758  ;;  %v9168_v39 = vpop.permute.xlu0 %2756 }
 0x157   : > { %12640 = vst [vmem:[#allocation40_spill] sm:$0xff] %v9161_v8  ;;  %12641 = vst [vmem:[#allocation41_spill] sm:$0xff] %v9168_v39 }
 0x158   : > { %v9155_v19 = vpop.f32.mrb[48].mxu1 }
 0x159   : > { %1843 = vrot.lane.b32.xlu1 %v7665_v30, %s8132_s29  ;;  %1841 = vrot.lane.b32.xlu0 %v990_v40, %s8132_s29  ;;  %v9159_v13 = vpop.f32.mrb[49].mxu1 }
 0x15a   : > { %v9179_v40 = vpop.permute.xlu1 %2762  ;;  %v9181_v8 = vpop.permute.xlu0 %2760 }
 0x15b   : > { %12642 = vst [vmem:[#allocation42_spill] sm:$0xff] %v9179_v40  ;;  %12643 = vst [vmem:[#allocation43_spill] sm:$0xff] %v9181_v8 }
 0x15c   : > { %v9163_v14 = vpop.f32.mrb[50].mxu1 }
 0x15d   : > { %1971 = vrot.lane.b32.xlu1 %v9061_v45, %s8133_s15  ;;  %1969 = vrot.lane.b32.xlu0 %v1344_v42, %s8133_s15  ;;  %v9170_v37 = vpop.f32.mrb[51].mxu1 }
 0x15e   : > { %v9191_v39 = vpop.permute.xlu1 %2766 }
 0x15f   : > { %12644 = vst [vmem:[#allocation44_spill] sm:$0xff] %v9191_v39  ;;  %v2263_v39 = vld [vmem:[%s12583_s3 + $0x18] sm:$0xff] }
 0x160   : > { %v9172_v38 = vpop.f32.mrb[52].mxu1 }
 0x161   : > { %1847 = vrot.lane.b32.xlu1 %v9065_v34, %s8132_s29  ;;  %1845 = vrot.lane.b32.xlu0 %v1000_v43, %s8132_s29  ;;  %v9177_v30 = vpop.f32.mrb[53].mxu1  ;;  %v9199_v43 = vpop.permute.xlu0 %2764 }
 0x162   : > { %12645 = vst [vmem:[#allocation45_spill] sm:$0xff] %v9199_v43  ;;  %v9217_v43 = vpop.permute.xlu1 %2770 }
 0x163   : > { %12646 = vst [vmem:[#allocation46_spill] sm:$0xff] %v9217_v43 }
 0x164   : > { %v9183_v45 = vpop.f32.mrb[54].mxu1 }
 0x165   : > { %1975 = vrot.lane.b32.xlu1 %v9067_v41, %s8133_s15  ;;  %1973 = vrot.lane.b32.xlu0 %v9071_v44, %s8133_s15  ;;  %v9189_v42 = vpop.f32.mrb[55].mxu1  ;;  %v2262_v44 = vld [vmem:[%s12583_s3 + $0x10] sm:$0xff]  ;;  %v9219_v40 = vpop.permute.xlu0 %2768 }
 0x166   : > { %12647 = vst [vmem:[#allocation47_spill] sm:$0xff] %v9219_v40 }
 0x168   : > { %v9193_v34 = vpop.f32.mrb[56].mxu1 }
 0x169   : > { %1851 = vrot.lane.b32.xlu1 %v9077_v46, %s8132_s29  ;;  %1849 = vrot.lane.b32.xlu0 %v9083_v24, %s8132_s29  ;;  %v9201_v8 = vpop.f32.mrb[57].mxu1  ;;  %v8063_v46 = vpack.c.bf16 %v2263_v39, %v2262_v44  ;;  %v9237_v39 = vpop.permute.xlu0 %2772 }
 0x16a   : > { %12649 = vst [vmem:[#allocation49_spill] sm:$0xff] %v9237_v39 }
 0x16b   : > { %8064 = vmatprep.subr.bf16.mxu0 %v8063_v46 }
 0x16c   : > { %v9203_v41 = vpop.f32.mrb[58].mxu1  ;;  %8066 = vmatpush3.bf16.msra.mxu0 %v8063_v46 }
 0x16d   : > { %1979 = vrot.lane.b32.xlu1 %v9079_v48, %s8133_s15  ;;  %1977 = vrot.lane.b32.xlu0 %v9085_v47, %s8133_s15  ;;  %v9215_v24 = vpop.f32.mrb[59].mxu1  ;;  %v9229_v47 = vpop.permute.xlu1 %2774 }
 0x16e   : > { %12648 = vst [vmem:[#allocation48_spill] sm:$0xff] %v9229_v47 }
 0x170   : > { %v9221_v5 = vpop.f32.mrb[60].mxu1 }
 0x171   : > { %1855 = vrot.lane.b32.xlu1 %v9087_v49, %s8132_s29  ;;  %1853 = vrot.lane.b32.xlu0 %v9093_v29, %s8132_s29  ;;  %v9227_v48 = vpop.f32.mrb[61].mxu1  ;;  %v9249_v46 = vpop.permute.xlu1 %3197 }
 0x172   : > { %12650 = vst [vmem:[#allocation50_spill] sm:$0xff] %v9249_v46 }
 0x174   : > { %v9231_v1 = vpop.f32.mrb[62].mxu1 }
 0x175   : > { %1983 = vrot.lane.b32.xlu1 %v9089_v25, %s8133_s15  ;;  %1981 = vrot.lane.b32.xlu0 %v9095_v35, %s8133_s15  ;;  %v9239_v44 = vpop.f32.mrb[63].mxu1  ;;  %v9251_v25 = vpop.permute.xlu0 %3195 }
 0x176   : > { %12651 = vst [vmem:[#allocation51_spill] sm:$0xff] %v9251_v25 }
 0x178   : > { %v9241_v49 = vpop.f32.mrb[64].mxu1 }
 0x179   : > { %1859 = vrot.lane.b32.xlu1 %v9101_v27, %s8132_s29  ;;  %1857 = vrot.lane.b32.xlu0 %v9107_v3, %s8132_s29  ;;  %v9247_v29 = vpop.f32.mrb[65].mxu1  ;;  %v9261_v27 = vpop.permute.xlu1 %3325 }
 0x17a   : > { %12652 = vst [vmem:[#allocation52_spill] sm:$0xff] %v9261_v27  ;;  %v9265_v3 = vpop.permute.xlu0 %3323 }
 0x17b   : > { %12653 = vst [vmem:[#allocation53_spill] sm:$0xff] %v9265_v3 }
 0x17c   : > { %v9253_v47 = vpop.f32.mrb[66].mxu1 }
 0x17d   : > { %1987 = vrot.lane.b32.xlu1 %v9103_v10, %s8133_s15  ;;  %1985 = vrot.lane.b32.xlu0 %v9109_v26, %s8133_s15  ;;  %v9259_v35 = vpop.f32.mrb[67].mxu1  ;;  %v9273_v10 = vpop.permute.xlu1 %3897 }
 0x17e   : > { %12654 = vst [vmem:[#allocation54_spill] sm:$0xff] %v9273_v10  ;;  %v9281_v26 = vpop.permute.xlu0 %3895 }
 0x17f   : > { %12655 = vst [vmem:[#allocation55_spill] sm:$0xff] %v9281_v26 }
 0x180   : > { %v9263_v39 = vpop.f32.mrb[68].mxu1 }
 0x181   : > { %1863 = vrot.lane.b32.xlu1 %v9111_v28, %s8132_s29  ;;  %1861 = vrot.lane.b32.xlu0 %v9117_v16, %s8132_s29  ;;  %v9271_v25 = vpop.f32.mrb[69].mxu1 }
 0x184   : > { %v9275_v46 = vpop.f32.mrb[70].mxu1 }
 0x185   : > { %1991 = vrot.lane.b32.xlu1 %v9113_v4, %s8133_s15  ;;  %1989 = vrot.lane.b32.xlu0 %v9119_v50, %s8133_s15  ;;  %v9283_v3 = vpop.f32.mrb[71].mxu1 }
 0x188   : > { %v9285_v28 = vpop.f32.mrb[72].mxu1 }
 0x189   : > { %1867 = vrot.lane.b32.xlu1 %v9131_v32, %s8132_s29  ;;  %1865 = vrot.lane.b32.xlu0 %v9137_v17, %s8132_s29  ;;  %v9291_v16 = vpop.f32.mrb[73].mxu1 }
 0x18b   : > { %v9293_v10 = vpop.permute.xlu0 %1811  ;;  %v9295_v4 = vpop.permute.xlu1 %1939 }
 0x18c   : > { %v9297_v27 = vpop.f32.mrb[74].mxu1 }
 0x18d   : > { %1995 = vrot.lane.b32.xlu1 %v9133_v36, %s8133_s15  ;;  %1993 = vrot.lane.b32.xlu0 %v9139_v12, %s8133_s15  ;;  %v9303_v50 = vpop.f32.mrb[75].mxu1 }
 0x18f   : > { %v9305_v32 = vpop.permute.xlu0 %1809  ;;  %v9307_v26 = vpop.permute.xlu1 %1815 }
 0x190   : > { %v9309_v17 = vpop.f32.mrb[76].mxu1 }
 0x191   : > { %1871 = vrot.lane.b32.xlu1 %v9141_v7, %s8132_s29  ;;  %1869 = vrot.lane.b32.xlu0 %v9147_v33, %s8132_s29  ;;  %v9315_v40 = vpop.f32.mrb[77].mxu1 }
 0x193   : > { %v9317_v36 = vpop.permute.xlu0 %1937  ;;  %v9319_v43 = vpop.permute.xlu1 %1943 }
 0x194   : > { %v9321_v12 = vpop.f32.mrb[78].mxu1 }
 0x195   : > { %1999 = vrot.lane.b32.xlu1 %v9143_v31, %s8133_s15  ;;  %1997 = vrot.lane.b32.xlu0 %v9149_v21, %s8133_s15  ;;  %v9327_v63 = vpop.f32.mrb[79].mxu1 }
 0x197   : > { %v9329_v7 = vpop.permute.xlu1 %1813  ;;  %v9331_v61 = vpop.permute.xlu0 %1941 }
 0x199   : > { %2067 = vrot.lane.b32.xlu1 %v9155_v19, %s8135_s13  ;;  %2065 = vrot.lane.b32.xlu0 %v9159_v13, %s8135_s13 }
 0x19b   : > { %v9337_v33 = vpop.permute.xlu1 %1819  ;;  %v9339_v59 = vpop.permute.xlu0 %1817 }
 0x19d   : > { %2071 = vrot.lane.b32.xlu1 %v9163_v14, %s8135_s13  ;;  %2069 = vrot.lane.b32.xlu0 %v9170_v37, %s8135_s13 }
 0x19f   : > { %v9345_v21 = vpop.permute.xlu1 %1947  ;;  %v9347_v31 = vpop.permute.xlu0 %1945 }
 0x1a1   : > { %2075 = vrot.lane.b32.xlu1 %v9172_v38, %s8135_s13  ;;  %2073 = vrot.lane.b32.xlu0 %v9177_v30, %s8135_s13 }
 0x1a3   : > { %v9353_v19 = vpop.permute.xlu1 %1823  ;;  %v9355_v13 = vpop.permute.xlu0 %1821 }
 0x1a5   : > { %2079 = vrot.lane.b32.xlu1 %v9183_v45, %s8135_s13  ;;  %2077 = vrot.lane.b32.xlu0 %v9189_v42, %s8135_s13 }
 0x1a7   : > { %v9361_v37 = vpop.permute.xlu1 %1951  ;;  %v9363_v14 = vpop.permute.xlu0 %1949 }
 0x1a9   : > { %2083 = vrot.lane.b32.xlu1 %v9193_v34, %s8135_s13  ;;  %2081 = vrot.lane.b32.xlu0 %v9201_v8, %s8135_s13 }
 0x1ab   : > { %v9369_v38 = vpop.permute.xlu1 %1827  ;;  %v9371_v30 = vpop.permute.xlu0 %1825 }
 0x1ad   : > { %2087 = vrot.lane.b32.xlu1 %v9203_v41, %s8135_s13  ;;  %2085 = vrot.lane.b32.xlu0 %v9215_v24, %s8135_s13 }
 0x1af   : > { %v9377_v45 = vpop.permute.xlu1 %1955  ;;  %v9379_v42 = vpop.permute.xlu0 %1953 }
 0x1b1   : > { %2091 = vrot.lane.b32.xlu1 %v9221_v5, %s8135_s13  ;;  %2089 = vrot.lane.b32.xlu0 %v9227_v48, %s8135_s13 }
 0x1b3   : > { %v9385_v8 = vpop.permute.xlu1 %1831  ;;  %v9387_v34 = vpop.permute.xlu0 %1829 }
 0x1b5   : > { %2095 = vrot.lane.b32.xlu1 %v9231_v1, %s8135_s13  ;;  %2093 = vrot.lane.b32.xlu0 %v9239_v44, %s8135_s13 }
 0x1b7   : > { %v9393_v41 = vpop.permute.xlu1 %1959  ;;  %v9395_v24 = vpop.permute.xlu0 %1957 }
 0x1b9   : > { %2099 = vrot.lane.b32.xlu1 %v9241_v49, %s8135_s13  ;;  %2097 = vrot.lane.b32.xlu0 %v9247_v29, %s8135_s13 }
 0x1bb   : > { %v9401_v5 = vpop.permute.xlu1 %1835  ;;  %v9403_v48 = vpop.permute.xlu0 %1833 }
 0x1bd   : > { %2103 = vrot.lane.b32.xlu1 %v9253_v47, %s8135_s13  ;;  %2101 = vrot.lane.b32.xlu0 %v9259_v35, %s8135_s13 }
 0x1bf   : > { %v9409_v1 = vpop.permute.xlu1 %1963  ;;  %v9411_v44 = vpop.permute.xlu0 %1961 }
 0x1c1   : > { %2107 = vrot.lane.b32.xlu1 %v9263_v39, %s8135_s13  ;;  %2105 = vrot.lane.b32.xlu0 %v9271_v25, %s8135_s13 }
 0x1c3   : > { %v9417_v49 = vpop.permute.xlu1 %1839  ;;  %v9419_v29 = vpop.permute.xlu0 %1837 }
 0x1c5   : > { %2111 = vrot.lane.b32.xlu1 %v9275_v46, %s8135_s13  ;;  %2109 = vrot.lane.b32.xlu0 %v9283_v3, %s8135_s13 }
 0x1c7   : > { %v9425_v47 = vpop.permute.xlu1 %1967  ;;  %v9427_v35 = vpop.permute.xlu0 %1965 }
 0x1c9   : > { %2115 = vrot.lane.b32.xlu1 %v9285_v28, %s8135_s13  ;;  %2113 = vrot.lane.b32.xlu0 %v9291_v16, %s8135_s13 }
 0x1cb   : > { %v9433_v39 = vpop.permute.xlu1 %1843  ;;  %v9435_v25 = vpop.permute.xlu0 %1841 }
 0x1cd   : > { %2119 = vrot.lane.b32.xlu1 %v9297_v27, %s8135_s13  ;;  %2117 = vrot.lane.b32.xlu0 %v9303_v50, %s8135_s13 }
 0x1cf   : > { %v9441_v46 = vpop.permute.xlu1 %1971  ;;  %v9443_v3 = vpop.permute.xlu0 %1969 }
 0x1d0   : > { %12656 = vst [vmem:[#allocation56_spill] sm:$0xff] %v9443_v3 }
 0x1d1   : > { %2123 = vrot.lane.b32.xlu1 %v9309_v17, %s8135_s13  ;;  %2121 = vrot.lane.b32.xlu0 %v9315_v40, %s8135_s13 }
 0x1d3   : > { %v9449_v28 = vpop.permute.xlu1 %1847  ;;  %v9451_v16 = vpop.permute.xlu0 %1845 }
 0x1d4   : > { %12657 = vst [vmem:[#allocation57_spill] sm:$0xff] %v9449_v28  ;;  %12658 = vst [vmem:[#allocation58_spill] sm:$0xff] %v9451_v16 }
 0x1d5   : > { %2127 = vrot.lane.b32.xlu1 %v9321_v12, %s8135_s13  ;;  %2125 = vrot.lane.b32.xlu0 %v9327_v63, %s8135_s13 }
 0x1d7   : > { %v9457_v27 = vpop.permute.xlu1 %1975  ;;  %v9459_v50 = vpop.permute.xlu0 %1973 }
 0x1d8   : > { %12659 = vst [vmem:[#allocation59_spill] sm:$0xff] %v9457_v27  ;;  %12660 = vst [vmem:[#allocation60_spill] sm:$0xff] %v9459_v50 }
 0x1db   : > { %v9461_v57 = vpop.permute.xlu1 %1851  ;;  %v9463_v17 = vpop.permute.xlu0 %1849 }
 0x1dc   : > { %12661 = vst [vmem:[#allocation61_spill] sm:$0xff] %v9461_v57  ;;  %12662 = vst [vmem:[#allocation62_spill] sm:$0xff] %v9463_v17 }
 0x1df   : > { %v9465_v55 = vpop.permute.xlu1 %1979  ;;  %v9467_v40 = vpop.permute.xlu0 %1977 }
 0x1e0   : > { %12663 = vst [vmem:[#allocation63_spill] sm:$0xff] %v9465_v55  ;;  %12664 = vst [vmem:[#allocation64_spill] sm:$0xff] %v9467_v40 }
 0x1e3   : > { %v9469_v28 = vpop.permute.xlu1 %1855  ;;  %v9471_v16 = vpop.permute.xlu0 %1853 }
 0x1e4   : > { %12665 = vst [vmem:[#allocation65_spill] sm:$0xff] %v9469_v28  ;;  %12666 = vst [vmem:[#allocation66_spill] sm:$0xff] %v9471_v16 }
 0x1e7   : > { %v9473_v12 = vpop.permute.xlu1 %1983  ;;  %v9475_v3 = vpop.permute.xlu0 %1981 }
 0x1e8   : > { %12667 = vst [vmem:[#allocation67_spill] sm:$0xff] %v9473_v12  ;;  %12668 = vst [vmem:[#allocation68_spill] sm:$0xff] %v9475_v3 }
 0x1eb   : > { %v9477_v63 = vpop.permute.xlu1 %1859  ;;  %v9479_v27 = vpop.permute.xlu0 %1857 }
 0x1ec   : > { %12669 = vst [vmem:[#allocation69_spill] sm:$0xff] %v9477_v63  ;;  %12670 = vst [vmem:[#allocation70_spill] sm:$0xff] %v9479_v27 }
 0x1ef   : > { %v9481_v50 = vpop.permute.xlu1 %1987  ;;  %v9483_v57 = vpop.permute.xlu0 %1985 }
 0x1f0   : > { %12671 = vst [vmem:[#allocation71_spill] sm:$0xff] %v9481_v50  ;;  %12672 = vst [vmem:[#allocation72_spill] sm:$0xff] %v9483_v57 }
 0x1f3   : > { %v9485_v17 = vpop.permute.xlu1 %1863  ;;  %v9487_v55 = vpop.permute.xlu0 %1861 }
 0x1f4   : > { %12673 = vst [vmem:[#allocation73_spill] sm:$0xff] %v9485_v17 }
 0x1f7   : > { %v9489_v40 = vpop.permute.xlu1 %1991  ;;  %v9491_v28 = vpop.permute.xlu0 %1989 }
 0x1f8   : > { %12674 = vst [vmem:[#allocation74_spill] sm:$0xff] %v9491_v28  ;;  %v2163_v28 = vsel %vm2161_vm1, %v8955_v52, %v9293_v10 }
 0x1fb   : > { %v9493_v16 = vpop.permute.xlu1 %1867  ;;  %v9495_v12 = vpop.permute.xlu0 %1865 }
 0x1ff   : > { %v9497_v3 = vpop.permute.xlu1 %1995  ;;  %v9499_v63 = vpop.permute.xlu0 %1993 }
 0x200   : > { %12675 = vst [vmem:[#allocation75_spill] sm:$0xff] %v9497_v3  ;;  %12676 = vst [vmem:[#allocation76_spill] sm:$0xff] %v9499_v63  ;;  %v2162_v3 = vsel %vm2161_vm1, %v8959_v54, %v9305_v32  ;;  %v2165_v54 = vsel %vm2161_vm1, %v8963_v56, %v9307_v26  ;;  %v2167_v56 = vsel %vm2161_vm1, %v8971_v60, %v9337_v33 }
 0x201   : > { %v2166_v26 = vsel %vm2161_vm1, %v8975_v62, %v9339_v59  ;;  %v2169_v59 = vsel %vm2161_vm1, %v8979_v0, %v9353_v19  ;;  %v2168_v60 = vsel %vm2161_vm1, %v8983_v2, %v9355_v13  ;;  %v2171_v0 = vsel %vm2161_vm1, %v8991_v6, %v9369_v38 }
 0x202   : > { %v2202_v62 = vsel %vm2194_vm4, %v2169_v59, %v9361_v37  ;;  %v2201_v33 = vsel %vm2194_vm4, %v2168_v60, %v9363_v14  ;;  %v2170_v2 = vsel %vm2161_vm1, %v8995_v9, %v9371_v30  ;;  %v2204_v19 = vsel %vm2194_vm4, %v2171_v0, %v9377_v45 }
 0x203   : > { %v9501_v27 = vpop.permute.xlu1 %1871  ;;  %v9503_v50 = vpop.permute.xlu0 %1869  ;;  %v2203_v13 = vsel %vm2194_vm4, %v2170_v2, %v9379_v42  ;;  %v2173_v6 = vsel %vm2161_vm1, %v8999_v11, %v9385_v8  ;;  %v2172_v9 = vsel %vm2161_vm1, %v9003_v15, %v9387_v34  ;;  %v2175_v11 = vsel %vm2161_vm1, %v9011_v18, %v9401_v5  ;;  %v12692_v2 = vld [vmem:[#allocation63_spill] sm:$0xff] }
 0x204   : > { %12677 = vst [vmem:[#allocation77_spill] sm:$0xff] %v9501_v27  ;;  %12678 = vst [vmem:[#allocation78_spill] sm:$0xff] %v9503_v50  ;;  %v2196_v27 = vsel %vm2194_vm4, %v2163_v28, %v9295_v4  ;;  %v2195_v50 = vsel %vm2194_vm4, %v2162_v3, %v9317_v36  ;;  %v2198_v4 = vsel %vm2194_vm4, %v2165_v54, %v9319_v43 }
 0x205   : > { %v2199_v43 = vsel %vm2194_vm4, %v2166_v26, %v9347_v31  ;;  %v2206_v38 = vsel %vm2194_vm4, %v2173_v6, %v9393_v41  ;;  %v2205_v30 = vsel %vm2194_vm4, %v2172_v9, %v9395_v24  ;;  %v2174_v15 = vsel %vm2161_vm1, %v9015_v20, %v9403_v48  ;;  %v12694_v9 = vld [vmem:[#allocation65_spill] sm:$0xff] }
 0x206   : > { %v2208_v8 = vsel %vm2194_vm4, %v2175_v11, %v9409_v1  ;;  %v2207_v34 = vsel %vm2194_vm4, %v2174_v15, %v9411_v44  ;;  %v2177_v18 = vsel %vm2161_vm1, %v9019_v22, %v9417_v49  ;;  %v2176_v20 = vsel %vm2161_vm1, %v9023_v23, %v9419_v29  ;;  %v12681_v29 = vld [vmem:[#allocation56_spill] sm:$0xff] }
 0x207   : > { %v9505_v57 = vpop.permute.xlu1 %1999  ;;  %v9507_v17 = vpop.permute.xlu0 %1997  ;;  %v2210_v5 = vsel %vm2194_vm4, %v2177_v18, %v9425_v47  ;;  %v2209_v48 = vsel %vm2194_vm4, %v2176_v20, %v9427_v35  ;;  %v2179_v22 = vsel %vm2161_vm1, %v8953_v51, %v9433_v39  ;;  %v2178_v23 = vsel %vm2161_vm1, %v8957_v53, %v9435_v25  ;;  %v12682_v51 = vld [vmem:[#allocation57_spill] sm:$0xff]  ;;  %v12683_v39 = vld [vmem:[#allocation4_spill] sm:$0xff]  ;;  %v12684_v25 = vld [vmem:[#allocation58_spill] sm:$0xff] }
 0x208   : > { %12679 = vst [vmem:[#allocation79_spill] sm:$0xff] %v9505_v57  ;;  %12680 = vst [vmem:[#allocation80_spill] sm:$0xff] %v9507_v17  ;;  %v2164_v17 = vsel %vm2161_vm1, %v8967_v58, %v9329_v7  ;;  %v2212_v49 = vsel %vm2194_vm4, %v2179_v22, %v9441_v46  ;;  %v2211_v47 = vsel %vm2194_vm4, %v2178_v23, %v12681_v29  ;;  %v12686_v46 = vld [vmem:[#allocation59_spill] sm:$0xff]  ;;  %v12699_v15 = vld [vmem:[#allocation68_spill] sm:$0xff] }
 0x209   : > { %v2197_v32 = vsel %vm2194_vm4, %v2164_v17, %v9331_v61  ;;  %v2200_v61 = vsel %vm2194_vm4, %v2167_v56, %v9345_v21  ;;  %v2181_v53 = vsel %vm2161_vm1, %v12683_v39, %v12682_v51  ;;  %v12701_v18 = vld [vmem:[#allocation12_spill] sm:$0xff] }
 0x20b   : > { %v2068_v57 = vpop.permute.xlu1 %2067  ;;  %v2066_v63 = vpop.permute.xlu0 %2065 }
 0x20c   : > { %v2229_v52 = vsel %vm2227_vm3, %v2196_v27, %v2068_v57  ;;  %v2228_v10 = vsel %vm2227_vm3, %v2195_v50, %v2066_v63 }
 0x20d   : > { %7823 = vmatprep.mubr.msk.f32.mxu0 %vm2271_vm5, %v2228_v10 }
 0x20e   : > { %7824 = vmatmul.mubr.msk.f32.vlgmr.msra.gmra.mrb[48].mxu0 %vm2271_vm5, %v2229_v52 }
 0x20f   : > { %v2072_v36 = vpop.permute.xlu1 %2071  ;;  %v2070_v58 = vpop.permute.xlu0 %2069 }
 0x210   : > { %v2231_v57 = vsel %vm2227_vm3, %v2198_v4, %v2072_v36  ;;  %v2230_v7 = vsel %vm2227_vm3, %v2197_v32, %v2070_v58 }
 0x211   : > { %7826 = vmatprep.mubr.msk.f32.mxu0 %vm2271_vm5, %v2230_v7 }
 0x212   : > { %7827 = vmatmul.mubr.msk.f32.gmra.mrb[50].mxu0 %vm2271_vm5, %v2231_v57 }
 0x213   : > { %v2076_v3 = vpop.permute.xlu1 %2075  ;;  %v2074_v28 = vpop.permute.xlu0 %2073 }
 0x214   : > { %v2233_v27 = vsel %vm2227_vm3, %v2200_v61, %v2076_v3  ;;  %v2232_v50 = vsel %vm2227_vm3, %v2199_v43, %v2074_v28  ;;  %v12685_v61 = vld [vmem:[#allocation5_spill] sm:$0xff]  ;;  %v2214_v3 = vsel %vm2194_vm4, %v2181_v53, %v12686_v46  ;;  %v12687_v28 = vld [vmem:[#allocation60_spill] sm:$0xff]  ;;  %v12709_v53 = vld [vmem:[#allocation74_spill] sm:$0xff] }
 0x215   : > { %7829 = vmatprep.mubr.msk.f32.mxu0 %vm2271_vm5, %v2232_v50  ;;  %v2180_v43 = vsel %vm2161_vm1, %v12685_v61, %v12684_v25 }
 0x216   : > { %7830 = vmatmul.mubr.msk.f32.gmra.mrb[52].mxu0 %vm2271_vm5, %v2233_v27  ;;  %v2213_v27 = vsel %vm2194_vm4, %v2180_v43, %v12687_v28  ;;  %v12710_v28 = vld [vmem:[#allocation18_spill] sm:$0xff] }
 0x217   : > { %v2080_v21 = vpop.permute.xlu1 %2079  ;;  %v2078_v31 = vpop.permute.xlu0 %2077 }
 0x218   : > { %v2235_v17 = vsel %vm2227_vm3, %v2202_v62, %v2080_v21  ;;  %v2234_v63 = vsel %vm2227_vm3, %v2201_v33, %v2078_v31  ;;  %v12688_v33 = vld [vmem:[#allocation61_spill] sm:$0xff]  ;;  %v12689_v21 = vld [vmem:[#allocation6_spill] sm:$0xff] }
 0x219   : > { %7832 = vmatprep.mubr.msk.f32.mxu0 %vm2271_vm5, %v2234_v63  ;;  %v2183_v31 = vsel %vm2161_vm1, %v12689_v21, %v12688_v33  ;;  %v12691_v63 = vld [vmem:[#allocation7_spill] sm:$0xff] }
 0x21a   : > { %7833 = vmatmul.mubr.msk.f32.gmra.mrb[54].mxu0 %vm2271_vm5, %v2235_v17  ;;  %v12690_v17 = vld [vmem:[#allocation62_spill] sm:$0xff] }
 0x21b   : > { %v2084_v37 = vpop.permute.xlu1 %2083  ;;  %v2082_v14 = vpop.permute.xlu0 %2081  ;;  %v2182_v0 = vsel %vm2161_vm1, %v12691_v63, %v12690_v17  ;;  %v12715_v63 = vld [vmem:[#allocation20_spill] sm:$0xff] }
 0x21c   : > { %v2237_v52 = vsel %vm2227_vm3, %v2204_v19, %v2084_v37  ;;  %v2236_v10 = vsel %vm2227_vm3, %v2203_v13, %v2082_v14  ;;  %v2216_v19 = vsel %vm2194_vm4, %v2183_v31, %v12692_v2  ;;  %v12693_v13 = vld [vmem:[#allocation64_spill] sm:$0xff]  ;;  %v12717_v2 = vld [vmem:[#allocation21_spill] sm:$0xff] }
 0x21d   : > { %7835 = vmatprep.mubr.msk.f32.mxu0 %vm2271_vm5, %v2236_v10  ;;  %v2215_v37 = vsel %vm2194_vm4, %v2182_v0, %v12693_v13  ;;  %v12716_v0 = vld [vmem:[#allocation78_spill] sm:$0xff]  ;;  %v12718_v13 = vld [vmem:[#allocation79_spill] sm:$0xff] }
 0x21e   : > { %7836 = vmatmul.mubr.msk.f32.gmra.mrb[56].mxu0 %vm2271_vm5, %v2237_v52 }
 0x21f   : > { %v2088_v45 = vpop.permute.xlu1 %2087  ;;  %v2086_v42 = vpop.permute.xlu0 %2085 }
 0x220   : > { %v2239_v54 = vsel %vm2227_vm3, %v2206_v38, %v2088_v45  ;;  %v2238_v4 = vsel %vm2227_vm3, %v2205_v30, %v2086_v42  ;;  %v12695_v38 = vld [vmem:[#allocation8_spill] sm:$0xff]  ;;  %v12696_v45 = vld [vmem:[#allocation66_spill] sm:$0xff]  ;;  %v12697_v42 = vld [vmem:[#allocation9_spill] sm:$0xff] }
 0x221   : > { %7838 = vmatprep.mubr.msk.f32.mxu0 %vm2271_vm5, %v2238_v4  ;;  %v2185_v30 = vsel %vm2161_vm1, %v12695_v38, %v12694_v9  ;;  %v12698_v4 = vld [vmem:[#allocation67_spill] sm:$0xff] }
 0x222   : > { %7839 = vmatmul.mubr.msk.f32.gmra.mrb[58].mxu0 %vm2271_vm5, %v2239_v54  ;;  %v2184_v54 = vsel %vm2161_vm1, %v12697_v42, %v12696_v45  ;;  %v2218_v11 = vsel %vm2194_vm4, %v2185_v30, %v12698_v4  ;;  %v12720_v30 = vmov 0.0   ;;  %v9808_v45 = vld [vmem:[%s12584_s4] ss:$0 sm:$0xff] }
 0x223   : > { %v2092_v41 = vpop.permute.xlu1 %2091  ;;  %v2090_v24 = vpop.permute.xlu0 %2089  ;;  %4816 = vst.msk [vmem:[#allocation3] sm:$0xff] %vm2808_vm6, %v12720_v30  ;;  %4817 = vst.msk [vmem:[#allocation3 + $0x8] sm:$0xff] %vm2808_vm6, %v12720_v30 }
 0x224   : > { %v2241_v32 = vsel %vm2227_vm3, %v2208_v8, %v2092_v41  ;;  %v2240_v36 = vsel %vm2227_vm3, %v2207_v34, %v2090_v24  ;;  %v2217_v8 = vsel %vm2194_vm4, %v2184_v54, %v12699_v15  ;;  %4820 = vst.msk [vmem:[#allocation3 + $0x18] sm:$0xff] %vm2808_vm6, %v12720_v30  ;;  %4821 = vst.msk [vmem:[#allocation3 + $0x20] sm:$0xff] %vm2808_vm6, %v12720_v30  ;;  %v12721_v15 = vld [vmem:[#allocation11_spill] sm:$0xff] }
 0x225   : > { %7841 = vmatprep.mubr.msk.f32.mxu0 %vm2271_vm5, %v2240_v36  ;;  %v12700_v36 = vld [vmem:[#allocation69_spill] sm:$0xff]  ;;  %4823 = vst.msk [vmem:[#allocation3 + $0x30] sm:$0xff] %vm2808_vm6, %v12720_v30  ;;  %4824 = vst.msk [vmem:[#allocation3 + $0x38] sm:$0xff] %vm2808_vm6, %v12720_v30 }
 0x226   : > { %7842 = vmatmul.mubr.msk.f32.gmra.mrb[60].mxu0 %vm2271_vm5, %v2241_v32  ;;  %v2187_v20 = vsel %vm2161_vm1, %v12701_v18, %v12700_v36  ;;  %4826 = vst.msk [vmem:[#allocation3 + $0x48] sm:$0xff] %vm2808_vm6, %v12720_v30  ;;  %4827 = vst.msk [vmem:[#allocation3 + $0x50] sm:$0xff] %vm2808_vm6, %v12720_v30 }
 0x227   : > { %v2096_v1 = vpop.permute.xlu1 %2095  ;;  %v2094_v44 = vpop.permute.xlu0 %2093  ;;  %4829 = vst.msk [vmem:[#allocation3 + $0x60] sm:$0xff] %vm2808_vm6, %v12720_v30  ;;  %4830 = vst.msk [vmem:[#allocation3 + $0x68] sm:$0xff] %vm2808_vm6, %v12720_v30 }
 0x228   : > { %v2243_v58 = vsel %vm2227_vm3, %v2210_v5, %v2096_v1  ;;  %v2242_v57 = vsel %vm2227_vm3, %v2209_v48, %v2094_v44  ;;  %v12702_v5 = vld [vmem:[#allocation70_spill] sm:$0xff]  ;;  %v12703_v48 = vld [vmem:[#allocation13_spill] sm:$0xff]  ;;  %v12704_v44 = vld [vmem:[#allocation71_spill] sm:$0xff]  ;;  %4832 = vst.msk [vmem:[#allocation3 + $0x78] sm:$0xff] %vm2808_vm6, %v12720_v30 }
 0x229   : > { %7844 = vmatprep.mubr.msk.f32.mxu0 %vm2271_vm5, %v2242_v57  ;;  %v2186_v1 = vsel %vm2161_vm1, %v12703_v48, %v12702_v5  ;;  %v12705_v57 = vld [vmem:[#allocation72_spill] sm:$0xff]  ;;  %4833 = vst.msk [vmem:[#allocation3 + $0x80] sm:$0xff] %vm2808_vm6, %v12720_v30  ;;  %4835 = vst.msk [vmem:[#allocation3 + $0x90] sm:$0xff] %vm2808_vm6, %v12720_v30 }
 0x22a   : > { %7845 = vmatmul.mubr.msk.f32.gmra.mrb[62].mxu0 %vm2271_vm5, %v2243_v58  ;;  %v2220_v58 = vsel %vm2194_vm4, %v2187_v20, %v12704_v44  ;;  %v2219_v22 = vsel %vm2194_vm4, %v2186_v1, %v12705_v57  ;;  %4836 = vst.msk [vmem:[#allocation3 + $0x98] sm:$0xff] %vm2808_vm6, %v12720_v30  ;;  %4838 = vst.msk [vmem:[#allocation3 + $0xa8] sm:$0xff] %vm2808_vm6, %v12720_v30  ;;  %v12723_v20 = vld [vmem:[#allocation17_spill] sm:$0xff]  ;;  %v12724_v48 = vld [vmem:[#allocation16_spill] sm:$0xff] }
 0x22b   : > { %v2100_v35 = vpop.permute.xlu1 %2099  ;;  %v2098_v7 = vpop.permute.xlu0 %2097  ;;  %4839 = vst.msk [vmem:[#allocation3 + $0xb0] sm:$0xff] %vm2808_vm6, %v12720_v30  ;;  %4841 = vst.msk [vmem:[#allocation3 + $0xc0] sm:$0xff] %vm2808_vm6, %v12720_v30 }
 0x22c   : > { %v2245_v56 = vsel %vm2227_vm3, %v2212_v49, %v2100_v35  ;;  %v2244_v26 = vsel %vm2227_vm3, %v2211_v47, %v2098_v7  ;;  %v12706_v35 = vld [vmem:[#allocation73_spill] sm:$0xff]  ;;  %v12707_v7 = vld [vmem:[#allocation14_spill] sm:$0xff]  ;;  %4842 = vst.msk [vmem:[#allocation3 + $0xc8] sm:$0xff] %vm2808_vm6, %v12720_v30  ;;  %4844 = vst.msk [vmem:[#allocation3 + $0xd8] sm:$0xff] %vm2808_vm6, %v12720_v30 }
 0x22d   : > { %7847 = vmatprep.mubr.msk.f32.mxu0 %vm2271_vm5, %v2244_v26  ;;  %v12708_v26 = vld [vmem:[#allocation15_spill] sm:$0xff]  ;;  %4845 = vst.msk [vmem:[#allocation3 + $0xe0] sm:$0xff] %vm2808_vm6, %v12720_v30  ;;  %4847 = vst.msk [vmem:[#allocation3 + $0xf0] sm:$0xff] %vm2808_vm6, %v12720_v30 }
 0x22e   : > { %7848 = vmatmul.mubr.msk.f32.gmra.mrb[64].mxu0 %vm2271_vm5, %v2245_v56  ;;  %v2189_v56 = vsel %vm2161_vm1, %v12707_v7, %v12706_v35  ;;  %v2188_v51 = vsel %vm2161_vm1, %v12708_v26, %v9487_v55  ;;  %v2191_v55 = vsel %vm2161_vm1, %v12710_v28, %v9493_v16  ;;  %v12714_v16 = vld [vmem:[#allocation77_spill] sm:$0xff]  ;;  %4848 = vst.msk [vmem:[#allocation3 + $0xf8] sm:$0xff] %vm2808_vm6, %v12720_v30  ;;  %4850 = vst.msk [vmem:[#allocation3 + $0x108] sm:$0xff] %vm2808_vm6, %v12720_v30 }
 0x22f   : > { %v2104_v50 = vpop.permute.xlu1 %2103  ;;  %v2102_v59 = vpop.permute.xlu0 %2101  ;;  %v2222_v39 = vsel %vm2194_vm4, %v2189_v56, %v9489_v40  ;;  %v2221_v25 = vsel %vm2194_vm4, %v2188_v51, %v12709_v53  ;;  %v12712_v40 = vld [vmem:[#allocation75_spill] sm:$0xff]  ;;  %4851 = vst.msk [vmem:[#allocation3 + $0x110] sm:$0xff] %vm2808_vm6, %v12720_v30  ;;  %4853 = vst.msk [vmem:[#allocation3 + $0x120] sm:$0xff] %vm2808_vm6, %v12720_v30  ;;  %v12727_v53 = vld [vmem:[#allocation25_spill] sm:$0xff] }
 0x230   : > { %v2247_v60 = vsel %vm2227_vm3, %v2214_v3, %v2104_v50  ;;  %v2246_v62 = vsel %vm2227_vm3, %v2213_v27, %v2102_v59  ;;  %v12711_v27 = vld [vmem:[#allocation19_spill] sm:$0xff]  ;;  %v2224_v59 = vsel %vm2194_vm4, %v2191_v55, %v12712_v40  ;;  %4854 = vst.msk [vmem:[#allocation3 + $0x128] sm:$0xff] %vm2808_vm6, %v12720_v30  ;;  %4856 = vst.msk [vmem:[#allocation3 + $0x138] sm:$0xff] %vm2808_vm6, %v12720_v30 }
 0x231   : > { %7850 = vmatprep.mubr.msk.f32.mxu0 %vm2271_vm5, %v2246_v62  ;;  %v2190_v50 = vsel %vm2161_vm1, %v12711_v27, %v9495_v12  ;;  %v2193_v12 = vsel %vm2161_vm1, %v12715_v63, %v12714_v16  ;;  %4857 = vst.msk [vmem:[#allocation3 + $0x140] sm:$0xff] %vm2808_vm6, %v12720_v30  ;;  %4859 = vst.msk [vmem:[#allocation3 + $0x150] sm:$0xff] %vm2808_vm6, %v12720_v30  ;;  %v12729_v40 = vld [vmem:[#allocation27_spill] sm:$0xff]  ;;  %v12731_v63 = vld [vmem:[#allocation29_spill] sm:$0xff] }
 0x232   : > { %7851 = vmatmul.mubr.msk.f32.gmra.mrb[66].mxu0 %vm2271_vm5, %v2247_v60  ;;  %v12713_v60 = vld [vmem:[#allocation76_spill] sm:$0xff]  ;;  %4860 = vst.msk [vmem:[#allocation3 + $0x158] sm:$0xff] %vm2808_vm6, %v12720_v30  ;;  %4862 = vst.msk [vmem:[#allocation3 + $0x168] sm:$0xff] %vm2808_vm6, %v12720_v30 }
 0x233   : > { %v2108_v14 = vpop.permute.xlu1 %2107  ;;  %v2106_v52 = vpop.permute.xlu0 %2105  ;;  %v2223_v62 = vsel %vm2194_vm4, %v2190_v50, %v12713_v60  ;;  %4863 = vst.msk [vmem:[#allocation3 + $0x170] sm:$0xff] %vm2808_vm6, %v12720_v30  ;;  %4865 = vst.msk [vmem:[#allocation3 + $0x180] sm:$0xff] %vm2808_vm6, %v12720_v30  ;;  %v12730_v60 = vld [vmem:[#allocation26_spill] sm:$0xff] }
 0x234   : > { %v2249_v10 = vsel %vm2227_vm3, %v2216_v19, %v2108_v14  ;;  %v2248_v6 = vsel %vm2227_vm3, %v2215_v37, %v2106_v52  ;;  %v2192_v19 = vsel %vm2161_vm1, %v12717_v2, %v12716_v0  ;;  %v2226_v37 = vsel %vm2194_vm4, %v2193_v12, %v12718_v13  ;;  %v12719_v14 = vld [vmem:[#allocation80_spill] sm:$0xff]  ;;  %4866 = vst.msk [vmem:[#allocation3 + $0x188] sm:$0xff] %vm2808_vm6, %v12720_v30 }
 0x235   : > { %7853 = vmatprep.mubr.msk.f32.mxu0 %vm2271_vm5, %v2248_v6  ;;  %v2225_v52 = vsel %vm2194_vm4, %v2192_v19, %v12719_v14  ;;  %4868 = vst.msk [vmem:[#allocation3 + $0x198] sm:$0xff] %vm2808_vm6, %v12720_v30  ;;  %4869 = vst.msk [vmem:[#allocation3 + $0x1a0] sm:$0xff] %vm2808_vm6, %v12720_v30  ;;  %v12732_v0 = vld [vmem:[#allocation28_spill] sm:$0xff] }
 0x236   : > { %7854 = vmatmul.mubr.msk.f32.gmra.mrb[68].mxu0 %vm2271_vm5, %v2249_v10  ;;  %4822 = vst.msk [vmem:[#allocation3 + $0x28] sm:$0x3] %vm4818_vm11, %v12720_v30  ;;  %4819 = vst.msk [vmem:[#allocation3 + $0x10] sm:$0x3] %vm4818_vm11, %v12720_v30 }
 0x237   : > { %v2112_v34 = vpop.permute.xlu1 %2111  ;;  %v2110_v41 = vpop.permute.xlu0 %2109  ;;  %4825 = vst.msk [vmem:[#allocation3 + $0x40] sm:$0x3] %vm4818_vm11, %v12720_v30  ;;  %4828 = vst.msk [vmem:[#allocation3 + $0x58] sm:$0x3] %vm4818_vm11, %v12720_v30 }
 0x238   : > { %v2251_v24 = vsel %vm2227_vm3, %v2218_v11, %v2112_v34  ;;  %v2250_v32 = vsel %vm2227_vm3, %v2217_v8, %v2110_v41  ;;  %v12722_v34 = vld [vmem:[#allocation10_spill] sm:$0xff]  ;;  %4831 = vst.msk [vmem:[#allocation3 + $0x70] sm:$0x3] %vm4818_vm11, %v12720_v30  ;;  %4834 = vst.msk [vmem:[#allocation3 + $0x88] sm:$0x3] %vm4818_vm11, %v12720_v30 }
 0x239   : > { %7856 = vmatprep.mubr.msk.f32.mxu0 %vm2271_vm5, %v2250_v32  ;;  %4837 = vst.msk [vmem:[#allocation3 + $0xa0] sm:$0x3] %vm4818_vm11, %v12720_v30  ;;  %4840 = vst.msk [vmem:[#allocation3 + $0xb8] sm:$0x3] %vm4818_vm11, %v12720_v30 }
 0x23a   : > { %7857 = vmatmul.mubr.msk.f32.gmra.mrb[70].mxu0 %vm2271_vm5, %v2251_v24  ;;  %4843 = vst.msk [vmem:[#allocation3 + $0xd0] sm:$0x3] %vm4818_vm11, %v12720_v30  ;;  %4846 = vst.msk [vmem:[#allocation3 + $0xe8] sm:$0x3] %vm4818_vm11, %v12720_v30 }
 0x23b   : > { %v2116_v23 = vpop.permute.xlu1 %2115  ;;  %v2114_v49 = vpop.permute.xlu0 %2113  ;;  %4849 = vst.msk [vmem:[#allocation3 + $0x100] sm:$0x3] %vm4818_vm11, %v12720_v30  ;;  %4852 = vst.msk [vmem:[#allocation3 + $0x118] sm:$0x3] %vm4818_vm11, %v12720_v30 }
 0x23c   : > { %v2253_v29 = vsel %vm2227_vm3, %v2220_v58, %v2116_v23  ;;  %v2252_v47 = vsel %vm2227_vm3, %v2219_v22, %v2114_v49  ;;  %v12725_v23 = vld [vmem:[#allocation23_spill] sm:$0xff]  ;;  %4855 = vst.msk [vmem:[#allocation3 + $0x130] sm:$0x3] %vm4818_vm11, %v12720_v30  ;;  %4858 = vst.msk [vmem:[#allocation3 + $0x148] sm:$0x3] %vm4818_vm11, %v12720_v30 }
 0x23d   : > { %7859 = vmatprep.mubr.msk.f32.mxu0 %vm2271_vm5, %v2252_v47  ;;  %v12726_v47 = vld [vmem:[#allocation22_spill] sm:$0xff]  ;;  %4861 = vst.msk [vmem:[#allocation3 + $0x160] sm:$0x3] %vm4818_vm11, %v12720_v30  ;;  %4864 = vst.msk [vmem:[#allocation3 + $0x178] sm:$0x3] %vm4818_vm11, %v12720_v30 }
 0x23e   : > { %7860 = vmatmul.mubr.msk.f32.gmra.mrb[72].mxu0 %vm2271_vm5, %v2253_v29  ;;  %4867 = vst.msk [vmem:[#allocation3 + $0x190] sm:$0x3] %vm4818_vm11, %v12720_v30  ;;  %4870 = vst.msk [vmem:[#allocation3 + $0x1a8] sm:$0x3] %vm4818_vm11, %v12720_v30 }
 0x23f   : > { %v2120_v61 = vpop.permute.xlu1 %2119  ;;  %v2118_v43 = vpop.permute.xlu0 %2117 }
 0x240   : > { %v2255_v46 = vsel %vm2227_vm3, %v2222_v39, %v2120_v61  ;;  %v2254_v3 = vsel %vm2227_vm3, %v2221_v25, %v2118_v43  ;;  %v12728_v43 = vld [vmem:[#allocation24_spill] sm:$0xff] }
 0x241   : > { %7862 = vmatprep.mubr.msk.f32.mxu0 %vm2271_vm5, %v2254_v3 }
 0x242   : > { %7863 = vmatmul.mubr.msk.f32.gmra.mrb[74].mxu0 %vm2271_vm5, %v2255_v46 }
 0x243   : > { %v2124_v33 = vpop.permute.xlu1 %2123  ;;  %v2122_v21 = vpop.permute.xlu0 %2121 }
 0x244   : > { %v2257_v31 = vsel %vm2227_vm3, %v2224_v59, %v2124_v33  ;;  %v2256_v17 = vsel %vm2227_vm3, %v2223_v62, %v2122_v21 }
 0x245   : > { %7865 = vmatprep.mubr.msk.f32.mxu0 %vm2271_vm5, %v2256_v17 }
 0x246   : > { %7866 = vmatmul.mubr.msk.f32.gmra.mrb[76].mxu0 %vm2271_vm5, %v2257_v31 }
 0x247   : > { %v2128_v10 = vpop.permute.xlu1 %2127  ;;  %v2126_v6 = vpop.permute.xlu0 %2125 }
 0x248   : > { %v2259_v9 = vsel %vm2227_vm3, %v2226_v37, %v2128_v10  ;;  %v2258_v38 = vsel %vm2227_vm3, %v2225_v52, %v2126_v6  ;;  %v12733_v52 = vld [vmem:[#allocation31_spill] sm:$0xff] }
 0x249   : > { %7868 = vmatprep.mubr.msk.f32.mxu0 %vm2271_vm5, %v2258_v38 }
 0x24a   : > { %7869 = vmatmul.mubr.msk.f32.gmra.mrb[78].mxu0 %vm2271_vm5, %v2259_v9  ;;  %v12734_v9 = vld [vmem:[#allocation30_spill] sm:$0xff] }
 0x2e1   : > { %v7825_v42 = vpop.f32.mrb[48].mxu0 }
 0x2e2   : > { %v2440_v54 = vadd.f32 %v7825_v42, %v9808_v45  ;;  %v2434_v4 = vpop.f32.mrb[49].mxu0 }
 0x2e3   : > { %v2435_v11 = vadd.f32 %v9808_v45, %v2434_v4 }
 0x2e4   : > { %v2810_v8 = vsel %vm2808_vm6, %v2440_v54, %v12721_v15  ;;  %v4446_v15 = vld [vmem:[%s12585_s5] sm:$0xff] }
 0x2e5   : > { %2843 = vst.msk [vmem:[#allocation2 + $0x21] sm:$0xff] %vm2161_vm1, %v2810_v8  ;;  %v2809_v41 = vsel %vm2808_vm6, %v2435_v11, %v12722_v34  ;;  %v7828_v24 = vpop.f32.mrb[50].mxu0  ;;  %v4447_v8 = vld [vmem:[%s12585_s5 + $0x8] sm:$0xff] }
 0x2e6   : > { %2842 = vst.msk [vmem:[#allocation2 + $0x19] sm:$0xff] %vm2161_vm1, %v2809_v41  ;;  %v2450_v32 = vadd.f32 %v7828_v24, %v9808_v45  ;;  %v2444_v36 = vpop.f32.mrb[51].mxu0  ;;  %v12735_v34 = vld [vmem:[#allocation33_spill] sm:$0xff] }
 0x2e7   : > { %v2445_v18 = vadd.f32 %v9808_v45, %v2444_v36  ;;  %v12736_v36 = vld [vmem:[#allocation32_spill] sm:$0xff] }
 0x2e8   : > { %v2812_v5 = vsel %vm2808_vm6, %v2450_v32, %v12723_v20  ;;  %v8067_v32 = vpack.c.bf16 %v4447_v8, %v4446_v15  ;;  %v12746_v15 = vld [vmem:[#allocation43_spill] sm:$0xff] }
 0x2e9   : > { %2845 = vst.msk [vmem:[#allocation2 + $0x39] sm:$0xff] %vm2161_vm1, %v2812_v5  ;;  %v2811_v1 = vsel %vm2808_vm6, %v2445_v18, %v12724_v48  ;;  %v7831_v44 = vpop.f32.mrb[52].mxu0 }
 0x2ea   : > { %2844 = vst.msk [vmem:[#allocation2 + $0x31] sm:$0xff] %vm2161_vm1, %v2811_v1  ;;  %v2460_v58 = vadd.f32 %v7831_v44, %v9808_v45  ;;  %v2454_v57 = vpop.f32.mrb[53].mxu0  ;;  %8068 = vmatprep.subr.bf16.mxu1 %v8067_v32 }
 0x2eb   : > { %v2455_v22 = vadd.f32 %v9808_v45, %v2454_v57  ;;  %8070 = vmatpush3.bf16.msra.mxu1 %v8067_v32  ;;  %v4449_v57 = vld [vmem:[%s12585_s5 + $0x18] sm:$0xff] }
 0x2ec   : > { %v2814_v49 = vsel %vm2808_vm6, %v2460_v58, %v12725_v23  ;;  %v2909_v29 = vld [vmem:[#allocation2 + $0x21] sm:$0xff]  ;;  %v4448_v58 = vld [vmem:[%s12585_s5 + $0x10] sm:$0xff] }
 0x2ed   : > { %2847 = vst.msk [vmem:[#allocation2 + $0x51] sm:$0xff] %vm2161_vm1, %v2814_v49  ;;  %v2813_v35 = vsel %vm2808_vm6, %v2455_v22, %v12726_v47  ;;  %3201 = vrot.lane.b32.xlu1 %v2909_v29, %s8132_s29  ;;  %v7834_v7 = vpop.f32.mrb[54].mxu0  ;;  %v2908_v56 = vld [vmem:[#allocation2 + $0x19] sm:$0xff]  ;;  %v2941_v61 = vld [vmem:[#allocation2 + $0x22] sm:$0xff]  ;;  %v12738_v47 = vld [vmem:[#allocation34_spill] sm:$0xff] }
 0x2ee   : > { %2846 = vst.msk [vmem:[#allocation2 + $0x49] sm:$0xff] %vm2161_vm1, %v2813_v35  ;;  %v2470_v26 = vadd.f32 %v7834_v7, %v9808_v45  ;;  %3199 = vrot.lane.b32.xlu0 %v2908_v56, %s8132_s29  ;;  %v2464_v51 = vpop.f32.mrb[55].mxu0  ;;  %v2940_v28 = vld [vmem:[#allocation2 + $0x1a] sm:$0xff] }
 0x2ef   : > { %v2465_v39 = vadd.f32 %v9808_v45, %v2464_v51  ;;  %v9854_v21 = vld [vmem:[#allocation2 + $0x18] sm:$0xff]  ;;  %v9873_v6 = vld [vmem:[#allocation2 + $0x20] sm:$0xff] }
 0x2f0   : > { %v2816_v25 = vsel %vm2808_vm6, %v2470_v26, %v12727_v53  ;;  %v9892_v24 = vld [vmem:[#allocation2 + $0x39] sm:$0xff] }
 0x2f1   : > { %2849 = vst.msk [vmem:[#allocation2 + $0x69] sm:$0xff] %vm2161_vm1, %v2816_v25  ;;  %v2815_v46 = vsel %vm2808_vm6, %v2465_v39, %v12728_v43  ;;  %3329 = vrot.lane.b32.xlu1 %v2941_v61, %s8133_s15  ;;  %v7837_v3 = vpop.f32.mrb[56].mxu0  ;;  %v9899_v5 = vld [vmem:[#allocation2 + $0x31] sm:$0xff]  ;;  %v9914_v49 = vld [vmem:[#allocation2 + $0x3a] sm:$0xff]  ;;  %v4451_v25 = vld [vmem:[%s12585_s5 + $0x28] sm:$0xff] }
 0x2f2   : > { %2848 = vst.msk [vmem:[#allocation2 + $0x61] sm:$0xff] %vm2161_vm1, %v2815_v46  ;;  %v2480_v55 = vadd.f32 %v7837_v3, %v9808_v45  ;;  %3327 = vrot.lane.b32.xlu0 %v2940_v28, %s8133_s15  ;;  %v2474_v27 = vpop.f32.mrb[57].mxu0  ;;  %v12737_v22 = vld [vmem:[#allocation35_spill] sm:$0xff]  ;;  %v4450_v53 = vld [vmem:[%s12585_s5 + $0x20] sm:$0xff] }
 0x2f3   : > { %v2475_v50 = vadd.f32 %v9808_v45, %v2474_v27  ;;  %v8075_v46 = vpack.c.bf16 %v4451_v25, %v4450_v53  ;;  %v12740_v3 = vld [vmem:[#allocation36_spill] sm:$0xff]  ;;  %v9941_v27 = vld [vmem:[#allocation2 + $0x30] sm:$0xff]  ;;  %v12752_v25 = vld [vmem:[#allocation49_spill] sm:$0xff] }
 0x2f4   : > { %v2818_v59 = vsel %vm2808_vm6, %v2480_v55, %v12729_v40  ;;  %v2913_v53 = vld [vmem:[#allocation2 + $0x51] sm:$0xff] }
 0x2f5   : > { %2851 = vst.msk [vmem:[#allocation2 + $0x81] sm:$0xff] %vm2161_vm1, %v2818_v59  ;;  %v2817_v62 = vsel %vm2808_vm6, %v2475_v50, %v12730_v60  ;;  %3581 = vrot.lane.b32.xlu1 %v2909_v29, %s8136_s17  ;;  %v7840_v33 = vpop.f32.mrb[58].mxu0  ;;  %v8071_v29 = vpack.c.bf16 %v4449_v57, %v4448_v58  ;;  %v4452_v60 = vld [vmem:[%s12585_s5 + $0x30] sm:$0xff] }
 0x2f6   : > { %2850 = vst.msk [vmem:[#allocation2 + $0x79] sm:$0xff] %vm2161_vm1, %v2817_v62  ;;  %v2490_v31 = vadd.f32 %v7840_v33, %v9808_v45  ;;  %3451 = vrot.lane.b32.xlu0 %v9854_v21, %s8135_s13  ;;  %v2484_v17 = vpop.f32.mrb[59].mxu0  ;;  %v4453_v62 = vld [vmem:[%s12585_s5 + $0x38] sm:$0xff]  ;;  %v12741_v33 = vld [vmem:[#allocation38_spill] sm:$0xff] }
 0x2f7   : > { %v2485_v16 = vadd.f32 %v9808_v45, %v2484_v17  ;;  %8072 = vmatprep.subr.bf16.mxu1 %v8071_v29  ;;  %v8079_v17 = vpack.c.bf16 %v4453_v62, %v4452_v60 }
 0x2f8   : > { %v2820_v12 = vsel %vm2808_vm6, %v2490_v31, %v12731_v63  ;;  %8074 = vmatpush3.bf16.msra.mxu1 %v8071_v29  ;;  %v12750_v29 = vld [vmem:[#allocation47_spill] sm:$0xff] }
 0x2f9   : > { %2853 = vst.msk [vmem:[#allocation2 + $0x99] sm:$0xff] %vm2161_vm1, %v2820_v12  ;;  %v2819_v2 = vsel %vm2808_vm6, %v2485_v16, %v12732_v0  ;;  %3709 = vrot.lane.b32.xlu1 %v2941_v61, %s8137_s18  ;;  %v7843_v19 = vpop.f32.mrb[60].mxu0  ;;  %v12739_v61 = vld [vmem:[#allocation37_spill] sm:$0xff]  ;;  %8076 = vmatprep.subr.bf16.mxu1 %v8075_v46  ;;  %v12742_v16 = vld [vmem:[#allocation39_spill] sm:$0xff] }
 0x2fa   : > { %2852 = vst.msk [vmem:[#allocation2 + $0x91] sm:$0xff] %vm2161_vm1, %v2819_v2  ;;  %v2500_v13 = vadd.f32 %v7843_v19, %v9808_v45  ;;  %3579 = vrot.lane.b32.xlu0 %v2908_v56, %s8136_s17  ;;  %v2494_v37 = vpop.f32.mrb[61].mxu0  ;;  %v9921_v56 = vld [vmem:[#allocation2 + $0x32] sm:$0xff]  ;;  %v10065_v60 = vld [vmem:[#allocation2 + $0x68] sm:$0xff] }
 0x2fb   : > { %v2495_v14 = vadd.f32 %v9808_v45, %v2494_v37 }
 0x2fc   : > { %v2822_v10 = vsel %vm2808_vm6, %v2500_v13, %v12733_v52  ;;  %8078 = vmatpush3.bf16.msra.mxu1 %v8075_v46  ;;  %v12743_v13 = vld [vmem:[#allocation40_spill] sm:$0xff]  ;;  %v10030_v46 = vld [vmem:[#allocation2 + $0x48] sm:$0xff] }
 0x2fd   : > { %2855 = vst.msk [vmem:[#allocation2 + $0xb1] sm:$0xff] %vm2161_vm1, %v2822_v10  ;;  %v2821_v38 = vsel %vm2808_vm6, %v2495_v14, %v12734_v9  ;;  %3453 = vrot.lane.b32.xlu1 %v9873_v6, %s8135_s13  ;;  %v7846_v42 = vpop.f32.mrb[62].mxu0  ;;  %8080 = vmatprep.subr.bf16.mxu1 %v8079_v17  ;;  %v12744_v14 = vld [vmem:[#allocation41_spill] sm:$0xff]  ;;  %v4454_v9 = vld [vmem:[%s12585_s5 + $0x40] sm:$0xff] }
 0x2fe   : > { %2854 = vst.msk [vmem:[#allocation2 + $0xa9] sm:$0xff] %vm2161_vm1, %v2821_v38  ;;  %v2510_v54 = vadd.f32 %v7846_v42, %v9808_v45  ;;  %3707 = vrot.lane.b32.xlu0 %v2940_v28, %s8137_s18  ;;  %v2504_v4 = vpop.f32.mrb[63].mxu0 }
 0x2ff   : > { %v2505_v11 = vadd.f32 %v9808_v45, %v2504_v4  ;;  %v12745_v4 = vld [vmem:[#allocation42_spill] sm:$0xff] }
 0x300   : > { %v2824_v41 = vsel %vm2808_vm6, %v2510_v54, %v12735_v34  ;;  %8082 = vmatpush3.bf16.msra.mxu1 %v8079_v17  ;;  %v2916_v17 = vld [vmem:[#allocation2 + $0x79] sm:$0xff] }
 0x301   : > { %2857 = vst.msk [vmem:[#allocation2 + $0xc9] sm:$0xff] %vm2161_vm1, %v2824_v41  ;;  %v2823_v18 = vsel %vm2808_vm6, %v2505_v11, %v12736_v36  ;;  %3205 = vrot.lane.b32.xlu1 %v9892_v24, %s8132_s29  ;;  %v7849_v20 = vpop.f32.mrb[64].mxu0  ;;  %7887 = vmatprep.subr.mxu1 %v4454_v9  ;;  %v12747_v36 = vld [vmem:[#allocation44_spill] sm:$0xff] }
 0x302   : > { %2856 = vst.msk [vmem:[#allocation2 + $0xc1] sm:$0xff] %vm2161_vm1, %v2823_v18  ;;  %v2520_v48 = vadd.f32 %v7849_v20, %v9808_v45  ;;  %3203 = vrot.lane.b32.xlu0 %v9899_v5, %s8132_s29  ;;  %v2514_v1 = vpop.f32.mrb[65].mxu0  ;;  %v9995_v20 = vld [vmem:[#allocation2 + $0x38] sm:$0xff] }
 0x303   : > { %v2515_v44 = vadd.f32 %v9808_v45, %v2514_v1 }
 0x304   : > { %v2826_v23 = vsel %vm2808_vm6, %v2520_v48, %v12737_v22  ;;  %7888 = vmatpush3.msra.mxu1 %v4454_v9  ;;  %v12748_v48 = vld [vmem:[#allocation45_spill] sm:$0xff] }
 0x305   : > { %2859 = vst.msk [vmem:[#allocation2 + $0xe1] sm:$0xff] %vm2161_vm1, %v2826_v23  ;;  %v2825_v35 = vsel %vm2808_vm6, %v2515_v44, %v12738_v47  ;;  %3333 = vrot.lane.b32.xlu1 %v9914_v49, %s8133_s15  ;;  %v7852_v7 = vpop.f32.mrb[66].mxu0  ;;  %v12749_v23 = vld [vmem:[#allocation46_spill] sm:$0xff] }
 0x306   : > { %2858 = vst.msk [vmem:[#allocation2 + $0xd9] sm:$0xff] %vm2161_vm1, %v2825_v35  ;;  %v2530_v26 = vadd.f32 %v7852_v7, %v9808_v45  ;;  %3331 = vrot.lane.b32.xlu0 %v9921_v56, %s8133_s15  ;;  %v2524_v51 = vpop.f32.mrb[67].mxu0 }
 0x307   : > { %v2525_v39 = vadd.f32 %v9808_v45, %v2524_v51  ;;  %v12751_v51 = vld [vmem:[#allocation48_spill] sm:$0xff] }
 0x308   : > { %v2828_v43 = vsel %vm2808_vm6, %v2530_v26, %v12739_v61 }
 0x309   : > { %2861 = vst.msk [vmem:[#allocation2 + $0xf9] sm:$0xff] %vm2161_vm1, %v2828_v43  ;;  %v2827_v28 = vsel %vm2808_vm6, %v2525_v39, %v12740_v3  ;;  %3585 = vrot.lane.b32.xlu1 %v9892_v24, %s8136_s17  ;;  %v7855_v55 = vpop.f32.mrb[68].mxu0  ;;  %v2912_v43 = vld [vmem:[#allocation2 + $0x49] sm:$0xff] }
 0x30a   : > { %2860 = vst.msk [vmem:[#allocation2 + $0xf1] sm:$0xff] %vm2161_vm1, %v2827_v28  ;;  %v2540_v50 = vadd.f32 %v7855_v55, %v9808_v45  ;;  %3455 = vrot.lane.b32.xlu0 %v9941_v27, %s8135_s13  ;;  %v2534_v40 = vpop.f32.mrb[69].mxu0  ;;  %v10041_v3 = vld [vmem:[#allocation2 + $0x50] sm:$0xff]  ;;  %v2914_v55 = vld [vmem:[#allocation2 + $0x61] sm:$0xff] }
 0x30b   : > { %v2535_v59 = vadd.f32 %v9808_v45, %v2534_v40  ;;  %v2915_v28 = vld [vmem:[#allocation2 + $0x69] sm:$0xff] }
 0x30c   : > { %v2830_v31 = vsel %vm2808_vm6, %v2540_v50, %v12741_v33  ;;  %v2947_v50 = vld [vmem:[#allocation2 + $0x6a] sm:$0xff]  ;;  %v2946_v40 = vld [vmem:[#allocation2 + $0x62] sm:$0xff] }
 0x30d   : > { %2863 = vst.msk [vmem:[#allocation2 + $0x111] sm:$0xff] %vm2161_vm1, %v2830_v31  ;;  %v2829_v63 = vsel %vm2808_vm6, %v2535_v59, %v12742_v16  ;;  %3713 = vrot.lane.b32.xlu1 %v9914_v49, %s8137_s18  ;;  %v7858_v12 = vpop.f32.mrb[70].mxu0  ;;  %v10054_v59 = vld [vmem:[#allocation2 + $0x60] sm:$0xff] }
 0x30e   : > { %2862 = vst.msk [vmem:[#allocation2 + $0x109] sm:$0xff] %vm2161_vm1, %v2829_v63  ;;  %v2550_v0 = vadd.f32 %v7858_v12, %v9808_v45  ;;  %3583 = vrot.lane.b32.xlu0 %v9899_v5, %s8136_s17  ;;  %v2544_v2 = vpop.f32.mrb[71].mxu0  ;;  %v2917_v31 = vld [vmem:[#allocation2 + $0x81] sm:$0xff] }
 0x30f   : > { %v2545_v19 = vadd.f32 %v9808_v45, %v2544_v2  ;;  %v2949_v12 = vld [vmem:[#allocation2 + $0x82] sm:$0xff] }
 0x310   : > { %v2832_v37 = vsel %vm2808_vm6, %v2550_v0, %v12743_v13  ;;  %v2948_v0 = vld [vmem:[#allocation2 + $0x7a] sm:$0xff] }
 0x311   : > { %2865 = vst.msk [vmem:[#allocation2 + $0x129] sm:$0xff] %vm2161_vm1, %v2832_v37  ;;  %v2831_v52 = vsel %vm2808_vm6, %v2545_v19, %v12744_v14  ;;  %3965 = vrot.lane.b32.xlu1 %v9892_v24, %s8138_s25  ;;  %v7861_v10 = vpop.f32.mrb[72].mxu0  ;;  %v10086_v13 = vld [vmem:[#allocation2 + $0x78] sm:$0xff] }
 0x312   : > { %2864 = vst.msk [vmem:[#allocation2 + $0x121] sm:$0xff] %vm2161_vm1, %v2831_v52  ;;  %v2560_v38 = vadd.f32 %v7861_v10, %v9808_v45  ;;  %3711 = vrot.lane.b32.xlu0 %v9921_v56, %s8137_s18  ;;  %v2554_v42 = vpop.f32.mrb[73].mxu0 }
 0x313   : > { %v2555_v54 = vadd.f32 %v9808_v45, %v2554_v42 }
 0x314   : > { %v2834_v11 = vsel %vm2808_vm6, %v2560_v38, %v12745_v4  ;;  %v10105_v4 = vld [vmem:[#allocation2 + $0x80] sm:$0xff] }
 0x315   : > { %2867 = vst.msk [vmem:[#allocation2 + $0x141] sm:$0xff] %vm2161_vm1, %v2834_v11  ;;  %v2833_v8 = vsel %vm2808_vm6, %v2555_v54, %v12746_v15  ;;  %4093 = vrot.lane.b32.xlu1 %v9914_v49, %s8139_s12  ;;  %v7864_v34 = vpop.f32.mrb[74].mxu0 }
 0x316   : > { %2866 = vst.msk [vmem:[#allocation2 + $0x139] sm:$0xff] %vm2161_vm1, %v2833_v8  ;;  %v2570_v41 = vadd.f32 %v7864_v34, %v9808_v45  ;;  %3835 = vrot.lane.b32.xlu0 %v9941_v27, %s8134_s21  ;;  %v2564_v24 = vpop.f32.mrb[75].mxu0 }
 0x317   : > { %v2565_v32 = vadd.f32 %v9808_v45, %v2564_v24  ;;  %v2918_v24 = vld [vmem:[#allocation2 + $0x91] sm:$0xff] }
 0x318   : > { %v2836_v18 = vsel %vm2808_vm6, %v2570_v41, %v12747_v36  ;;  %v2919_v41 = vld [vmem:[#allocation2 + $0x99] sm:$0xff] }
 0x319   : > { %2869 = vst.msk [vmem:[#allocation2 + $0x159] sm:$0xff] %vm2161_vm1, %v2836_v18  ;;  %v2835_v1 = vsel %vm2808_vm6, %v2565_v32, %v12748_v48  ;;  %3457 = vrot.lane.b32.xlu1 %v9995_v20, %s8135_s13  ;;  %v7867_v44 = vpop.f32.mrb[76].mxu0  ;;  %v2875_v32 = vld [vmem:[#allocation2 + $0x8] sm:$0xff]  ;;  %v2951_v48 = vld [vmem:[#allocation2 + $0x9a] sm:$0xff] }
 0x31a   : > { %2868 = vst.msk [vmem:[#allocation2 + $0x151] sm:$0xff] %vm2161_vm1, %v2835_v1  ;;  %v2580_v58 = vadd.f32 %v7867_v44, %v9808_v45  ;;  %3963 = vrot.lane.b32.xlu0 %v9899_v5, %s8138_s25  ;;  %v2574_v57 = vpop.f32.mrb[77].mxu0  ;;  %v2874_v1 = vld [vmem:[#allocation2] sm:$0xff]  ;;  %v12753_v44 = vld [vmem:[#allocation50_spill] sm:$0xff] }
 0x31b   : > { %v2575_v22 = vadd.f32 %v9808_v45, %v2574_v57  ;;  %v2950_v57 = vld [vmem:[#allocation2 + $0x92] sm:$0xff] }
 0x31c   : > { %v2838_v49 = vsel %vm2808_vm6, %v2580_v58, %v12749_v23  ;;  %v4188_v58 = vsel %vm2161_vm1, %v2875_v32, %v12753_v44  ;;  %v12754_v23 = vld [vmem:[#allocation51_spill] sm:$0xff] }
 0x31d   : > { %2871 = vst.msk [vmem:[#allocation2 + $0x171] sm:$0xff] %vm2161_vm1, %v2838_v49  ;;  %v2837_v47 = vsel %vm2808_vm6, %v2575_v22, %v12750_v29  ;;  %3837 = vrot.lane.b32.xlu1 %v9995_v20, %s8134_s21  ;;  %v7870_v35 = vpop.f32.mrb[78].mxu0  ;;  %v4187_v49 = vsel %vm2161_vm1, %v2874_v1, %v12754_v23  ;;  %v12755_v29 = vld [vmem:[#allocation52_spill] sm:$0xff]  ;;  %v2920_v1 = vld [vmem:[#allocation2 + $0xa9] sm:$0xff] }
 0x31e   : > { %2870 = vst.msk [vmem:[#allocation2 + $0x169] sm:$0xff] %vm2161_vm1, %v2837_v47  ;;  %v2590_v7 = vadd.f32 %v7870_v35, %v9808_v45  ;;  %4091 = vrot.lane.b32.xlu0 %v9921_v56, %s8139_s12  ;;  %v2584_v5 = vpop.f32.mrb[79].mxu0  ;;  %v2945_v56 = vld [vmem:[#allocation2 + $0x52] sm:$0xff]  ;;  %v4220_v47 = vsel %vm2194_vm4, %v4188_v58, %v12755_v29 }
 0x31f   : > { %v2585_v26 = vadd.f32 %v9808_v45, %v2584_v5  ;;  %v2944_v45 = vld [vmem:[#allocation2 + $0x4a] sm:$0xff]  ;;  %v2953_v58 = vld [vmem:[#allocation2 + $0xb2] sm:$0xff] }
 0x320   : > { %v2840_v39 = vsel %vm2808_vm6, %v2590_v7, %v12751_v51  ;;  %v10135_v5 = vld [vmem:[#allocation2 + $0x90] sm:$0xff] }
 0x321   : > { %2873 = vst.msk [vmem:[#allocation2 + $0x189] sm:$0xff] %vm2161_vm1, %v2840_v39  ;;  %v2839_v61 = vsel %vm2808_vm6, %v2585_v26, %v12752_v25  ;;  %3209 = vrot.lane.b32.xlu1 %v2913_v53, %s8132_s29  ;;  %v12756_v26 = vld [vmem:[#allocation53_spill] sm:$0xff] }
 0x322   : > { %2872 = vst.msk [vmem:[#allocation2 + $0x181] sm:$0xff] %vm2161_vm1, %v2839_v61  ;;  %3207 = vrot.lane.b32.xlu0 %v2912_v43, %s8132_s29  ;;  %v4219_v51 = vsel %vm2194_vm4, %v4187_v49, %v12756_v26 }
 0x325   : > { %3337 = vrot.lane.b32.xlu1 %v2945_v56, %s8133_s15 }
 0x326   : > { %3335 = vrot.lane.b32.xlu0 %v2944_v45, %s8133_s15 }
 0x329   : > { %3589 = vrot.lane.b32.xlu1 %v2913_v53, %s8136_s17 }
 0x32a   : > { %3459 = vrot.lane.b32.xlu0 %v10030_v46, %s8135_s13 }
 0x32d   : > { %3717 = vrot.lane.b32.xlu1 %v2945_v56, %s8137_s18 }
 0x32e   : > { %3587 = vrot.lane.b32.xlu0 %v2912_v43, %s8136_s17 }
 0x331   : > { %3969 = vrot.lane.b32.xlu1 %v2913_v53, %s8138_s25 }
 0x332   : > { %3715 = vrot.lane.b32.xlu0 %v2944_v45, %s8137_s18 }
 0x335   : > { %4097 = vrot.lane.b32.xlu1 %v2945_v56, %s8139_s12 }
 0x336   : > { %3839 = vrot.lane.b32.xlu0 %v10030_v46, %s8134_s21 }
 0x339   : > { %3461 = vrot.lane.b32.xlu1 %v10041_v3, %s8135_s13 }
 0x33a   : > { %3967 = vrot.lane.b32.xlu0 %v2912_v43, %s8138_s25 }
 0x33d   : > { %3841 = vrot.lane.b32.xlu1 %v10041_v3, %s8134_s21 }
 0x33e   : > { %4095 = vrot.lane.b32.xlu0 %v2944_v45, %s8139_s12 }
 0x341   : > { %3213 = vrot.lane.b32.xlu1 %v2915_v28, %s8132_s29 }
 0x342   : > { %3211 = vrot.lane.b32.xlu0 %v2914_v55, %s8132_s29 }
 0x345   : > { %3341 = vrot.lane.b32.xlu1 %v2947_v50, %s8133_s15 }
 0x346   : > { %3339 = vrot.lane.b32.xlu0 %v2946_v40, %s8133_s15 }
 0x349   : > { %3593 = vrot.lane.b32.xlu1 %v2915_v28, %s8136_s17 }
 0x34a   : > { %3463 = vrot.lane.b32.xlu0 %v10054_v59, %s8135_s13 }
 0x34d   : > { %3721 = vrot.lane.b32.xlu1 %v2947_v50, %s8137_s18 }
 0x34e   : > { %3591 = vrot.lane.b32.xlu0 %v2914_v55, %s8136_s17 }
 0x351   : > { %3973 = vrot.lane.b32.xlu1 %v2915_v28, %s8138_s25 }
 0x352   : > { %3719 = vrot.lane.b32.xlu0 %v2946_v40, %s8137_s18 }
 0x355   : > { %4101 = vrot.lane.b32.xlu1 %v2947_v50, %s8139_s12 }
 0x356   : > { %3843 = vrot.lane.b32.xlu0 %v10054_v59, %s8134_s21 }
 0x359   : > { %3465 = vrot.lane.b32.xlu1 %v10065_v60, %s8135_s13 }
 0x35a   : > { %3971 = vrot.lane.b32.xlu0 %v2914_v55, %s8138_s25 }
 0x35d   : > { %3845 = vrot.lane.b32.xlu1 %v10065_v60, %s8134_s21 }
 0x35e   : > { %4099 = vrot.lane.b32.xlu0 %v2946_v40, %s8139_s12 }
 0x35f   : > { %v10073_v62 = vpop.permute.xlu1 %3201 }
 0x360   : > { %v10075_v33 = vpop.permute.xlu0 %3199 }
 0x361   : > { %3217 = vrot.lane.b32.xlu1 %v2917_v31, %s8132_s29 }
 0x362   : > { %3215 = vrot.lane.b32.xlu0 %v2916_v17, %s8132_s29 }
 0x363   : > { %v10079_v16 = vpop.permute.xlu1 %3329 }
 0x364   : > { %v10081_v63 = vpop.permute.xlu0 %3327 }
 0x365   : > { %3345 = vrot.lane.b32.xlu1 %v2949_v12, %s8133_s15 }
 0x366   : > { %3343 = vrot.lane.b32.xlu0 %v2948_v0, %s8133_s15 }
 0x367   : > { %v3582_v2 = vpop.permute.xlu1 %3581 }
 0x368   : > { %v3452_v19 = vpop.permute.xlu0 %3451 }
 0x369   : > { %3597 = vrot.lane.b32.xlu1 %v2917_v31, %s8136_s17  ;;  %v4251_v53 = vsel %vm2227_vm3, %v4219_v51, %v3452_v19 }
 0x36a   : > { %3467 = vrot.lane.b32.xlu0 %v10086_v13, %s8135_s13 }
 0x36b   : > { %v3710_v37 = vpop.permute.xlu1 %3709 }
 0x36c   : > { %v3580_v14 = vpop.permute.xlu0 %3579 }
 0x36d   : > { %3725 = vrot.lane.b32.xlu1 %v2949_v12, %s8137_s18  ;;  %v4283_v43 = vsel %vm2271_vm5, %v4251_v53, %v3580_v14 }
 0x36e   : > { %3595 = vrot.lane.b32.xlu0 %v2916_v17, %s8136_s17 }
 0x36f   : > { %v3454_v52 = vpop.permute.xlu1 %3453 }
 0x370   : > { %v3708_v10 = vpop.permute.xlu0 %3707  ;;  %v4252_v7 = vsel %vm2227_vm3, %v4220_v47, %v3454_v52  ;;  %v10169_v52 = vld [vmem:[#allocation2 + $0x98] sm:$0xff] }
 0x371   : > { %3977 = vrot.lane.b32.xlu1 %v2917_v31, %s8138_s25  ;;  %v4284_v25 = vsel %vm2271_vm5, %v4252_v7, %v3582_v2  ;;  %v4316_v56 = vsel %vm4315_vm7, %v4283_v43, %v3708_v10  ;;  %v4189_v7 = vsel %vm2161_vm1, %v9854_v21, %v10075_v33 }
 0x372   : > { %3723 = vrot.lane.b32.xlu0 %v2948_v0, %s8137_s18  ;;  %v4317_v28 = vsel %vm4315_vm7, %v4284_v25, %v3710_v37 }
 0x373   : > { %v10094_v9 = vpop.permute.xlu1 %3205 }
 0x374   : > { %v10096_v38 = vpop.permute.xlu0 %3203 }
 0x375   : > { %4105 = vrot.lane.b32.xlu1 %v2949_v12, %s8139_s12 }
 0x376   : > { %3847 = vrot.lane.b32.xlu0 %v10086_v13, %s8134_s21 }
 0x377   : > { %v10101_v42 = vpop.permute.xlu1 %3333 }
 0x378   : > { %v10103_v54 = vpop.permute.xlu0 %3331 }
 0x379   : > { %3469 = vrot.lane.b32.xlu1 %v10105_v4, %s8135_s13 }
 0x37a   : > { %3975 = vrot.lane.b32.xlu0 %v2916_v17, %s8138_s25 }
 0x37b   : > { %v10110_v11 = vpop.permute.xlu1 %3585 }
 0x37c   : > { %v10112_v15 = vpop.permute.xlu0 %3455 }
 0x37d   : > { %3849 = vrot.lane.b32.xlu1 %v10105_v4, %s8134_s21 }
 0x37e   : > { %4103 = vrot.lane.b32.xlu0 %v2948_v0, %s8139_s12 }
 0x37f   : > { %v10117_v8 = vpop.permute.xlu1 %3713 }
 0x380   : > { %v10119_v34 = vpop.permute.xlu0 %3583 }
 0x381   : > { %3221 = vrot.lane.b32.xlu1 %v2919_v41, %s8132_s29 }
 0x382   : > { %3219 = vrot.lane.b32.xlu0 %v2918_v24, %s8132_s29 }
 0x383   : > { %v3966_v36 = vpop.permute.xlu1 %3965 }
 0x384   : > { %v10123_v18 = vpop.permute.xlu0 %3711 }
 0x385   : > { %3349 = vrot.lane.b32.xlu1 %v2951_v48, %s8133_s15 }
 0x386   : > { %3347 = vrot.lane.b32.xlu0 %v2950_v57, %s8133_s15 }
 0x387   : > { %v4094_v22 = vpop.permute.xlu1 %4093 }
 0x388   : > { %v3836_v35 = vpop.permute.xlu0 %3835 }
 0x389   : > { %3601 = vrot.lane.b32.xlu1 %v2919_v41, %s8136_s17  ;;  %v4349_v45 = vsel %vm4348_vm8, %v4316_v56, %v3836_v35  ;;  %v10198_v35 = vld [vmem:[#allocation2 + $0xa8] sm:$0xff] }
 0x38a   : > { %3471 = vrot.lane.b32.xlu0 %v10135_v5, %s8135_s13 }
 0x38b   : > { %v3458_v39 = vpop.permute.xlu1 %3457 }
 0x38c   : > { %v3964_v61 = vpop.permute.xlu0 %3963 }
 0x38d   : > { %3729 = vrot.lane.b32.xlu1 %v2951_v48, %s8137_s18  ;;  %v4382_v50 = vsel %vm4381_vm9, %v4349_v45, %v3964_v61 }
 0x38e   : > { %3599 = vrot.lane.b32.xlu0 %v2918_v24, %s8136_s17 }
 0x38f   : > { %v3838_v55 = vpop.permute.xlu1 %3837 }
 0x390   : > { %v4350_v40 = vsel %vm4348_vm8, %v4317_v28, %v3838_v55  ;;  %v4092_v31 = vpop.permute.xlu0 %4091  ;;  %v10240_v28 = vld [vmem:[#allocation2 + $0xb0] sm:$0xff] }
 0x391   : > { %v4383_v17 = vsel %vm4381_vm9, %v4350_v40, %v3966_v36  ;;  %v4414_v12 = vsel %vm393_vm0, %v4382_v50, %v4092_v31  ;;  %3981 = vrot.lane.b32.xlu1 %v2919_v41, %s8138_s25 }
 0x392   : > { %v4415_v0 = vsel %vm393_vm0, %v4383_v17, %v4094_v22  ;;  %3727 = vrot.lane.b32.xlu0 %v2950_v57, %s8137_s18  ;;  %7889 = vmatprep.mubr.msk.f32.mxu1 %vm4462_vm10, %v4414_v12  ;;  %v2952_v22 = vld [vmem:[#allocation2 + $0xaa] sm:$0xff]  ;;  %v2922_v12 = vld [vmem:[#allocation2 + $0xc1] sm:$0xff] }
 0x393   : > { %v10157_v2 = vpop.permute.xlu1 %3209  ;;  %7890 = vmatmul.mubr.msk.f32.vlgmr.msra.gmra.mrb[80].mxu1 %vm4462_vm10, %v4415_v0  ;;  %v2923_v17 = vld [vmem:[#allocation2 + $0xc9] sm:$0xff] }
 0x394   : > { %v10160_v19 = vpop.permute.xlu0 %3207 }
 0x395   : > { %4109 = vrot.lane.b32.xlu1 %v2951_v48, %s8139_s12  ;;  %v2921_v48 = vld [vmem:[#allocation2 + $0xb1] sm:$0xff] }
 0x396   : > { %3851 = vrot.lane.b32.xlu0 %v10135_v5, %s8134_s21 }
 0x397   : > { %v10165_v37 = vpop.permute.xlu1 %3337 }
 0x398   : > { %v10167_v14 = vpop.permute.xlu0 %3335 }
 0x399   : > { %3473 = vrot.lane.b32.xlu1 %v10169_v52, %s8135_s13 }
 0x39a   : > { %3979 = vrot.lane.b32.xlu0 %v2918_v24, %s8138_s25 }
 0x39b   : > { %v10174_v10 = vpop.permute.xlu1 %3589 }
 0x39c   : > { %v10176_v41 = vpop.permute.xlu0 %3459 }
 0x39d   : > { %3853 = vrot.lane.b32.xlu1 %v10169_v52, %s8134_s21 }
 0x39e   : > { %4107 = vrot.lane.b32.xlu0 %v2950_v57, %s8139_s12  ;;  %v4190_v57 = vsel %vm2161_vm1, %v9873_v6, %v10073_v62  ;;  %v4221_v6 = vsel %vm2194_vm4, %v4189_v7, %v10081_v63 }
 0x39f   : > { %v10181_v32 = vpop.permute.xlu1 %3717  ;;  %v4222_v49 = vsel %vm2194_vm4, %v4190_v57, %v10079_v16  ;;  %v4253_v16 = vsel %vm2227_vm3, %v4221_v6, %v10112_v15 }
 0x3a0   : > { %v10183_v36 = vpop.permute.xlu0 %3587  ;;  %v4254_v47 = vsel %vm2227_vm3, %v4222_v49, %v3458_v39  ;;  %v4285_v39 = vsel %vm2271_vm5, %v4253_v16, %v10119_v34 }
 0x3a1   : > { %3225 = vrot.lane.b32.xlu1 %v2921_v48, %s8132_s29  ;;  %v4286_v26 = vsel %vm2271_vm5, %v4254_v47, %v10110_v11  ;;  %v4318_v21 = vsel %vm4315_vm7, %v4285_v39, %v10123_v18  ;;  %v4191_v47 = vsel %vm2161_vm1, %v9941_v27, %v10096_v38 }
 0x3a2   : > { %3223 = vrot.lane.b32.xlu0 %v2920_v1, %s8132_s29  ;;  %v4319_v63 = vsel %vm4315_vm7, %v4286_v26, %v10117_v8 }
 0x3a3   : > { %v3970_v24 = vpop.permute.xlu1 %3969 }
 0x3a4   : > { %v10187_v44 = vpop.permute.xlu0 %3715 }
 0x3a5   : > { %3353 = vrot.lane.b32.xlu1 %v2953_v58, %s8133_s15 }
 0x3a6   : > { %3351 = vrot.lane.b32.xlu0 %v2952_v22, %s8133_s15 }
 0x3a7   : > { %v4098_v23 = vpop.permute.xlu1 %4097 }
 0x3a8   : > { %v3840_v29 = vpop.permute.xlu0 %3839 }
 0x3a9   : > { %3605 = vrot.lane.b32.xlu1 %v2921_v48, %s8136_s17  ;;  %v4351_v33 = vsel %vm4348_vm8, %v4318_v21, %v3840_v29  ;;  %v10269_v29 = vld [vmem:[#allocation2 + $0xc0] sm:$0xff] }
 0x3aa   : > { %3475 = vrot.lane.b32.xlu0 %v10198_v35, %s8135_s13 }
 0x3ab   : > { %v3462_v62 = vpop.permute.xlu1 %3461 }
 0x3ac   : > { %v3968_v51 = vpop.permute.xlu0 %3967 }
 0x3ad   : > { %3733 = vrot.lane.b32.xlu1 %v2953_v58, %s8137_s18  ;;  %v4384_v53 = vsel %vm4381_vm9, %v4351_v33, %v3968_v51 }
 0x3ae   : > { %3603 = vrot.lane.b32.xlu0 %v2920_v1, %s8136_s17 }
 0x3af   : > { %v3842_v15 = vpop.permute.xlu1 %3841 }
 0x3b0   : > { %v4352_v11 = vsel %vm4348_vm8, %v4319_v63, %v3842_v15  ;;  %v4096_v25 = vpop.permute.xlu0 %4095  ;;  %v10311_v63 = vld [vmem:[#allocation2 + $0xc8] sm:$0xff] }
 0x3b1   : > { %v4385_v34 = vsel %vm4381_vm9, %v4352_v11, %v3970_v24  ;;  %v4416_v61 = vsel %vm393_vm0, %v4384_v53, %v4096_v25  ;;  %3985 = vrot.lane.b32.xlu1 %v2921_v48, %s8138_s25  ;;  %v2954_v24 = vld [vmem:[#allocation2 + $0xc2] sm:$0xff] }
 0x3b2   : > { %3731 = vrot.lane.b32.xlu0 %v2952_v22, %s8137_s18  ;;  %7892 = vmatprep.mubr.msk.f32.mxu1 %vm4462_vm10, %v4416_v61  ;;  %v4417_v18 = vsel %vm393_vm0, %v4385_v34, %v4098_v23  ;;  %v2925_v34 = vld [vmem:[#allocation2 + $0xe1] sm:$0xff]  ;;  %v10328_v61 = vld [vmem:[#allocation2 + $0xd9] sm:$0xff] }
 0x3b3   : > { %v10228_v43 = vpop.permute.xlu1 %3213  ;;  %7893 = vmatmul.mubr.msk.f32.gmra.mrb[82].mxu1 %vm4462_vm10, %v4417_v18 }
 0x3b4   : > { %v10231_v8 = vpop.permute.xlu0 %3211 }
 0x3b5   : > { %4113 = vrot.lane.b32.xlu1 %v2953_v58, %s8139_s12  ;;  %v4192_v58 = vsel %vm2161_vm1, %v9995_v20, %v10094_v9  ;;  %v4223_v20 = vsel %vm2194_vm4, %v4191_v47, %v10103_v54 }
 0x3b6   : > { %3855 = vrot.lane.b32.xlu0 %v10198_v35, %s8134_s21  ;;  %v4224_v57 = vsel %vm2194_vm4, %v4192_v58, %v10101_v42  ;;  %v4255_v42 = vsel %vm2227_vm3, %v4223_v20, %v10176_v41 }
 0x3b7   : > { %v10236_v56 = vpop.permute.xlu1 %3341  ;;  %v4256_v49 = vsel %vm2227_vm3, %v4224_v57, %v3462_v62  ;;  %v4287_v62 = vsel %vm2271_vm5, %v4255_v42, %v10183_v36 }
 0x3b8   : > { %v10238_v45 = vpop.permute.xlu0 %3339  ;;  %v4288_v7 = vsel %vm2271_vm5, %v4256_v49, %v10174_v10  ;;  %v4320_v27 = vsel %vm4315_vm7, %v4287_v62, %v10187_v44  ;;  %v4193_v49 = vsel %vm2161_vm1, %v10030_v46, %v10160_v19 }
 0x3b9   : > { %3477 = vrot.lane.b32.xlu1 %v10240_v28, %s8135_s13  ;;  %v4321_v54 = vsel %vm4315_vm7, %v4288_v7, %v10181_v32  ;;  %v4225_v46 = vsel %vm2194_vm4, %v4193_v49, %v10167_v14 }
 0x3ba   : > { %3983 = vrot.lane.b32.xlu0 %v2920_v1, %s8138_s25  ;;  %v2955_v1 = vld [vmem:[#allocation2 + $0xca] sm:$0xff] }
 0x3bb   : > { %v10245_v55 = vpop.permute.xlu1 %3593 }
 0x3bc   : > { %v10247_v50 = vpop.permute.xlu0 %3463 }
 0x3bd   : > { %3857 = vrot.lane.b32.xlu1 %v10240_v28, %s8134_s21 }
 0x3be   : > { %4111 = vrot.lane.b32.xlu0 %v2952_v22, %s8139_s12 }
 0x3bf   : > { %v10252_v40 = vpop.permute.xlu1 %3721 }
 0x3c0   : > { %v10254_v31 = vpop.permute.xlu0 %3591 }
 0x3c1   : > { %3229 = vrot.lane.b32.xlu1 %v2923_v17, %s8132_s29 }
 0x3c2   : > { %3227 = vrot.lane.b32.xlu0 %v2922_v12, %s8132_s29 }
 0x3c3   : > { %v3974_v0 = vpop.permute.xlu1 %3973 }
 0x3c4   : > { %v10258_v48 = vpop.permute.xlu0 %3719 }
 0x3c5   : > { %3357 = vrot.lane.b32.xlu1 %v2955_v1, %s8133_s15 }
 0x3c6   : > { %3355 = vrot.lane.b32.xlu0 %v2954_v24, %s8133_s15 }
 0x3c7   : > { %v4102_v22 = vpop.permute.xlu1 %4101 }
 0x3c8   : > { %v3844_v23 = vpop.permute.xlu0 %3843 }
 0x3c9   : > { %3609 = vrot.lane.b32.xlu1 %v2923_v17, %s8136_s17  ;;  %v4353_v38 = vsel %vm4348_vm8, %v4320_v27, %v3844_v23  ;;  %v10346_v23 = vld [vmem:[#allocation2 + $0xd8] sm:$0xff] }
 0x3ca   : > { %3479 = vrot.lane.b32.xlu0 %v10269_v29, %s8135_s13 }
 0x3cb   : > { %v3466_v9 = vpop.permute.xlu1 %3465 }
 0x3cc   : > { %v3972_v6 = vpop.permute.xlu0 %3971 }
 0x3cd   : > { %3737 = vrot.lane.b32.xlu1 %v2955_v1, %s8137_s18  ;;  %v4386_v16 = vsel %vm4381_vm9, %v4353_v38, %v3972_v6  ;;  %v10426_v38 = vld [vmem:[#allocation2 + $0xe0] sm:$0xff] }
 0x3ce   : > { %3607 = vrot.lane.b32.xlu0 %v2922_v12, %s8136_s17 }
 0x3cf   : > { %v3846_v41 = vpop.permute.xlu1 %3845 }
 0x3d0   : > { %v4354_v10 = vsel %vm4348_vm8, %v4321_v54, %v3846_v41  ;;  %v4100_v26 = vpop.permute.xlu0 %4099 }
 0x3d1   : > { %v4387_v36 = vsel %vm4381_vm9, %v4354_v10, %v3974_v0  ;;  %v4418_v51 = vsel %vm393_vm0, %v4386_v16, %v4100_v26  ;;  %3989 = vrot.lane.b32.xlu1 %v2923_v17, %s8138_s25  ;;  %v10335_v0 = vld [vmem:[#allocation2 + $0xda] sm:$0xff] }
 0x3d2   : > { %3735 = vrot.lane.b32.xlu0 %v2954_v24, %s8137_s18  ;;  %7895 = vmatprep.mubr.msk.f32.mxu1 %vm4462_vm10, %v4418_v51  ;;  %v4419_v44 = vsel %vm393_vm0, %v4387_v36, %v4102_v22  ;;  %v2927_v26 = vld [vmem:[#allocation2 + $0xf9] sm:$0xff]  ;;  %v2926_v36 = vld [vmem:[#allocation2 + $0xf1] sm:$0xff] }
 0x3d3   : > { %v10299_v39 = vpop.permute.xlu1 %3217  ;;  %7896 = vmatmul.mubr.msk.f32.gmra.mrb[84].mxu1 %vm4462_vm10, %v4419_v44 }
 0x3d4   : > { %v10302_v32 = vpop.permute.xlu0 %3215 }
 0x3d5   : > { %4117 = vrot.lane.b32.xlu1 %v2955_v1, %s8139_s12  ;;  %v4194_v1 = vsel %vm2161_vm1, %v10041_v3, %v10157_v2  ;;  %v4257_v2 = vsel %vm2227_vm3, %v4225_v46, %v10247_v50 }
 0x3d6   : > { %3859 = vrot.lane.b32.xlu0 %v10269_v29, %s8134_s21  ;;  %v4226_v58 = vsel %vm2194_vm4, %v4194_v1, %v10165_v37  ;;  %v4289_v47 = vsel %vm2271_vm5, %v4257_v2, %v10254_v31 }
 0x3d7   : > { %v10307_v21 = vpop.permute.xlu1 %3345  ;;  %v4258_v57 = vsel %vm2227_vm3, %v4226_v58, %v3466_v9  ;;  %v4322_v20 = vsel %vm4315_vm7, %v4289_v47, %v10258_v48  ;;  %v10457_v58 = vld [vmem:[#allocation2 + $0xf0] sm:$0xff] }
 0x3d8   : > { %v10309_v33 = vpop.permute.xlu0 %3343  ;;  %v4290_v19 = vsel %vm2271_vm5, %v4258_v57, %v10245_v55 }
 0x3d9   : > { %3481 = vrot.lane.b32.xlu1 %v10311_v63, %s8135_s13  ;;  %v4323_v14 = vsel %vm4315_vm7, %v4290_v19, %v10252_v40 }
 0x3da   : > { %3987 = vrot.lane.b32.xlu0 %v2922_v12, %s8138_s25  ;;  %v2957_v12 = vld [vmem:[#allocation2 + $0xe2] sm:$0xff] }
 0x3db   : > { %v10316_v15 = vpop.permute.xlu1 %3597 }
 0x3dc   : > { %v10318_v53 = vpop.permute.xlu0 %3467 }
 0x3dd   : > { %3861 = vrot.lane.b32.xlu1 %v10311_v63, %s8134_s21 }
 0x3de   : > { %4115 = vrot.lane.b32.xlu0 %v2954_v24, %s8139_s12 }
 0x3df   : > { %v10323_v11 = vpop.permute.xlu1 %3725 }
 0x3e0   : > { %v10325_v25 = vpop.permute.xlu0 %3595 }
 0x3e1   : > { %3233 = vrot.lane.b32.xlu1 %v2925_v34, %s8132_s29 }
 0x3e2   : > { %3231 = vrot.lane.b32.xlu0 %v10328_v61, %s8132_s29 }
 0x3e3   : > { %v3978_v18 = vpop.permute.xlu1 %3977 }
 0x3e4   : > { %v10332_v17 = vpop.permute.xlu0 %3723 }
 0x3e5   : > { %3361 = vrot.lane.b32.xlu1 %v2957_v12, %s8133_s15 }
 0x3e6   : > { %3359 = vrot.lane.b32.xlu0 %v10335_v0, %s8133_s15 }
 0x3e7   : > { %v4106_v24 = vpop.permute.xlu1 %4105 }
 0x3e8   : > { %v3848_v22 = vpop.permute.xlu0 %3847 }
 0x3e9   : > { %3613 = vrot.lane.b32.xlu1 %v2925_v34, %s8136_s17  ;;  %v4355_v30 = vsel %vm4348_vm8, %v4322_v20, %v3848_v22  ;;  %v4195_v22 = vsel %vm2161_vm1, %v10054_v59, %v10231_v8 }
 0x3ea   : > { %3483 = vrot.lane.b32.xlu0 %v10346_v23, %s8135_s13 }
 0x3eb   : > { %v3470_v3 = vpop.permute.xlu1 %3469 }
 0x3ec   : > { %v3976_v37 = vpop.permute.xlu0 %3975 }
 0x3ed   : > { %3741 = vrot.lane.b32.xlu1 %v2957_v12, %s8137_s18  ;;  %v4388_v55 = vsel %vm4381_vm9, %v4355_v30, %v3976_v37  ;;  %v10499_v30 = vld [vmem:[#allocation2 + $0xf8] sm:$0xff] }
 0x3ee   : > { %3611 = vrot.lane.b32.xlu0 %v10328_v61, %s8136_s17 }
 0x3ef   : > { %v3850_v50 = vpop.permute.xlu1 %3849 }
 0x3f0   : > { %v4356_v9 = vsel %vm4348_vm8, %v4323_v14, %v3850_v50  ;;  %v4104_v42 = vpop.permute.xlu0 %4103 }
 0x3f1   : > { %v4389_v31 = vsel %vm4381_vm9, %v4356_v9, %v3978_v18  ;;  %v4420_v7 = vsel %vm393_vm0, %v4388_v55, %v4104_v42  ;;  %3993 = vrot.lane.b32.xlu1 %v2925_v34, %s8138_s25  ;;  %v2959_v34 = vld [vmem:[#allocation2 + $0xfa] sm:$0xff]  ;;  %v4196_v18 = vsel %vm2161_vm1, %v10065_v60, %v10228_v43  ;;  %v4227_v60 = vsel %vm2194_vm4, %v4195_v22, %v10238_v45  ;;  %v2929_v42 = vld [vmem:[#allocation2 + $0x111] sm:$0xff] }
 0x3f2   : > { %3739 = vrot.lane.b32.xlu0 %v10335_v0, %s8137_s18  ;;  %7898 = vmatprep.mubr.msk.f32.mxu1 %vm4462_vm10, %v4420_v7  ;;  %v4421_v48 = vsel %vm393_vm0, %v4389_v31, %v4106_v24  ;;  %v2928_v31 = vld [vmem:[#allocation2 + $0x109] sm:$0xff] }
 0x3f3   : > { %v10414_v40 = vpop.permute.xlu1 %3221  ;;  %7899 = vmatmul.mubr.msk.f32.gmra.mrb[86].mxu1 %vm4462_vm10, %v4421_v48 }
 0x3f4   : > { %v10417_v6 = vpop.permute.xlu0 %3219 }
 0x3f5   : > { %4121 = vrot.lane.b32.xlu1 %v2957_v12, %s8139_s12 }
 0x3f6   : > { %3863 = vrot.lane.b32.xlu0 %v10346_v23, %s8134_s21 }
 0x3f7   : > { %v10422_v62 = vpop.permute.xlu1 %3349 }
 0x3f8   : > { %v10424_v27 = vpop.permute.xlu0 %3347 }
 0x3f9   : > { %3485 = vrot.lane.b32.xlu1 %v10426_v38, %s8135_s13 }
 0x3fa   : > { %3991 = vrot.lane.b32.xlu0 %v10328_v61, %s8138_s25  ;;  %v2958_v61 = vld [vmem:[#allocation2 + $0xf2] sm:$0xff] }
 0x3fb   : > { %v10432_v54 = vpop.permute.xlu1 %3601 }
 0x3fc   : > { %v10434_v41 = vpop.permute.xlu0 %3471 }
 0x3fd   : > { %3865 = vrot.lane.b32.xlu1 %v10426_v38, %s8134_s21 }
 0x3fe   : > { %4119 = vrot.lane.b32.xlu0 %v10335_v0, %s8139_s12  ;;  %v4228_v0 = vsel %vm2194_vm4, %v4196_v18, %v10236_v56  ;;  %v4259_v56 = vsel %vm2227_vm3, %v4227_v60, %v10318_v53 }
 0x3ff   : > { %v10440_v16 = vpop.permute.xlu1 %3729  ;;  %v4260_v24 = vsel %vm2227_vm3, %v4228_v0, %v3470_v3  ;;  %v4291_v46 = vsel %vm2271_vm5, %v4259_v56, %v10325_v25  ;;  %v10528_v0 = vld [vmem:[#allocation2 + $0x108] sm:$0xff] }
 0x400   : > { %v10442_v10 = vpop.permute.xlu0 %3599  ;;  %v4292_v57 = vsel %vm2271_vm5, %v4260_v24, %v10316_v15  ;;  %v4324_v59 = vsel %vm4315_vm7, %v4291_v46, %v10332_v17 }
 0x401   : > { %3237 = vrot.lane.b32.xlu1 %v2927_v26, %s8132_s29  ;;  %v4325_v45 = vsel %vm4315_vm7, %v4292_v57, %v10323_v11 }
 0x402   : > { %3235 = vrot.lane.b32.xlu0 %v2926_v36, %s8132_s29 }
 0x403   : > { %v3982_v51 = vpop.permute.xlu1 %3981 }
 0x404   : > { %v10446_v44 = vpop.permute.xlu0 %3727 }
 0x405   : > { %3365 = vrot.lane.b32.xlu1 %v2959_v34, %s8133_s15 }
 0x406   : > { %3363 = vrot.lane.b32.xlu0 %v2958_v61, %s8133_s15 }
 0x407   : > { %v4110_v12 = vpop.permute.xlu1 %4109 }
 0x408   : > { %v3852_v1 = vpop.permute.xlu0 %3851 }
 0x409   : > { %3617 = vrot.lane.b32.xlu1 %v2927_v26, %s8136_s17  ;;  %v4357_v8 = vsel %vm4348_vm8, %v4324_v59, %v3852_v1  ;;  %v4197_v1 = vsel %vm2161_vm1, %v10086_v13, %v10302_v32 }
 0x40a   : > { %3487 = vrot.lane.b32.xlu0 %v10457_v58, %s8135_s13 }
 0x40b   : > { %v3474_v43 = vpop.permute.xlu1 %3473 }
 0x40c   : > { %v3980_v49 = vpop.permute.xlu0 %3979 }
 0x40d   : > { %3745 = vrot.lane.b32.xlu1 %v2959_v34, %s8137_s18  ;;  %v4390_v3 = vsel %vm4381_vm9, %v4357_v8, %v3980_v49  ;;  %v10570_v8 = vld [vmem:[#allocation2 + $0x110] sm:$0xff] }
 0x40e   : > { %3615 = vrot.lane.b32.xlu0 %v2926_v36, %s8136_s17 }
 0x40f   : > { %v3854_v53 = vpop.permute.xlu1 %3853 }
 0x410   : > { %v4358_v15 = vsel %vm4348_vm8, %v4325_v45, %v3854_v53  ;;  %v4108_v2 = vpop.permute.xlu0 %4107 }
 0x411   : > { %v4391_v25 = vsel %vm4381_vm9, %v4358_v15, %v3982_v51  ;;  %v4422_v19 = vsel %vm393_vm0, %v4390_v3, %v4108_v2  ;;  %3997 = vrot.lane.b32.xlu1 %v2927_v26, %s8138_s25  ;;  %v2961_v26 = vld [vmem:[#allocation2 + $0x112] sm:$0xff]  ;;  %v4198_v51 = vsel %vm2161_vm1, %v10105_v4, %v10299_v39  ;;  %v4229_v4 = vsel %vm2194_vm4, %v4197_v1, %v10309_v33  ;;  %v2931_v2 = vld [vmem:[#allocation2 + $0x129] sm:$0xff] }
 0x412   : > { %3743 = vrot.lane.b32.xlu0 %v2958_v61, %s8137_s18  ;;  %7901 = vmatprep.mubr.msk.f32.mxu1 %vm4462_vm10, %v4422_v19  ;;  %v4423_v17 = vsel %vm393_vm0, %v4391_v25, %v4110_v12  ;;  %v2930_v25 = vld [vmem:[#allocation2 + $0x121] sm:$0xff] }
 0x413   : > { %v10487_v37 = vpop.permute.xlu1 %3225  ;;  %7902 = vmatmul.mubr.msk.f32.gmra.mrb[88].mxu1 %vm4462_vm10, %v4423_v17 }
 0x414   : > { %v10490_v11 = vpop.permute.xlu0 %3223 }
 0x415   : > { %4125 = vrot.lane.b32.xlu1 %v2959_v34, %s8139_s12 }
 0x416   : > { %3867 = vrot.lane.b32.xlu0 %v10457_v58, %s8134_s21 }
 0x417   : > { %v10495_v47 = vpop.permute.xlu1 %3353 }
 0x418   : > { %v10497_v20 = vpop.permute.xlu0 %3351 }
 0x419   : > { %3489 = vrot.lane.b32.xlu1 %v10499_v30, %s8135_s13 }
 0x41a   : > { %3995 = vrot.lane.b32.xlu0 %v2926_v36, %s8138_s25  ;;  %v2960_v36 = vld [vmem:[#allocation2 + $0x10a] sm:$0xff] }
 0x41b   : > { %v10504_v14 = vpop.permute.xlu1 %3605 }
 0x41c   : > { %v10506_v50 = vpop.permute.xlu0 %3475 }
 0x41d   : > { %3869 = vrot.lane.b32.xlu1 %v10499_v30, %s8134_s21 }
 0x41e   : > { %4123 = vrot.lane.b32.xlu0 %v2958_v61, %s8139_s12  ;;  %v4230_v61 = vsel %vm2194_vm4, %v4198_v51, %v10307_v21  ;;  %v4261_v21 = vsel %vm2227_vm3, %v4229_v4, %v10434_v41 }
 0x41f   : > { %v10511_v55 = vpop.permute.xlu1 %3733  ;;  %v4262_v12 = vsel %vm2227_vm3, %v4230_v61, %v3474_v43  ;;  %v4293_v60 = vsel %vm2271_vm5, %v4261_v21, %v10442_v10  ;;  %v10599_v61 = vld [vmem:[#allocation2 + $0x120] sm:$0xff] }
 0x420   : > { %v10513_v9 = vpop.permute.xlu0 %3603  ;;  %v4294_v24 = vsel %vm2271_vm5, %v4262_v12, %v10432_v54  ;;  %v4326_v13 = vsel %vm4315_vm7, %v4293_v60, %v10446_v44 }
 0x421   : > { %3241 = vrot.lane.b32.xlu1 %v2929_v42, %s8132_s29  ;;  %v4327_v33 = vsel %vm4315_vm7, %v4294_v24, %v10440_v16 }
 0x422   : > { %3239 = vrot.lane.b32.xlu0 %v2928_v31, %s8132_s29 }
 0x423   : > { %v3986_v7 = vpop.permute.xlu1 %3985 }
 0x424   : > { %v10517_v48 = vpop.permute.xlu0 %3731 }
 0x425   : > { %3369 = vrot.lane.b32.xlu1 %v2961_v26, %s8133_s15 }
 0x426   : > { %3367 = vrot.lane.b32.xlu0 %v2960_v36, %s8133_s15 }
 0x427   : > { %v4114_v34 = vpop.permute.xlu1 %4113 }
 0x428   : > { %v3856_v18 = vpop.permute.xlu0 %3855 }
 0x429   : > { %3621 = vrot.lane.b32.xlu1 %v2929_v42, %s8136_s17  ;;  %v4359_v32 = vsel %vm4348_vm8, %v4326_v13, %v3856_v18  ;;  %v4199_v18 = vsel %vm2161_vm1, %v10135_v5, %v10417_v6 }
 0x42a   : > { %3491 = vrot.lane.b32.xlu0 %v10528_v0, %s8135_s13 }
 0x42b   : > { %v3478_v39 = vpop.permute.xlu1 %3477 }
 0x42c   : > { %v3984_v22 = vpop.permute.xlu0 %3983 }
 0x42d   : > { %3749 = vrot.lane.b32.xlu1 %v2961_v26, %s8137_s18  ;;  %v4392_v43 = vsel %vm4381_vm9, %v4359_v32, %v3984_v22  ;;  %v10641_v32 = vld [vmem:[#allocation2 + $0x128] sm:$0xff] }
 0x42e   : > { %3619 = vrot.lane.b32.xlu0 %v2928_v31, %s8136_s17 }
 0x42f   : > { %v3858_v41 = vpop.permute.xlu1 %3857 }
 0x430   : > { %v4360_v54 = vsel %vm4348_vm8, %v4327_v33, %v3858_v41  ;;  %v4112_v56 = vpop.permute.xlu0 %4111 }
 0x431   : > { %v4393_v10 = vsel %vm4381_vm9, %v4360_v54, %v3986_v7  ;;  %v4424_v57 = vsel %vm393_vm0, %v4392_v43, %v4112_v56  ;;  %4001 = vrot.lane.b32.xlu1 %v2929_v42, %s8138_s25  ;;  %v2963_v42 = vld [vmem:[#allocation2 + $0x12a] sm:$0xff]  ;;  %v4200_v7 = vsel %vm2161_vm1, %v10169_v52, %v10414_v40  ;;  %v4231_v52 = vsel %vm2194_vm4, %v4199_v18, %v10424_v27  ;;  %v2933_v56 = vld [vmem:[#allocation2 + $0x141] sm:$0xff] }
 0x432   : > { %3747 = vrot.lane.b32.xlu0 %v2960_v36, %s8137_s18  ;;  %7904 = vmatprep.mubr.msk.f32.mxu1 %vm4462_vm10, %v4424_v57  ;;  %v4425_v44 = vsel %vm393_vm0, %v4393_v10, %v4114_v34  ;;  %v2932_v10 = vld [vmem:[#allocation2 + $0x139] sm:$0xff] }
 0x433   : > { %v10558_v49 = vpop.permute.xlu1 %3229  ;;  %7905 = vmatmul.mubr.msk.f32.gmra.mrb[90].mxu1 %vm4462_vm10, %v4425_v44 }
 0x434   : > { %v10561_v16 = vpop.permute.xlu0 %3227 }
 0x435   : > { %4129 = vrot.lane.b32.xlu1 %v2961_v26, %s8139_s12 }
 0x436   : > { %3871 = vrot.lane.b32.xlu0 %v10528_v0, %s8134_s21 }
 0x437   : > { %v10566_v46 = vpop.permute.xlu1 %3357 }
 0x438   : > { %v10568_v59 = vpop.permute.xlu0 %3355 }
 0x439   : > { %3493 = vrot.lane.b32.xlu1 %v10570_v8, %s8135_s13 }
 0x43a   : > { %3999 = vrot.lane.b32.xlu0 %v2928_v31, %s8138_s25  ;;  %v2962_v31 = vld [vmem:[#allocation2 + $0x122] sm:$0xff] }
 0x43b   : > { %v10575_v45 = vpop.permute.xlu1 %3609 }
 0x43c   : > { %v10577_v53 = vpop.permute.xlu0 %3479 }
 0x43d   : > { %3873 = vrot.lane.b32.xlu1 %v10570_v8, %s8134_s21 }
 0x43e   : > { %4127 = vrot.lane.b32.xlu0 %v2960_v36, %s8139_s12  ;;  %v4232_v36 = vsel %vm2194_vm4, %v4200_v7, %v10422_v62  ;;  %v4263_v62 = vsel %vm2227_vm3, %v4231_v52, %v10506_v50 }
 0x43f   : > { %v10582_v3 = vpop.permute.xlu1 %3737  ;;  %v4264_v34 = vsel %vm2227_vm3, %v4232_v36, %v3478_v39  ;;  %v4295_v4 = vsel %vm2271_vm5, %v4263_v62, %v10513_v9 }
 0x440   : > { %v10584_v15 = vpop.permute.xlu0 %3607  ;;  %v4296_v12 = vsel %vm2271_vm5, %v4264_v34, %v10504_v14  ;;  %v4328_v5 = vsel %vm4315_vm7, %v4295_v4, %v10517_v48 }
 0x441   : > { %3245 = vrot.lane.b32.xlu1 %v2931_v2, %s8132_s29  ;;  %v4329_v27 = vsel %vm4315_vm7, %v4296_v12, %v10511_v55  ;;  %v10677_v12 = vld [vmem:[#allocation2 + $0x138] sm:$0xff] }
 0x442   : > { %3243 = vrot.lane.b32.xlu0 %v2930_v25, %s8132_s29 }
 0x443   : > { %v3990_v19 = vpop.permute.xlu1 %3989 }
 0x444   : > { %v10588_v17 = vpop.permute.xlu0 %3735 }
 0x445   : > { %3373 = vrot.lane.b32.xlu1 %v2963_v42, %s8133_s15 }
 0x446   : > { %3371 = vrot.lane.b32.xlu0 %v2962_v31, %s8133_s15 }
 0x447   : > { %v4118_v26 = vpop.permute.xlu1 %4117 }
 0x448   : > { %v3860_v51 = vpop.permute.xlu0 %3859 }
 0x449   : > { %3625 = vrot.lane.b32.xlu1 %v2931_v2, %s8136_s17  ;;  %v4361_v6 = vsel %vm4348_vm8, %v4328_v5, %v3860_v51 }
 0x44a   : > { %3495 = vrot.lane.b32.xlu0 %v10599_v61, %s8135_s13 }
 0x44b   : > { %v3482_v40 = vpop.permute.xlu1 %3481 }
 0x44c   : > { %v3988_v1 = vpop.permute.xlu0 %3987 }
 0x44d   : > { %3753 = vrot.lane.b32.xlu1 %v2963_v42, %s8137_s18  ;;  %v4394_v39 = vsel %vm4381_vm9, %v4361_v6, %v3988_v1 }
 0x44e   : > { %3623 = vrot.lane.b32.xlu0 %v2930_v25, %s8136_s17 }
 0x44f   : > { %v3862_v50 = vpop.permute.xlu1 %3861 }
 0x450   : > { %v4362_v14 = vsel %vm4348_vm8, %v4329_v27, %v3862_v50  ;;  %v4116_v21 = vpop.permute.xlu0 %4115 }
 0x451   : > { %v4395_v9 = vsel %vm4381_vm9, %v4362_v14, %v3990_v19  ;;  %v4426_v24 = vsel %vm393_vm0, %v4394_v39, %v4116_v21  ;;  %4005 = vrot.lane.b32.xlu1 %v2931_v2, %s8138_s25  ;;  %v2965_v2 = vld [vmem:[#allocation2 + $0x142] sm:$0xff]  ;;  %v2964_v19 = vld [vmem:[#allocation2 + $0x13a] sm:$0xff] }
 0x452   : > { %3751 = vrot.lane.b32.xlu0 %v2962_v31, %s8137_s18  ;;  %7907 = vmatprep.mubr.msk.f32.mxu1 %vm4462_vm10, %v4426_v24  ;;  %v4427_v48 = vsel %vm393_vm0, %v4395_v9, %v4118_v26  ;;  %v10721_v24 = vld [vmem:[#allocation2 + $0x140] sm:$0xff] }
 0x453   : > { %v10629_v22 = vpop.permute.xlu1 %3233  ;;  %7908 = vmatmul.mubr.msk.f32.gmra.mrb[92].mxu1 %vm4462_vm10, %v4427_v48 }
 0x454   : > { %v10632_v55 = vpop.permute.xlu0 %3231 }
 0x455   : > { %4133 = vrot.lane.b32.xlu1 %v2963_v42, %s8139_s12 }
 0x456   : > { %3875 = vrot.lane.b32.xlu0 %v10599_v61, %s8134_s21 }
 0x457   : > { %v10637_v60 = vpop.permute.xlu1 %3361 }
 0x458   : > { %v10639_v13 = vpop.permute.xlu0 %3359 }
 0x459   : > { %3497 = vrot.lane.b32.xlu1 %v10641_v32, %s8135_s13 }
 0x45a   : > { %4003 = vrot.lane.b32.xlu0 %v2930_v25, %s8138_s25  ;;  %v10664_v25 = vld [vmem:[%s12586_s6] ss:$0 sm:$0xff] }
 0x45b   : > { %v10646_v33 = vpop.permute.xlu1 %3613 }
 0x45c   : > { %v10648_v41 = vpop.permute.xlu0 %3483 }
 0x45d   : > { %3877 = vrot.lane.b32.xlu1 %v10641_v32, %s8134_s21 }
 0x45e   : > { %4131 = vrot.lane.b32.xlu0 %v2962_v31, %s8139_s12  ;;  %v4202_v31 = vsel %vm2161_vm1, %v10240_v28, %v10487_v37  ;;  %v4201_v28 = vsel %vm2161_vm1, %v10198_v35, %v10490_v11 }
 0x45f   : > { %v10653_v43 = vpop.permute.xlu1 %3741  ;;  %v4234_v51 = vsel %vm2194_vm4, %v4202_v31, %v10495_v47  ;;  %v4233_v47 = vsel %vm2194_vm4, %v4201_v28, %v10497_v20  ;;  %v10741_v31 = vld [vmem:[#allocation2 + $0x151] sm:$0xff] }
 0x460   : > { %v10655_v54 = vpop.permute.xlu0 %3611  ;;  %v4266_v52 = vsel %vm2227_vm3, %v4234_v51, %v3482_v40  ;;  %v4265_v40 = vsel %vm2227_vm3, %v4233_v47, %v10577_v53  ;;  %v4204_v51 = vsel %vm2161_vm1, %v10311_v63, %v10558_v49  ;;  %v4203_v63 = vsel %vm2161_vm1, %v10269_v29, %v10561_v16 }
 0x461   : > { %3249 = vrot.lane.b32.xlu1 %v2933_v56, %s8132_s29  ;;  %v4298_v4 = vsel %vm2271_vm5, %v4266_v52, %v10575_v45  ;;  %v4297_v35 = vsel %vm2271_vm5, %v4265_v40, %v10584_v15 }
 0x462   : > { %3247 = vrot.lane.b32.xlu0 %v2932_v10, %s8132_s29  ;;  %v4330_v11 = vsel %vm4315_vm7, %v4297_v35, %v10588_v17  ;;  %v4331_v53 = vsel %vm4315_vm7, %v4298_v4, %v10582_v3  ;;  %v10765_v4 = vld [vmem:[#allocation2 + $0x150] sm:$0xff] }
 0x463   : > { %v3994_v57 = vpop.permute.xlu1 %3993 }
 0x464   : > { %v10659_v44 = vpop.permute.xlu0 %3739 }
 0x465   : > { %3377 = vrot.lane.b32.xlu1 %v2965_v2, %s8133_s15 }
 0x466   : > { %v7891_v42 = vpop.f32.mrb[80].mxu1  ;;  %3375 = vrot.lane.b32.xlu0 %v2964_v19, %s8133_s15 }
 0x467   : > { %v4631_v7 = vadd.f32 %v7891_v42, %v10664_v25  ;;  %v4122_v26 = vpop.permute.xlu1 %4121  ;;  %v4625_v36 = vpop.f32.mrb[81].mxu1  ;;  %v10737_v42 = vld [vmem:[#allocation2 + $0x159] sm:$0xff] }
 0x468   : > { %v4626_v34 = vadd.f32 %v10664_v25, %v4625_v36  ;;  %v3864_v18 = vpop.permute.xlu0 %3863 }
 0x469   : > { %v4785_v62 = vmax.f32 %v4631_v7, 0.0  ;;  %3629 = vrot.lane.b32.xlu1 %v2933_v56, %s8136_s17  ;;  %v4363_v20 = vsel %vm4348_vm8, %v4330_v11, %v3864_v18 }
 0x46a   : > { %v4784_v37 = vmax.f32 %v4626_v34, 0.0  ;;  %3499 = vrot.lane.b32.xlu0 %v10677_v12, %s8135_s13 }
 0x46b   : > { %4873 = vst.msk [vmem:[#allocation3 + $0x21] sm:$0xff] %vm2808_vm6, %v4785_v62  ;;  %v3486_v1 = vpop.permute.xlu1 %3485  ;;  %v4236_v62 = vsel %vm2194_vm4, %v4204_v51, %v10566_v46  ;;  %v4235_v46 = vsel %vm2194_vm4, %v4203_v63, %v10568_v59  ;;  %v4206_v63 = vsel %vm2161_vm1, %v10426_v38, %v10629_v22  ;;  %v4205_v38 = vsel %vm2161_vm1, %v10346_v23, %v10632_v55 }
 0x46c   : > { %4872 = vst.msk [vmem:[#allocation3 + $0x19] sm:$0xff] %vm2808_vm6, %v4784_v37  ;;  %v3992_v5 = vpop.permute.xlu0 %3991  ;;  %v4268_v47 = vsel %vm2227_vm3, %v4236_v62, %v3486_v1 }
 0x46d   : > { %3757 = vrot.lane.b32.xlu1 %v2965_v2, %s8137_s18  ;;  %v4396_v45 = vsel %vm4381_vm9, %v4363_v20, %v3992_v5  ;;  %v4267_v5 = vsel %vm2227_vm3, %v4235_v46, %v10648_v41  ;;  %v4300_v35 = vsel %vm2271_vm5, %v4268_v47, %v10646_v33 }
 0x46e   : > { %3627 = vrot.lane.b32.xlu0 %v2932_v10, %s8136_s17  ;;  %v4299_v29 = vsel %vm2271_vm5, %v4267_v5, %v10655_v54  ;;  %v4333_v33 = vsel %vm4315_vm7, %v4300_v35, %v10653_v43  ;;  %v4238_v35 = vsel %vm2194_vm4, %v4206_v63, %v10637_v60  ;;  %v4237_v60 = vsel %vm2194_vm4, %v4205_v38, %v10639_v13 }
 0x46f   : > { %v3866_v6 = vpop.permute.xlu1 %3865  ;;  %v4332_v16 = vsel %vm4315_vm7, %v4299_v29, %v10659_v44 }
 0x470   : > { %v4364_v27 = vsel %vm4348_vm8, %v4331_v53, %v3866_v6  ;;  %v4120_v50 = vpop.permute.xlu0 %4119  ;;  %v10793_v6 = vld [vmem:[#allocation2 + $0x158] sm:$0xff] }
 0x471   : > { %v4397_v15 = vsel %vm4381_vm9, %v4364_v27, %v3994_v57  ;;  %v4428_v39 = vsel %vm393_vm0, %v4396_v45, %v4120_v50  ;;  %4009 = vrot.lane.b32.xlu1 %v2933_v56, %s8138_s25 }
 0x472   : > { %3755 = vrot.lane.b32.xlu0 %v2964_v19, %s8137_s18  ;;  %7910 = vmatprep.mubr.msk.f32.mxu1 %vm4462_vm10, %v4428_v39  ;;  %v4429_v17 = vsel %vm393_vm0, %v4397_v15, %v4122_v26  ;;  %v10747_v26 = vld [vmem:[#allocation2 + $0x15a] sm:$0xff] }
 0x473   : > { %v10709_v14 = vpop.permute.xlu1 %3237  ;;  %7911 = vmatmul.mubr.msk.f32.gmra.mrb[94].mxu1 %vm4462_vm10, %v4429_v17  ;;  %v10816_v17 = vld [vmem:[#allocation2 + $0x171] sm:$0xff] }
 0x474   : > { %v10712_v3 = vpop.permute.xlu0 %3235 }
 0x475   : > { %4137 = vrot.lane.b32.xlu1 %v2965_v2, %s8139_s12 }
 0x476   : > { %3879 = vrot.lane.b32.xlu0 %v10677_v12, %s8134_s21 }
 0x477   : > { %v10717_v21 = vpop.permute.xlu1 %3365 }
 0x478   : > { %v10719_v9 = vpop.permute.xlu0 %3363 }
 0x479   : > { %3501 = vrot.lane.b32.xlu1 %v10721_v24, %s8135_s13 }
 0x47a   : > { %4007 = vrot.lane.b32.xlu0 %v2932_v10, %s8138_s25 }
 0x47b   : > { %v10726_v48 = vpop.permute.xlu1 %3617 }
 0x47c   : > { %v10728_v56 = vpop.permute.xlu0 %3487 }
 0x47d   : > { %3881 = vrot.lane.b32.xlu1 %v10721_v24, %s8134_s21 }
 0x47e   : > { %4135 = vrot.lane.b32.xlu0 %v2964_v19, %s8139_s12  ;;  %v10751_v19 = vld [vmem:[#allocation2 + $0x152] sm:$0xff] }
 0x47f   : > { %v10733_v57 = vpop.permute.xlu1 %3745 }
 0x480   : > { %v10735_v2 = vpop.permute.xlu0 %3615 }
 0x481   : > { %3253 = vrot.lane.b32.xlu1 %v10737_v42, %s8132_s29 }
 0x482   : > { %3251 = vrot.lane.b32.xlu0 %v10741_v31, %s8132_s29 }
 0x483   : > { %v3998_v10 = vpop.permute.xlu1 %3997 }
 0x484   : > { %v10745_v7 = vpop.permute.xlu0 %3743 }
 0x485   : > { %3381 = vrot.lane.b32.xlu1 %v10747_v26, %s8133_s15 }
 0x486   : > { %v7894_v36 = vpop.f32.mrb[82].mxu1  ;;  %3379 = vrot.lane.b32.xlu0 %v10751_v19, %s8133_s15 }
 0x487   : > { %v4641_v34 = vadd.f32 %v7894_v36, %v10664_v25  ;;  %v4126_v18 = vpop.permute.xlu1 %4125  ;;  %v4635_v52 = vpop.f32.mrb[83].mxu1 }
 0x488   : > { %v4636_v28 = vadd.f32 %v10664_v25, %v4635_v52  ;;  %v3868_v37 = vpop.permute.xlu0 %3867 }
 0x489   : > { %v4787_v40 = vmax.f32 %v4641_v34, 0.0  ;;  %3633 = vrot.lane.b32.xlu1 %v10737_v42, %s8136_s17  ;;  %v4365_v59 = vsel %vm4348_vm8, %v4332_v16, %v3868_v37  ;;  %v10828_v34 = vld [vmem:[#allocation2 + $0x172] sm:$0xff] }
 0x48a   : > { %v4786_v49 = vmax.f32 %v4636_v28, 0.0  ;;  %3503 = vrot.lane.b32.xlu0 %v10765_v4, %s8135_s13  ;;  %v10842_v28 = vld [vmem:[#allocation2 + $0x168] sm:$0xff]  ;;  %v10859_v16 = vld [vmem:[#allocation2 + $0x170] sm:$0xff] }
 0x48b   : > { %4875 = vst.msk [vmem:[#allocation3 + $0x39] sm:$0xff] %vm2808_vm6, %v4787_v40  ;;  %v3490_v1 = vpop.permute.xlu1 %3489 }
 0x48c   : > { %4874 = vst.msk [vmem:[#allocation3 + $0x31] sm:$0xff] %vm2808_vm6, %v4786_v49  ;;  %v3996_v11 = vpop.permute.xlu0 %3995 }
 0x48d   : > { %3761 = vrot.lane.b32.xlu1 %v10747_v26, %s8137_s18  ;;  %v4398_v20 = vsel %vm4381_vm9, %v4365_v59, %v3996_v11  ;;  %v4270_v59 = vsel %vm2227_vm3, %v4238_v35, %v3490_v1  ;;  %v4269_v1 = vsel %vm2227_vm3, %v4237_v60, %v10728_v56 }
 0x48e   : > { %3631 = vrot.lane.b32.xlu0 %v10741_v31, %s8136_s17  ;;  %v4301_v23 = vsel %vm2271_vm5, %v4269_v1, %v10735_v2 }
 0x48f   : > { %v3870_v41 = vpop.permute.xlu1 %3869  ;;  %v4334_v55 = vsel %vm4315_vm7, %v4301_v23, %v10745_v7 }
 0x490   : > { %v4366_v53 = vsel %vm4348_vm8, %v4333_v33, %v3870_v41  ;;  %v4124_v54 = vpop.permute.xlu0 %4123 }
 0x491   : > { %v4399_v45 = vsel %vm4381_vm9, %v4366_v53, %v3998_v10  ;;  %v4430_v44 = vsel %vm393_vm0, %v4398_v20, %v4124_v54  ;;  %3505 = vrot.lane.b32.xlu1 %v10793_v6, %s8135_s13  ;;  %v10820_v10 = vld [vmem:[#allocation2 + $0x169] sm:$0xff]  ;;  %v4302_v20 = vsel %vm2271_vm5, %v4270_v59, %v10726_v48 }
 0x492   : > { %3759 = vrot.lane.b32.xlu0 %v10751_v19, %s8137_s18  ;;  %7913 = vmatprep.mubr.msk.f32.mxu1 %vm4462_vm10, %v4430_v44  ;;  %v4431_v43 = vsel %vm393_vm0, %v4399_v45, %v4126_v18  ;;  %v10832_v18 = vld [vmem:[#allocation2 + $0x16a] sm:$0xff]  ;;  %v4335_v48 = vsel %vm4315_vm7, %v4302_v20, %v10733_v57 }
 0x493   : > { %v10803_v27 = vpop.permute.xlu1 %3241  ;;  %7914 = vmatmul.mubr.msk.f32.gmra.mrb[96].mxu1 %vm4462_vm10, %v4431_v43  ;;  %v10890_v44 = vld [vmem:[#allocation2 + $0x189] sm:$0xff] }
 0x494   : > { %v10806_v50 = vpop.permute.xlu0 %3239 }
 0x495   : > { %3885 = vrot.lane.b32.xlu1 %v10793_v6, %s8134_s21 }
 0x496   : > { %3883 = vrot.lane.b32.xlu0 %v10765_v4, %s8134_s21 }
 0x497   : > { %v10812_v15 = vpop.permute.xlu1 %3369 }
 0x498   : > { %v10814_v39 = vpop.permute.xlu0 %3367 }
 0x499   : > { %3257 = vrot.lane.b32.xlu1 %v10816_v17, %s8132_s29 }
 0x49a   : > { %3255 = vrot.lane.b32.xlu0 %v10820_v10, %s8132_s29 }
 0x49b   : > { %v10824_v36 = vpop.permute.xlu1 %3621 }
 0x49c   : > { %v10826_v51 = vpop.permute.xlu0 %3491 }
 0x49d   : > { %3385 = vrot.lane.b32.xlu1 %v10828_v34, %s8133_s15 }
 0x49e   : > { %3383 = vrot.lane.b32.xlu0 %v10832_v18, %s8133_s15 }
 0x49f   : > { %v10836_v52 = vpop.permute.xlu1 %3749 }
 0x4a0   : > { %v10838_v62 = vpop.permute.xlu0 %3619 }
 0x4a1   : > { %3637 = vrot.lane.b32.xlu1 %v10816_v17, %s8136_s17 }
 0x4a2   : > { %3507 = vrot.lane.b32.xlu0 %v10842_v28, %s8135_s13 }
 0x4a3   : > { %v4002_v37 = vpop.permute.xlu1 %4001 }
 0x4a4   : > { %v10846_v47 = vpop.permute.xlu0 %3747 }
 0x4a5   : > { %3765 = vrot.lane.b32.xlu1 %v10828_v34, %s8137_s18 }
 0x4a6   : > { %v7897_v40 = vpop.f32.mrb[84].mxu1  ;;  %3635 = vrot.lane.b32.xlu0 %v10820_v10, %s8136_s17 }
 0x4a7   : > { %v4651_v49 = vadd.f32 %v7897_v40, %v10664_v25  ;;  %v4130_v46 = vpop.permute.xlu1 %4129  ;;  %v4645_v5 = vpop.f32.mrb[85].mxu1  ;;  %v3000_v40 = vld [vmem:[#allocation2 + $0x180] sm:$0xff] }
 0x4a8   : > { %v4646_v11 = vadd.f32 %v10664_v25, %v4645_v5  ;;  %v3872_v29 = vpop.permute.xlu0 %3871  ;;  %v3065_v5 = vld [vmem:[#allocation2 + $0x18a] sm:$0xff] }
 0x4a9   : > { %v4789_v33 = vmax.f32 %v4651_v49, 0.0  ;;  %3509 = vrot.lane.b32.xlu1 %v10859_v16, %s8135_s13  ;;  %v4367_v13 = vsel %vm4348_vm8, %v4334_v55, %v3872_v29  ;;  %v3001_v29 = vld [vmem:[#allocation2 + $0x188] sm:$0xff] }
 0x4aa   : > { %v4788_v22 = vmax.f32 %v4646_v11, 0.0  ;;  %3763 = vrot.lane.b32.xlu0 %v10832_v18, %s8137_s18 }
 0x4ab   : > { %4877 = vst.msk [vmem:[#allocation3 + $0x51] sm:$0xff] %vm2808_vm6, %v4789_v33  ;;  %v3494_v41 = vpop.permute.xlu1 %3493 }
 0x4ac   : > { %4876 = vst.msk [vmem:[#allocation3 + $0x49] sm:$0xff] %vm2808_vm6, %v4788_v22  ;;  %v4000_v53 = vpop.permute.xlu0 %3999 }
 0x4ad   : > { %3889 = vrot.lane.b32.xlu1 %v10859_v16, %s8134_s21  ;;  %v4400_v54 = vsel %vm4381_vm9, %v4367_v13, %v4000_v53  ;;  %v4208_v53 = vsel %vm2161_vm1, %v10499_v30, %v10709_v14  ;;  %v4207_v30 = vsel %vm2161_vm1, %v10457_v58, %v10712_v3 }
 0x4ae   : > { %3887 = vrot.lane.b32.xlu0 %v10842_v28, %s8134_s21 }
 0x4af   : > { %v3874_v56 = vpop.permute.xlu1 %3873 }
 0x4b0   : > { %v4368_v45 = vsel %vm4348_vm8, %v4335_v48, %v3874_v56  ;;  %v4128_v2 = vpop.permute.xlu0 %4127 }
 0x4b1   : > { %v4401_v43 = vsel %vm4381_vm9, %v4368_v45, %v4002_v37  ;;  %v4432_v7 = vsel %vm393_vm0, %v4400_v54, %v4128_v2  ;;  %3641 = vrot.lane.b32.xlu1 %v10890_v44, %s8136_s17  ;;  %v3032_v37 = vld [vmem:[#allocation2 + $0x181] sm:$0xff] }
 0x4b2   : > { %3511 = vrot.lane.b32.xlu0 %v3000_v40, %s8135_s13  ;;  %7916 = vmatprep.mubr.msk.f32.mxu1 %vm4462_vm10, %v4432_v7  ;;  %v4433_v57 = vsel %vm393_vm0, %v4401_v43, %v4130_v46  ;;  %v3064_v46 = vld [vmem:[#allocation2 + $0x182] sm:$0xff] }
 0x4b3   : > { %v10899_v63 = vpop.permute.xlu1 %3245  ;;  %7917 = vmatmul.mubr.msk.f32.gmra.mrb[98].mxu1 %vm4462_vm10, %v4433_v57  ;;  %v3130_v43 = vld [vmem:[#allocation2 + $0x1a1] sm:$0xff] }
 0x4b4   : > { %v10902_v49 = vpop.permute.xlu0 %3243  ;;  %v3162_v57 = vld [vmem:[#allocation2 + $0x1a2] sm:$0xff] }
 0x4b5   : > { %3769 = vrot.lane.b32.xlu1 %v3065_v5, %s8137_s18 }
 0x4b6   : > { %3639 = vrot.lane.b32.xlu0 %v3032_v37, %s8136_s17 }
 0x4b7   : > { %v10906_v35 = vpop.permute.xlu1 %3373 }
 0x4b8   : > { %v10908_v11 = vpop.permute.xlu0 %3371 }
 0x4b9   : > { %3513 = vrot.lane.b32.xlu1 %v3001_v29, %s8135_s13 }
 0x4ba   : > { %3767 = vrot.lane.b32.xlu0 %v3064_v46, %s8137_s18  ;;  %s8141_s18 = smov 20  }
 0x4bb   : > { %v10912_v59 = vpop.permute.xlu1 %3625 }
 0x4bc   : > { %v10914_v33 = vpop.permute.xlu0 %3495 }
 0x4bd   : > { %3893 = vrot.lane.b32.xlu1 %v3001_v29, %s8134_s21  ;;  %v3161_v29 = vld [vmem:[#allocation2 + $0x19a] sm:$0xff] }
 0x4be   : > { %3891 = vrot.lane.b32.xlu0 %v3000_v40, %s8134_s21  ;;  %s8140_s21 = smov 12  }
 0x4bf   : > { %v10918_v38 = vpop.permute.xlu1 %3753 }
 0x4c0   : > { %v10920_v22 = vpop.permute.xlu0 %3623 }
 0x4c1   : > { %4013 = vrot.lane.b32.xlu1 %v10737_v42, %s8138_s25 }
 0x4c2   : > { %4011 = vrot.lane.b32.xlu0 %v10741_v31, %s8138_s25  ;;  %v4240_v31 = vsel %vm2194_vm4, %v4208_v53, %v10717_v21  ;;  %v4239_v21 = vsel %vm2194_vm4, %v4207_v30, %v10719_v9 }
 0x4c3   : > { %v4006_v60 = vpop.permute.xlu1 %4005 }
 0x4c4   : > { %v10926_v1 = vpop.permute.xlu0 %3751 }
 0x4c5   : > { %4141 = vrot.lane.b32.xlu1 %v10747_v26, %s8139_s12  ;;  %v4272_v26 = vsel %vm2227_vm3, %v4240_v31, %v3494_v41  ;;  %v4271_v41 = vsel %vm2227_vm3, %v4239_v21, %v10826_v51 }
 0x4c6   : > { %v7900_v20 = vpop.f32.mrb[86].mxu1  ;;  %4139 = vrot.lane.b32.xlu0 %v10751_v19, %s8139_s12  ;;  %v4303_v58 = vsel %vm2271_vm5, %v4271_v41, %v10838_v62 }
 0x4c7   : > { %v4661_v23 = vadd.f32 %v7900_v20, %v10664_v25  ;;  %v4134_v42 = vpop.permute.xlu1 %4133  ;;  %v4655_v55 = vpop.f32.mrb[87].mxu1  ;;  %v4336_v3 = vsel %vm4315_vm7, %v4303_v58, %v10846_v47  ;;  %v4936_v20 = vld [vmem:[#allocation3 + $0x1] sm:$0xff] }
 0x4c8   : > { %v4656_v13 = vadd.f32 %v10664_v25, %v4655_v55  ;;  %v3876_v48 = vpop.permute.xlu0 %3875  ;;  %v4968_v55 = vld [vmem:[#allocation3 + $0x2] sm:$0xff] }
 0x4c9   : > { %v4791_v56 = vmax.f32 %v4661_v23, 0.0  ;;  %4017 = vrot.lane.b32.xlu1 %v10816_v17, %s8138_s25  ;;  %v4304_v17 = vsel %vm2271_vm5, %v4272_v26, %v10824_v36  ;;  %v4369_v9 = vsel %vm4348_vm8, %v4336_v3, %v3876_v48  ;;  %v4969_v23 = vld [vmem:[#allocation3 + $0xa] sm:$0xff]  ;;  %v4210_v48 = vsel %vm2161_vm1, %v10570_v8, %v10803_v27  ;;  %v4938_v3 = vld [vmem:[#allocation3 + $0x19] sm:$0xff] }
 0x4ca   : > { %v4790_v14 = vmax.f32 %v4656_v13, 0.0  ;;  %4015 = vrot.lane.b32.xlu0 %v10820_v10, %s8138_s25  ;;  %v4337_v10 = vsel %vm4315_vm7, %v4304_v17, %v10836_v52  ;;  %v4939_v17 = vld [vmem:[#allocation3 + $0x21] sm:$0xff]  ;;  %v4209_v8 = vsel %vm2161_vm1, %v10528_v0, %v10806_v50 }
 0x4cb   : > { %4879 = vst.msk [vmem:[#allocation3 + $0x69] sm:$0xff] %vm2808_vm6, %v4791_v56  ;;  %v3498_v19 = vpop.permute.xlu1 %3497  ;;  %v4971_v0 = vld [vmem:[#allocation3 + $0x22] sm:$0xff] }
 0x4cc   : > { %4878 = vst.msk [vmem:[#allocation3 + $0x61] sm:$0xff] %vm2808_vm6, %v4790_v14  ;;  %v4004_v54 = vpop.permute.xlu0 %4003  ;;  %v4242_v14 = vsel %vm2194_vm4, %v4210_v48, %v10812_v15  ;;  %v4241_v15 = vsel %vm2194_vm4, %v4209_v8, %v10814_v39  ;;  %v4970_v39 = vld [vmem:[#allocation3 + $0x1a] sm:$0xff] }
 0x4cd   : > { %4145 = vrot.lane.b32.xlu1 %v10828_v34, %s8139_s12  ;;  %v4402_v51 = vsel %vm4381_vm9, %v4369_v9, %v4004_v54  ;;  %v4274_v54 = vsel %vm2227_vm3, %v4242_v14, %v3498_v19  ;;  %v4273_v19 = vsel %vm2227_vm3, %v4241_v15, %v10914_v33  ;;  %v4973_v48 = vld [vmem:[#allocation3 + $0x3a] sm:$0xff] }
 0x4ce   : > { %4143 = vrot.lane.b32.xlu0 %v10832_v18, %s8139_s12  ;;  %v4305_v50 = vsel %vm2271_vm5, %v4273_v19, %v10920_v22  ;;  %v6477_v14 = vld [vmem:[%s12587_s7 + $0x8] sm:$0xff]  ;;  %v6478_v15 = vld [vmem:[%s12587_s7 + $0x10] sm:$0xff]  ;;  %v6479_v19 = vld [vmem:[%s12587_s7 + $0x18] sm:$0xff] }
 0x4cf   : > { %v3878_v36 = vpop.permute.xlu1 %3877 }
 0x4d0   : > { %v4370_v45 = vsel %vm4348_vm8, %v4337_v10, %v3878_v36  ;;  %v4132_v62 = vpop.permute.xlu0 %4131  ;;  %v4306_v10 = vsel %vm2271_vm5, %v4274_v54, %v10912_v59 }
 0x4d1   : > { %v4403_v2 = vsel %vm4381_vm9, %v4370_v45, %v4006_v60  ;;  %v4434_v34 = vsel %vm393_vm0, %v4402_v51, %v4132_v62  ;;  %4021 = vrot.lane.b32.xlu1 %v10890_v44, %s8138_s25  ;;  %v3129_v44 = vld [vmem:[#allocation2 + $0x199] sm:$0xff]  ;;  %v4338_v51 = vsel %vm4315_vm7, %v4305_v50, %v10926_v1  ;;  %v4339_v59 = vsel %vm4315_vm7, %v4306_v10, %v10918_v38  ;;  %v11041_v1 = vld [vmem:[#allocation3 + $0x18] sm:$0xff] }
 0x4d2   : > { %4019 = vrot.lane.b32.xlu0 %v3032_v37, %s8138_s25  ;;  %7919 = vmatprep.mubr.msk.f32.mxu1 %vm4462_vm10, %v4434_v34  ;;  %v4435_v18 = vsel %vm393_vm0, %v4403_v2, %v4134_v42 }
 0x4d3   : > { %v10975_v52 = vpop.permute.xlu1 %3249  ;;  %7920 = vmatmul.mubr.msk.f32.gmra.mrb[100].mxu1 %vm4462_vm10, %v4435_v18 }
 0x4d4   : > { %v10978_v47 = vpop.permute.xlu0 %3247 }
 0x4d5   : > { %4149 = vrot.lane.b32.xlu1 %v3065_v5, %s8139_s12  ;;  %v4937_v5 = vld [vmem:[#allocation3 + $0x9] sm:$0xff] }
 0x4d6   : > { %4147 = vrot.lane.b32.xlu0 %v3064_v46, %s8139_s12 }
 0x4d7   : > { %v10982_v7 = vpop.permute.xlu1 %3377 }
 0x4d8   : > { %v10984_v40 = vpop.permute.xlu0 %3375 }
 0x4d9   : > { %4025 = vrot.lane.b32.xlu1 %v3130_v43, %s8138_s25 }
 0x4da   : > { %4023 = vrot.lane.b32.xlu0 %v3129_v44, %s8138_s25  ;;  %s12039_s25 = scalar_lea.vmem %s12589_s9, %s7283_s20 }
 0x4db   : > { %v10988_v37 = vpop.permute.xlu1 %3629 }
 0x4dc   : > { %v10990_v60 = vpop.permute.xlu0 %3499 }
 0x4dd   : > { %4153 = vrot.lane.b32.xlu1 %v3162_v57, %s8139_s12 }
 0x4de   : > { %4151 = vrot.lane.b32.xlu0 %v3161_v29, %s8139_s12 }
 0x4df   : > { %v10994_v46 = vpop.permute.xlu1 %3757 }
 0x4e0   : > { %v10996_v53 = vpop.permute.xlu0 %3627 }
 0x4e1   : > { %5227 = vrot.lane.b32.xlu1 %v4937_v5, %s8130_s26  ;;  %v11058_v5 = vld [vmem:[#allocation3 + $0x20] sm:$0xff] }
 0x4e2   : > { %5225 = vrot.lane.b32.xlu0 %v4936_v20, %s8130_s26 }
 0x4e3   : > { %v4010_v42 = vpop.permute.xlu1 %4009 }
 0x4e4   : > { %v11000_v31 = vpop.permute.xlu0 %3755 }
 0x4e5   : > { %5355 = vrot.lane.b32.xlu1 %v4969_v23, %s8132_s29 }
 0x4e6   : > { %v7903_v13 = vpop.f32.mrb[88].mxu1  ;;  %5353 = vrot.lane.b32.xlu0 %v4968_v55, %s8132_s29 }
 0x4e7   : > { %v4671_v26 = vadd.f32 %v7903_v13, %v10664_v25  ;;  %v4138_v56 = vpop.permute.xlu1 %4137  ;;  %v4665_v30 = vpop.f32.mrb[89].mxu1 }
 0x4e8   : > { %v4666_v21 = vadd.f32 %v10664_v25, %v4665_v30  ;;  %v3880_v41 = vpop.permute.xlu0 %3879  ;;  %v6476_v30 = vld [vmem:[%s12587_s7] sm:$0xff] }
 0x4e9   : > { %v4793_v58 = vmax.f32 %v4671_v26, 0.0  ;;  %5231 = vrot.lane.b32.xlu1 %v4939_v17, %s8130_s26  ;;  %v4371_v33 = vsel %vm4348_vm8, %v4338_v51, %v3880_v41 }
 0x4ea   : > { %v4792_v27 = vmax.f32 %v4666_v21, 0.0  ;;  %5229 = vrot.lane.b32.xlu0 %v4938_v3, %s8130_s26  ;;  %v8083_v21 = vpack.c.bf16 %v6477_v14, %v6476_v30  ;;  %v4943_v30 = vld [vmem:[#allocation3 + $0x51] sm:$0xff] }
 0x4eb   : > { %4881 = vst.msk [vmem:[#allocation3 + $0x81] sm:$0xff] %vm2808_vm6, %v4793_v58  ;;  %v11020_v9 = vpop.permute.xlu1 %3501 }
 0x4ec   : > { %4880 = vst.msk [vmem:[#allocation3 + $0x79] sm:$0xff] %vm2808_vm6, %v4792_v27  ;;  %v4008_v36 = vpop.permute.xlu0 %4007  ;;  %8084 = vmatprep.subr.bf16.mxu0 %v8083_v21  ;;  %v11093_v27 = vld [vmem:[#allocation3 + $0x38] sm:$0xff] }
 0x4ed   : > { %5359 = vrot.lane.b32.xlu1 %v4971_v0, %s8132_s29  ;;  %v4404_v62 = vsel %vm4381_vm9, %v4371_v33, %v4008_v36  ;;  %12757 = vst [vmem:[#allocation56_spill] sm:$0xff] %v11093_v27  ;;  %8086 = vmatpush3.bf16.msra.mxu0 %v8083_v21  ;;  %v4940_v36 = vld [vmem:[#allocation3 + $0x31] sm:$0xff] }
 0x4ee   : > { %5357 = vrot.lane.b32.xlu0 %v4970_v39, %s8132_s29  ;;  %v4972_v33 = vld [vmem:[#allocation3 + $0x32] sm:$0xff] }
 0x4ef   : > { %v3882_v45 = vpop.permute.xlu1 %3881 }
 0x4f0   : > { %v4372_v2 = vsel %vm4348_vm8, %v4339_v59, %v3882_v45  ;;  %v4136_v34 = vpop.permute.xlu0 %4135  ;;  %v6480_v59 = vld [vmem:[%s12587_s7 + $0x20] sm:$0xf] }
 0x4f1   : > { %v4405_v22 = vsel %vm4381_vm9, %v4372_v2, %v4010_v42  ;;  %v4436_v18 = vsel %vm393_vm0, %v4404_v62, %v4136_v34  ;;  %5611 = vrot.lane.b32.xlu1 %v4939_v17, %s8133_s15  ;;  %v4941_v42 = vld [vmem:[#allocation3 + $0x39] sm:$0xff]  ;;  %v11121_v2 = vld [vmem:[#allocation3 + $0x30] sm:$0xff] }
 0x4f2   : > { %5481 = vrot.lane.b32.xlu0 %v11041_v1, %s8140_s21  ;;  %7922 = vmatprep.mubr.msk.f32.mxu1 %vm4462_vm10, %v4436_v18  ;;  %v4437_v38 = vsel %vm393_vm0, %v4405_v22, %v4138_v56  ;;  %12758 = vst [vmem:[#allocation57_spill] sm:$0xff] %v11121_v2 }
 0x4f3   : > { %v11047_v43 = vpop.permute.xlu1 %3253  ;;  %7923 = vmatmul.mubr.msk.f32.gmra.mrb[102].mxu1 %vm4462_vm10, %v4437_v38 }
 0x4f4   : > { %v11050_v44 = vpop.permute.xlu0 %3251 }
 0x4f5   : > { %5739 = vrot.lane.b32.xlu1 %v4971_v0, %s8141_s18  ;;  %v8087_v0 = vpack.c.bf16 %v6479_v19, %v6478_v15 }
 0x4f6   : > { %5609 = vrot.lane.b32.xlu0 %v4938_v3, %s8133_s15 }
 0x4f7   : > { %v11054_v57 = vpop.permute.xlu1 %3381  ;;  %8088 = vmatprep.subr.bf16.mxu0 %v8087_v0 }
 0x4f8   : > { %v11056_v29 = vpop.permute.xlu0 %3379  ;;  %8090 = vmatpush3.bf16.msra.mxu0 %v8087_v0 }
 0x4f9   : > { %5483 = vrot.lane.b32.xlu1 %v11058_v5, %s8140_s21  ;;  %7945 = vmatprep.subr.msk.mxu0 %vm6585_vm12, %v6480_v59 }
 0x4fa   : > { %5737 = vrot.lane.b32.xlu0 %v4970_v39, %s8141_s18 }
 0x4fb   : > { %v11063_v20 = vpop.permute.xlu1 %3633 }
 0x4fc   : > { %v11065_v23 = vpop.permute.xlu0 %3503  ;;  %7946 = vmatpush3.msk.msra.mxu0 %vm6585_vm12, %v6480_v59  ;;  %v4942_v59 = vld [vmem:[#allocation3 + $0x49] sm:$0xff] }
 0x4fd   : > { %5235 = vrot.lane.b32.xlu1 %v4941_v42, %s8130_s26 }
 0x4fe   : > { %5995 = vrot.lane.b32.xlu0 %v4941_v42, %s8142_s19 }
 0x4ff   : > { %v11069_v55 = vpop.permute.xlu1 %3761 }
 0x500   : > { %v11071_v13 = vpop.permute.xlu0 %3631 }
 0x501   : > { %5363 = vrot.lane.b32.xlu1 %v4973_v48, %s8132_s29 }
 0x502   : > { %5615 = vrot.lane.b32.xlu0 %v4941_v42, %s8133_s15 }
 0x503   : > { %v11075_v26 = vpop.permute.xlu1 %3505 }
 0x504   : > { %v11077_v56 = vpop.permute.xlu0 %3759 }
 0x505   : > { %5743 = vrot.lane.b32.xlu1 %v4973_v48, %s8141_s18 }
 0x506   : > { %v7906_v41 = vpop.f32.mrb[90].mxu1  ;;  %6123 = vrot.lane.b32.xlu0 %v4973_v48, %s8136_s17 }
 0x507   : > { %v4681_v17 = vadd.f32 %v7906_v41, %v10664_v25  ;;  %v11088_v54 = vpop.permute.xlu1 %3885  ;;  %v4675_v58 = vpop.f32.mrb[91].mxu1  ;;  %v4975_v41 = vld [vmem:[#allocation3 + $0x52] sm:$0xff] }
 0x508   : > { %v4676_v3 = vadd.f32 %v10664_v25, %v4675_v58  ;;  %v11091_v8 = vpop.permute.xlu0 %3883 }
 0x509   : > { %v4795_v10 = vmax.f32 %v4681_v17, 0.0  ;;  %5487 = vrot.lane.b32.xlu1 %v11093_v27, %s8140_s21 }
 0x50a   : > { %v4794_v50 = vmax.f32 %v4676_v3, 0.0  ;;  %5233 = vrot.lane.b32.xlu0 %v4940_v36, %s8130_s26 }
 0x50b   : > { %4883 = vst.msk [vmem:[#allocation3 + $0x99] sm:$0xff] %vm2808_vm6, %v4795_v10  ;;  %v11105_v39 = vpop.permute.xlu1 %3257 }
 0x50c   : > { %4882 = vst.msk [vmem:[#allocation3 + $0x91] sm:$0xff] %vm2808_vm6, %v4794_v50  ;;  %v11108_v51 = vpop.permute.xlu0 %3255  ;;  %v11162_v50 = vld [vmem:[#allocation3 + $0x50] sm:$0xff] }
 0x50d   : > { %5867 = vrot.lane.b32.xlu1 %v11093_v27, %s8135_s13  ;;  %12759 = vst [vmem:[#allocation4_spill] sm:$0xff] %v11162_v50  ;;  %v4211_v27 = vsel %vm2161_vm1, %v10599_v61, %v10902_v49  ;;  %v4214_v49 = vsel %vm2161_vm1, %v10721_v24, %v10975_v52 }
 0x50e   : > { %5361 = vrot.lane.b32.xlu0 %v4972_v33, %s8132_s29 }
 0x50f   : > { %v11116_v45 = vpop.permute.xlu1 %3385 }
 0x510   : > { %v11118_v62 = vpop.permute.xlu0 %3383 }
 0x511   : > { %5613 = vrot.lane.b32.xlu1 %v4940_v36, %s8133_s15 }
 0x512   : > { %5485 = vrot.lane.b32.xlu0 %v11121_v2, %s8140_s21 }
 0x513   : > { %v11125_v34 = vpop.permute.xlu1 %3637 }
 0x514   : > { %v11127_v22 = vpop.permute.xlu0 %3507 }
 0x515   : > { %6121 = vrot.lane.b32.xlu1 %v4972_v33, %s8136_s17 }
 0x516   : > { %5865 = vrot.lane.b32.xlu0 %v11121_v2, %s8135_s13 }
 0x517   : > { %v11132_v18 = vpop.permute.xlu1 %3765 }
 0x518   : > { %v11134_v38 = vpop.permute.xlu0 %3635 }
 0x519   : > { %5741 = vrot.lane.b32.xlu1 %v4972_v33, %s8141_s18 }
 0x51a   : > { %5993 = vrot.lane.b32.xlu0 %v4940_v36, %s8142_s19 }
 0x51b   : > { %v11138_v42 = vpop.permute.xlu1 %3509 }
 0x51c   : > { %v11140_v48 = vpop.permute.xlu0 %3763 }
 0x51d   : > { %5239 = vrot.lane.b32.xlu1 %v4943_v30, %s8130_s26 }
 0x51e   : > { %5999 = vrot.lane.b32.xlu0 %v4943_v30, %s8142_s19 }
 0x51f   : > { %v11144_v14 = vpop.permute.xlu1 %3889 }
 0x520   : > { %v11146_v21 = vpop.permute.xlu0 %3887 }
 0x521   : > { %5367 = vrot.lane.b32.xlu1 %v4975_v41, %s8132_s29 }
 0x522   : > { %5619 = vrot.lane.b32.xlu0 %v4943_v30, %s8133_s15 }
 0x523   : > { %v11150_v17 = vpop.permute.xlu1 %3641 }
 0x524   : > { %v11152_v58 = vpop.permute.xlu0 %3511 }
 0x525   : > { %5747 = vrot.lane.b32.xlu1 %v4975_v41, %s8141_s18 }
 0x526   : > { %v7909_v3 = vpop.f32.mrb[92].mxu1  ;;  %6127 = vrot.lane.b32.xlu0 %v4975_v41, %s8136_s17 }
 0x527   : > { %v4691_v15 = vadd.f32 %v7909_v3, %v10664_v25  ;;  %v11157_v19 = vpop.permute.xlu1 %3769  ;;  %v4685_v10 = vpop.f32.mrb[93].mxu1 }
 0x528   : > { %v4686_v36 = vadd.f32 %v10664_v25, %v4685_v10  ;;  %v11160_v0 = vpop.permute.xlu0 %3639  ;;  %v4974_v10 = vld [vmem:[#allocation3 + $0x4a] sm:$0xff] }
 0x529   : > { %v4797_v33 = vmax.f32 %v4691_v15, 0.0  ;;  %5491 = vrot.lane.b32.xlu1 %v11162_v50, %s8140_s21  ;;  %v4212_v15 = vsel %vm2161_vm1, %v10641_v32, %v10899_v63  ;;  %v4243_v32 = vsel %vm2194_vm4, %v4211_v27, %v10908_v11 }
 0x52a   : > { %v4796_v30 = vmax.f32 %v4686_v36, 0.0  ;;  %5237 = vrot.lane.b32.xlu0 %v4942_v59, %s8130_s26 }
 0x52b   : > { %4885 = vst.msk [vmem:[#allocation3 + $0xb1] sm:$0xff] %vm2808_vm6, %v4797_v33  ;;  %v11168_v41 = vpop.permute.xlu1 %3513  ;;  %v4244_v33 = vsel %vm2194_vm4, %v4212_v15, %v10906_v35  ;;  %v4275_v35 = vsel %vm2227_vm3, %v4243_v32, %v10990_v60 }
 0x52c   : > { %4884 = vst.msk [vmem:[#allocation3 + $0xa9] sm:$0xff] %vm2808_vm6, %v4796_v30  ;;  %v11171_v3 = vpop.permute.xlu0 %3767  ;;  %v4276_v30 = vsel %vm2227_vm3, %v4244_v33, %v11020_v9  ;;  %v4307_v33 = vsel %vm2271_vm5, %v4275_v35, %v10996_v53  ;;  %v4246_v53 = vsel %vm2194_vm4, %v4214_v49, %v10982_v7 }
 0x52d   : > { %5871 = vrot.lane.b32.xlu1 %v11162_v50, %s8135_s13  ;;  %v11188_v50 = vld [vmem:[#allocation3 + $0x48] sm:$0xff]  ;;  %v4308_v9 = vsel %vm2271_vm5, %v4276_v30, %v10988_v37  ;;  %v4340_v61 = vsel %vm4315_vm7, %v4307_v33, %v11000_v31  ;;  %v4278_v32 = vsel %vm2227_vm3, %v4246_v53, %v11075_v26 }
 0x52e   : > { %5365 = vrot.lane.b32.xlu0 %v4974_v10, %s8132_s29  ;;  %v4341_v11 = vsel %vm4315_vm7, %v4308_v9, %v10994_v46  ;;  %v4373_v37 = vsel %vm4348_vm8, %v4340_v61, %v11091_v8  ;;  %v4213_v46 = vsel %vm2161_vm1, %v10677_v12, %v10978_v47  ;;  %v4945_v12 = vld [vmem:[#allocation3 + $0x69] sm:$0xff] }
 0x52f   : > { %v11179_v36 = vpop.permute.xlu1 %3893  ;;  %v4374_v31 = vsel %vm4348_vm8, %v4341_v11, %v11088_v54  ;;  %v4245_v54 = vsel %vm2194_vm4, %v4213_v46, %v10984_v40  ;;  %v4216_v40 = vsel %vm2161_vm1, %v10793_v6, %v11047_v43  ;;  %v4977_v33 = vld [vmem:[#allocation3 + $0x6a] sm:$0xff] }
 0x530   : > { %v11183_v2 = vpop.permute.xlu0 %3891  ;;  %v4277_v8 = vsel %vm2227_vm3, %v4245_v54, %v11065_v23  ;;  %v4976_v54 = vld [vmem:[#allocation3 + $0x62] sm:$0xff] }
 0x531   : > { %5617 = vrot.lane.b32.xlu1 %v4942_v59, %s8133_s15  ;;  %v4309_v47 = vsel %vm2271_vm5, %v4277_v8, %v11071_v13  ;;  %v4248_v13 = vsel %vm2194_vm4, %v4216_v40, %v11054_v57  ;;  %v4215_v57 = vsel %vm2161_vm1, %v10765_v4, %v11050_v44  ;;  %v4218_v4 = vsel %vm2161_vm1, %v10859_v16, %v11105_v39 }
 0x532   : > { %5489 = vrot.lane.b32.xlu0 %v11188_v50, %s8140_s21  ;;  %v4280_v6 = vsel %vm2227_vm3, %v4248_v13, %v11138_v42 }
 0x533   : > { %v4014_v63 = vpop.permute.xlu1 %4013  ;;  %v4312_v49 = vsel %vm2271_vm5, %v4280_v6, %v11125_v34 }
 0x534   : > { %v4012_v15 = vpop.permute.xlu0 %4011  ;;  %v4407_v24 = vsel %vm4381_vm9, %v4374_v31, %v4014_v63  ;;  %v4345_v16 = vsel %vm4315_vm7, %v4312_v49, %v11132_v18  ;;  %v11299_v18 = vld [vmem:[#allocation3 + $0x68] sm:$0xff] }
 0x535   : > { %6125 = vrot.lane.b32.xlu1 %v4974_v10, %s8136_s17  ;;  %v4406_v27 = vsel %vm4381_vm9, %v4373_v37, %v4012_v15 }
 0x536   : > { %5869 = vrot.lane.b32.xlu0 %v11188_v50, %s8135_s13 }
 0x537   : > { %v4142_v60 = vpop.permute.xlu1 %4141 }
 0x538   : > { %v4140_v30 = vpop.permute.xlu0 %4139  ;;  %v4439_v7 = vsel %vm393_vm0, %v4407_v24, %v4142_v60 }
 0x539   : > { %v4438_v52 = vsel %vm393_vm0, %v4406_v27, %v4140_v30  ;;  %5745 = vrot.lane.b32.xlu1 %v4974_v10, %s8141_s18  ;;  %v4310_v10 = vsel %vm2271_vm5, %v4278_v32, %v11063_v20 }
 0x53a   : > { %5997 = vrot.lane.b32.xlu0 %v4942_v59, %s8142_s19  ;;  %7925 = vmatprep.mubr.msk.f32.mxu1 %vm4462_vm10, %v4438_v52  ;;  %v4342_v59 = vsel %vm4315_vm7, %v4309_v47, %v11077_v56  ;;  %v4343_v23 = vsel %vm4315_vm7, %v4310_v10, %v11069_v55  ;;  %v12761_v10 = vld [vmem:[#allocation54_spill] sm:$0xff] }
 0x53b   : > { %v4018_v26 = vpop.permute.xlu1 %4017  ;;  %7926 = vmatmul.mubr.msk.f32.gmra.mrb[104].mxu1 %vm4462_vm10, %v4439_v7  ;;  %v4375_v20 = vsel %vm4348_vm8, %v4342_v59, %v11146_v21  ;;  %v4376_v9 = vsel %vm4348_vm8, %v4343_v23, %v11144_v14  ;;  %v4247_v14 = vsel %vm2194_vm4, %v4215_v57, %v11056_v29  ;;  %v4250_v29 = vsel %vm2194_vm4, %v4218_v4, %v11116_v45  ;;  %v11334_v59 = vld [vmem:[#allocation3 + $0x60] sm:$0xff] }
 0x53c   : > { %v4016_v63 = vpop.permute.xlu0 %4015  ;;  %v4409_v43 = vsel %vm4381_vm9, %v4376_v9, %v4018_v26  ;;  %v4279_v61 = vsel %vm2227_vm3, %v4247_v14, %v11127_v22  ;;  %v4282_v34 = vsel %vm2227_vm3, %v4250_v29, %v11168_v41  ;;  %v4217_v45 = vsel %vm2161_vm1, %v10842_v28, %v11108_v51  ;;  %v4944_v28 = vld [vmem:[#allocation3 + $0x61] sm:$0xff]  ;;  %v11369_v14 = vld [vmem:[%s12586_s6] ss:$0 sm:$0xff] }
 0x53d   : > { %5243 = vrot.lane.b32.xlu1 %v4945_v12, %s8130_s26  ;;  %v4408_v56 = vsel %vm4381_vm9, %v4375_v20, %v4016_v63  ;;  %v4311_v44 = vsel %vm2271_vm5, %v4279_v61, %v11134_v38 }
 0x53e   : > { %6003 = vrot.lane.b32.xlu0 %v4945_v12, %s8142_s19  ;;  %v4344_v37 = vsel %vm4315_vm7, %v4311_v44, %v11140_v48  ;;  %v4378_v48 = vsel %vm4348_vm8, %v4345_v16, %v11179_v36  ;;  %v11375_v44 = vld [vmem:[#allocation3 + $0x80] sm:$0xff] }
 0x53f   : > { %v4146_v35 = vpop.permute.xlu1 %4145  ;;  %v4377_v39 = vsel %vm4348_vm8, %v4344_v37, %v11183_v2  ;;  %v4249_v2 = vsel %vm2194_vm4, %v4217_v45, %v11118_v62  ;;  %v4946_v37 = vld [vmem:[#allocation3 + $0x79] sm:$0xff] }
 0x540   : > { %v4144_v15 = vpop.permute.xlu0 %4143  ;;  %v4441_v21 = vsel %vm393_vm0, %v4409_v43, %v4146_v35  ;;  %v4281_v51 = vsel %vm2227_vm3, %v4249_v2, %v11152_v58  ;;  %v4979_v43 = vld [vmem:[#allocation3 + $0x82] sm:$0xff] }
 0x541   : > { %v4440_v55 = vsel %vm393_vm0, %v4408_v56, %v4144_v15  ;;  %5371 = vrot.lane.b32.xlu1 %v4977_v33, %s8132_s29  ;;  %v4313_v62 = vsel %vm2271_vm5, %v4281_v51, %v11160_v0  ;;  %v12760_v0 = vld [vmem:[#allocation55_spill] sm:$0xff] }
 0x542   : > { %5623 = vrot.lane.b32.xlu0 %v4945_v12, %s8133_s15  ;;  %7928 = vmatprep.mubr.msk.f32.mxu1 %vm4462_vm10, %v4440_v55  ;;  %v4346_v58 = vsel %vm4315_vm7, %v4313_v62, %v11171_v3  ;;  %v4947_v15 = vld [vmem:[#allocation3 + $0x81] sm:$0xff] }
 0x543   : > { %v4022_v42 = vpop.permute.xlu1 %4021  ;;  %7929 = vmatmul.mubr.msk.f32.gmra.mrb[106].mxu1 %vm4462_vm10, %v4441_v21  ;;  %v4379_v26 = vsel %vm4348_vm8, %v4346_v58, %v12760_v0 }
 0x544   : > { %v4020_v11 = vpop.permute.xlu0 %4019  ;;  %v4411_v30 = vsel %vm4381_vm9, %v4378_v48, %v4022_v42 }
 0x545   : > { %5751 = vrot.lane.b32.xlu1 %v4977_v33, %s8141_s18  ;;  %v4410_v31 = vsel %vm4381_vm9, %v4377_v39, %v4020_v11  ;;  %v4978_v39 = vld [vmem:[#allocation3 + $0x7a] sm:$0xff] }
 0x546   : > { %v7912_v22 = vpop.f32.mrb[94].mxu1  ;;  %6131 = vrot.lane.b32.xlu0 %v4977_v33, %s8136_s17 }
 0x547   : > { %v4701_v38 = vadd.f32 %v7912_v22, %v10664_v25  ;;  %v4150_v60 = vpop.permute.xlu1 %4149  ;;  %v4695_v53 = vpop.f32.mrb[95].mxu1 }
 0x548   : > { %v4696_v41 = vadd.f32 %v10664_v25, %v4695_v53  ;;  %v4148_v27 = vpop.permute.xlu0 %4147  ;;  %v4314_v25 = vsel %vm2271_vm5, %v4282_v34, %v11150_v17  ;;  %v4443_v36 = vsel %vm393_vm0, %v4411_v30, %v4150_v60  ;;  %v11388_v53 = vld [vmem:[#allocation3 + $0x78] sm:$0xff] }
 0x549   : > { %v4799_v32 = vmax.f32 %v4701_v38, 0.0  ;;  %v4442_v24 = vsel %vm393_vm0, %v4410_v31, %v4148_v27  ;;  %5495 = vrot.lane.b32.xlu1 %v11299_v18, %s8140_s21  ;;  %v4347_v7 = vsel %vm4315_vm7, %v4314_v25, %v11157_v19  ;;  %v4905_v27 = vld [vmem:[#allocation3 + $0x8] sm:$0xff]  ;;  %v4904_v25 = vld [vmem:[#allocation3] sm:$0xff] }
 0x54a   : > { %v4798_v52 = vmax.f32 %v4696_v41, 0.0  ;;  %5241 = vrot.lane.b32.xlu0 %v4944_v28, %s8130_s26  ;;  %7931 = vmatprep.mubr.msk.f32.mxu1 %vm4462_vm10, %v4442_v24  ;;  %v4380_v63 = vsel %vm4348_vm8, %v4347_v7, %v12761_v10  ;;  %v4949_v24 = vld [vmem:[#allocation3 + $0x99] sm:$0xff] }
 0x54b   : > { %4887 = vst.msk [vmem:[#allocation3 + $0xc9] sm:$0xff] %vm2808_vm6, %v4799_v32  ;;  %v4026_v46 = vpop.permute.xlu1 %4025  ;;  %7932 = vmatmul.mubr.msk.f32.gmra.mrb[108].mxu1 %vm4462_vm10, %v4443_v36 }
 0x54c   : > { %4886 = vst.msk [vmem:[#allocation3 + $0xc1] sm:$0xff] %vm2808_vm6, %v4798_v52  ;;  %v4024_v17 = vpop.permute.xlu0 %4023  ;;  %v4413_v47 = vsel %vm4381_vm9, %v4380_v63, %v4026_v46  ;;  %v4981_v52 = vld [vmem:[#allocation3 + $0x9a] sm:$0xff] }
 0x54d   : > { %5875 = vrot.lane.b32.xlu1 %v11299_v18, %s8135_s13  ;;  %v4412_v3 = vsel %vm4381_vm9, %v4379_v26, %v4024_v17 }
 0x54e   : > { %5369 = vrot.lane.b32.xlu0 %v4976_v54, %s8132_s29 }
 0x54f   : > { %v4154_v8 = vpop.permute.xlu1 %4153 }
 0x550   : > { %v4152_v12 = vpop.permute.xlu0 %4151  ;;  %v4445_v40 = vsel %vm393_vm0, %v4413_v47, %v4154_v8  ;;  %v11430_v47 = vld [vmem:[#allocation3 + $0x98] sm:$0xff] }
 0x551   : > { %v4444_v19 = vsel %vm393_vm0, %v4412_v3, %v4152_v12  ;;  %5621 = vrot.lane.b32.xlu1 %v4944_v28, %s8133_s15  ;;  %vm6488_vm0 = vcmask 293888  }
 0x552   : > { %5493 = vrot.lane.b32.xlu0 %v11334_v59, %s8140_s21  ;;  %7934 = vmatprep.mubr.msk.f32.mxu1 %vm4462_vm10, %v4444_v19 }
 0x553   : > { %v5228_v23 = vpop.permute.xlu1 %5227  ;;  %7935 = vmatmul.mubr.msk.f32.gmra.mrb[110].mxu1 %vm4462_vm10, %v4445_v40 }
 0x554   : > { %v11341_v20 = vpop.permute.xlu0 %5225  ;;  %v6218_v30 = vsel %vm2808_vm6, %v4905_v27, %v5228_v23  ;;  %v4951_v27 = vld [vmem:[#allocation3 + $0xb1] sm:$0xff] }
 0x555   : > { %6129 = vrot.lane.b32.xlu1 %v4976_v54, %s8136_s17  ;;  %v6217_v46 = vsel %vm2808_vm6, %v4904_v25, %v11341_v20  ;;  %v4948_v20 = vld [vmem:[#allocation3 + $0x91] sm:$0xff] }
 0x556   : > { %5873 = vrot.lane.b32.xlu0 %v11334_v59, %s8135_s13 }
 0x557   : > { %v5356_v35 = vpop.permute.xlu1 %5355 }
 0x558   : > { %v11346_v13 = vpop.permute.xlu0 %5353 }
 0x559   : > { %5749 = vrot.lane.b32.xlu1 %v4976_v54, %s8141_s18  ;;  %v6249_v54 = vsel %vm2161_vm1, %v6217_v46, %v11346_v13 }
 0x55a   : > { %6001 = vrot.lane.b32.xlu0 %v4944_v28, %s8142_s19  ;;  %v6250_v28 = vsel %vm2161_vm1, %v6218_v30, %v5356_v35 }
 0x55b   : > { %v11350_v9 = vpop.permute.xlu1 %5231 }
 0x55c   : > { %v11352_v56 = vpop.permute.xlu0 %5229 }
 0x55d   : > { %5247 = vrot.lane.b32.xlu1 %v4947_v15, %s8130_s26 }
 0x55e   : > { %6007 = vrot.lane.b32.xlu0 %v4947_v15, %s8142_s19 }
 0x55f   : > { %v11356_v33 = vpop.permute.xlu1 %5359 }
 0x560   : > { %v11358_v6 = vpop.permute.xlu0 %5357 }
 0x561   : > { %5375 = vrot.lane.b32.xlu1 %v4979_v43, %s8132_s29 }
 0x562   : > { %5627 = vrot.lane.b32.xlu0 %v4947_v15, %s8133_s15 }
 0x563   : > { %v5612_v55 = vpop.permute.xlu1 %5611 }
 0x564   : > { %v11362_v57 = vpop.permute.xlu0 %5481 }
 0x565   : > { %5755 = vrot.lane.b32.xlu1 %v4979_v43, %s8141_s18  ;;  %v6282_v19 = vsel %vm6281_vm13, %v6249_v54, %v11362_v57 }
 0x566   : > { %v7915_v21 = vpop.f32.mrb[96].mxu1  ;;  %6135 = vrot.lane.b32.xlu0 %v4979_v43, %s8136_s17 }
 0x567   : > { %v4711_v42 = vadd.f32 %v11369_v14, %v7915_v21  ;;  %v5740_v61 = vpop.permute.xlu1 %5739  ;;  %v4705_v49 = vpop.f32.mrb[97].mxu1 }
 0x568   : > { %v4706_v11 = vadd.f32 %v11369_v14, %v4705_v49  ;;  %v11373_v4 = vpop.permute.xlu0 %5609 }
 0x569   : > { %v4801_v29 = vmax.f32 %v4711_v42, 0.0  ;;  %5499 = vrot.lane.b32.xlu1 %v11375_v44, %s8140_s21  ;;  %v6314_v35 = vsel %vm2194_vm4, %v6282_v19, %v11373_v4 }
 0x56a   : > { %v4800_v22 = vmax.f32 %v4706_v11, 0.0  ;;  %5245 = vrot.lane.b32.xlu0 %v4946_v37, %s8130_s26 }
 0x56b   : > { %4889 = vst.msk [vmem:[#allocation3 + $0xe1] sm:$0xff] %vm2808_vm6, %v4801_v29  ;;  %v5484_v34 = vpop.permute.xlu1 %5483 }
 0x56c   : > { %4888 = vst.msk [vmem:[#allocation3 + $0xd9] sm:$0xff] %vm2808_vm6, %v4800_v22  ;;  %v5738_v16 = vpop.permute.xlu0 %5737  ;;  %v6283_v62 = vsel %vm6281_vm13, %v6250_v28, %v5484_v34 }
 0x56d   : > { %5879 = vrot.lane.b32.xlu1 %v11375_v44, %s8135_s13  ;;  %v6315_v7 = vsel %vm2194_vm4, %v6283_v62, %v5612_v55  ;;  %v6347_v15 = vsel %vm6346_vm14, %v6314_v35, %v5738_v16 }
 0x56e   : > { %5373 = vrot.lane.b32.xlu0 %v4978_v39, %s8132_s29  ;;  %v6348_v63 = vsel %vm6346_vm14, %v6315_v7, %v5740_v61  ;;  %v4980_v61 = vld [vmem:[#allocation3 + $0x92] sm:$0xff] }
 0x56f   : > { %v11385_v38 = vpop.permute.xlu1 %5235 }
 0x570   : > { %v5996_v60 = vpop.permute.xlu0 %5995 }
 0x571   : > { %5625 = vrot.lane.b32.xlu1 %v4946_v37, %s8133_s15 }
 0x572   : > { %5497 = vrot.lane.b32.xlu0 %v11388_v53, %s8140_s21 }
 0x573   : > { %v11392_v45 = vpop.permute.xlu1 %5363 }
 0x574   : > { %v11394_v48 = vpop.permute.xlu0 %5615 }
 0x575   : > { %6133 = vrot.lane.b32.xlu1 %v4978_v39, %s8136_s17 }
 0x576   : > { %5877 = vrot.lane.b32.xlu0 %v11388_v53, %s8135_s13 }
 0x577   : > { %v11399_v31 = vpop.permute.xlu1 %5743 }
 0x578   : > { %v6124_v41 = vpop.permute.xlu0 %6123 }
 0x579   : > { %5753 = vrot.lane.b32.xlu1 %v4978_v39, %s8141_s18 }
 0x57a   : > { %6005 = vrot.lane.b32.xlu0 %v4946_v37, %s8142_s19  ;;  %v11458_v37 = vld [vmem:[#allocation3 + $0x90] sm:$0xff] }
 0x57b   : > { %v11403_v2 = vpop.permute.xlu1 %5487 }
 0x57c   : > { %v11406_v32 = vpop.permute.xlu0 %5233 }
 0x57d   : > { %5251 = vrot.lane.b32.xlu1 %v4949_v24, %s8130_s26 }
 0x57e   : > { %6011 = vrot.lane.b32.xlu0 %v4949_v24, %s8142_s19 }
 0x57f   : > { %v5868_v51 = vpop.permute.xlu1 %5867 }
 0x580   : > { %v11411_v36 = vpop.permute.xlu0 %5361  ;;  %v6380_v40 = vsel %vm2227_vm3, %v6348_v63, %v5868_v51  ;;  %v4983_v51 = vld [vmem:[#allocation3 + $0xb2] sm:$0xff]  ;;  %v4950_v63 = vld [vmem:[#allocation3 + $0xa9] sm:$0xff] }
 0x581   : > { %5379 = vrot.lane.b32.xlu1 %v4981_v52, %s8132_s29  ;;  %v6413_v55 = vsel %vm6411_vm15, %v6380_v40, %v5996_v60 }
 0x582   : > { %5631 = vrot.lane.b32.xlu0 %v4949_v24, %s8133_s15  ;;  %v6445_v11 = vsel %vm2271_vm5, %v6413_v55, %v6124_v41  ;;  %v6220_v24 = vsel %vm2808_vm6, %v11058_v5, %v11350_v9  ;;  %v6219_v5 = vsel %vm2808_vm6, %v11041_v1, %v11352_v56  ;;  %v11536_v55 = vld [vmem:[#allocation3 + $0xa8] sm:$0xff] }
 0x583   : > { %v11418_v58 = vpop.permute.xlu1 %5613  ;;  %v6252_v25 = vsel %vm2161_vm1, %v6220_v24, %v11356_v33  ;;  %v6251_v33 = vsel %vm2161_vm1, %v6219_v5, %v11358_v6  ;;  %12763 = vst [vmem:[#allocation5_spill] sm:$0xff] %v11536_v55 }
 0x584   : > { %v11420_v17 = vpop.permute.xlu0 %5485 }
 0x585   : > { %5759 = vrot.lane.b32.xlu1 %v4981_v52, %s8141_s18 }
 0x586   : > { %v7918_v0 = vpop.f32.mrb[98].mxu1  ;;  %6139 = vrot.lane.b32.xlu0 %v4981_v52, %s8136_s17  ;;  %v6285_v52 = vsel %vm6281_vm13, %v6252_v25, %v11403_v2  ;;  %v6284_v2 = vsel %vm6281_vm13, %v6251_v33, %v11420_v17 }
 0x587   : > { %v4721_v26 = vadd.f32 %v11369_v14, %v7918_v0  ;;  %v6122_v8 = vpop.permute.xlu1 %6121  ;;  %v4715_v10 = vpop.f32.mrb[99].mxu1  ;;  %v6317_v9 = vsel %vm2194_vm4, %v6285_v52, %v11394_v48  ;;  %v6316_v17 = vsel %vm2194_vm4, %v6284_v2, %v11418_v58  ;;  %v4982_v58 = vld [vmem:[#allocation3 + $0xaa] sm:$0xff]  ;;  %v4952_v52 = vld [vmem:[#allocation3 + $0xc1] sm:$0xff] }
 0x588   : > { %v4716_v3 = vadd.f32 %v11369_v14, %v4715_v10  ;;  %v5866_v12 = vpop.permute.xlu0 %5865  ;;  %v6350_v1 = vsel %vm6346_vm14, %v6317_v9, %v11399_v31 }
 0x589   : > { %v4803_v23 = vmax.f32 %v4721_v26, 0.0  ;;  %5503 = vrot.lane.b32.xlu1 %v11430_v47, %s8140_s21  ;;  %v6379_v57 = vsel %vm2227_vm3, %v6347_v15, %v5866_v12 }
 0x58a   : > { %v4802_v13 = vmax.f32 %v4716_v3, 0.0  ;;  %5249 = vrot.lane.b32.xlu0 %v4948_v20, %s8130_s26 }
 0x58b   : > { %4891 = vst.msk [vmem:[#allocation3 + $0xf9] sm:$0xff] %vm2808_vm6, %v4803_v23  ;;  %v11442_v43 = vpop.permute.xlu1 %5741 }
 0x58c   : > { %4890 = vst.msk [vmem:[#allocation3 + $0xf1] sm:$0xff] %vm2808_vm6, %v4802_v13  ;;  %v5994_v21 = vpop.permute.xlu0 %5993  ;;  %v6349_v31 = vsel %vm6346_vm14, %v6316_v17, %v11442_v43 }
 0x58d   : > { %v6412_v42 = vsel %vm6411_vm15, %v6379_v57, %v5994_v21  ;;  %5883 = vrot.lane.b32.xlu1 %v11430_v47, %s8135_s13 }
 0x58e   : > { %5377 = vrot.lane.b32.xlu0 %v4980_v61, %s8132_s29  ;;  %v6444_v49 = vsel %vm2271_vm5, %v6412_v42, %v6122_v8  ;;  %v11509_v8 = vld [vmem:[#allocation3 + $0xb0] sm:$0xff] }
 0x58f   : > { %v11453_v4 = vpop.permute.xlu1 %5239  ;;  %7947 = vmatprep.mubr.msk.f32.mxu0 %vm6488_vm0, %v6444_v49  ;;  %12762 = vst [vmem:[#allocation58_spill] sm:$0xff] %v11509_v8 }
 0x590   : > { %7948 = vmatmul.mubr.msk.f32.vlgmr.msra.gmra.mrb[80].mxu0 %vm6488_vm0, %v6445_v11  ;;  %v6000_v29 = vpop.permute.xlu0 %5999 }
 0x591   : > { %5629 = vrot.lane.b32.xlu1 %v4948_v20, %s8133_s15 }
 0x592   : > { %5501 = vrot.lane.b32.xlu0 %v11458_v37, %s8140_s21 }
 0x593   : > { %v11462_v22 = vpop.permute.xlu1 %5367 }
 0x594   : > { %v11464_v34 = vpop.permute.xlu0 %5619 }
 0x595   : > { %6137 = vrot.lane.b32.xlu1 %v4980_v61, %s8136_s17 }
 0x596   : > { %5881 = vrot.lane.b32.xlu0 %v11458_v37, %s8135_s13 }
 0x597   : > { %v11469_v16 = vpop.permute.xlu1 %5747 }
 0x598   : > { %v6128_v39 = vpop.permute.xlu0 %6127 }
 0x599   : > { %5757 = vrot.lane.b32.xlu1 %v4980_v61, %s8141_s18 }
 0x59a   : > { %6009 = vrot.lane.b32.xlu0 %v4948_v20, %s8142_s19 }
 0x59b   : > { %v11473_v60 = vpop.permute.xlu1 %5491 }
 0x59c   : > { %v11475_v41 = vpop.permute.xlu0 %5237 }
 0x59d   : > { %5255 = vrot.lane.b32.xlu1 %v4951_v27, %s8130_s26 }
 0x59e   : > { %6015 = vrot.lane.b32.xlu0 %v4951_v27, %s8142_s19 }
 0x59f   : > { %v5872_v30 = vpop.permute.xlu1 %5871 }
 0x5a0   : > { %v11482_v28 = vpop.permute.xlu0 %5365  ;;  %v6382_v6 = vsel %vm2227_vm3, %v6350_v1, %v5872_v30 }
 0x5a1   : > { %5383 = vrot.lane.b32.xlu1 %v4983_v51, %s8132_s29  ;;  %v6415_v19 = vsel %vm6411_vm15, %v6382_v6, %v6000_v29  ;;  %v11555_v29 = vld [vmem:[#allocation3 + $0xc9] sm:$0xff] }
 0x5a2   : > { %5635 = vrot.lane.b32.xlu0 %v4951_v27, %s8133_s15  ;;  %v6447_v15 = vsel %vm2271_vm5, %v6415_v19, %v6128_v39  ;;  %v12764_v27 = vld [vmem:[#allocation56_spill] sm:$0xff] }
 0x5a3   : > { %v11490_v62 = vpop.permute.xlu1 %5617  ;;  %v6222_v30 = vsel %vm2808_vm6, %v12764_v27, %v11385_v38  ;;  %v11579_v38 = vld [vmem:[#allocation3 + $0xc8] sm:$0xff] }
 0x5a4   : > { %v11492_v46 = vpop.permute.xlu0 %5489  ;;  %v6254_v25 = vsel %vm2161_vm1, %v6222_v30, %v11392_v45  ;;  %12765 = vst [vmem:[#allocation59_spill] sm:$0xff] %v11579_v38  ;;  %v11644_v30 = vld [vmem:[#allocation3 + $0xe2] sm:$0xff] }
 0x5a5   : > { %5763 = vrot.lane.b32.xlu1 %v4983_v51, %s8141_s18  ;;  %v6287_v5 = vsel %vm6281_vm13, %v6254_v25, %v11473_v60  ;;  %v11648_v25 = vld [vmem:[#allocation3 + $0xda] sm:$0xff] }
 0x5a6   : > { %v7921_v7 = vpop.f32.mrb[100].mxu1  ;;  %6143 = vrot.lane.b32.xlu0 %v4983_v51, %s8136_s17  ;;  %v11566_v51 = vld [vmem:[#allocation3 + $0xca] sm:$0xff]  ;;  %v6319_v45 = vsel %vm2194_vm4, %v6287_v5, %v11464_v34 }
 0x5a7   : > { %v4731_v54 = vadd.f32 %v11369_v14, %v7921_v7  ;;  %v6126_v0 = vpop.permute.xlu1 %6125  ;;  %v4725_v26 = vpop.f32.mrb[101].mxu1  ;;  %v12766_v7 = vld [vmem:[#allocation57_spill] sm:$0xff]  ;;  %v6352_v34 = vsel %vm6346_vm14, %v6319_v45, %v11469_v16 }
 0x5a8   : > { %v4726_v56 = vadd.f32 %v11369_v14, %v4725_v26  ;;  %v5870_v48 = vpop.permute.xlu0 %5869  ;;  %v6221_v2 = vsel %vm2808_vm6, %v12766_v7, %v11406_v32  ;;  %v11656_v7 = vld [vmem:[#allocation3 + $0xe0] sm:$0xff] }
 0x5a9   : > { %v4805_v10 = vmax.f32 %v4731_v54, 0.0  ;;  %5507 = vrot.lane.b32.xlu1 %v11509_v8, %s8140_s21  ;;  %v6381_v40 = vsel %vm2227_vm3, %v6349_v31, %v5870_v48  ;;  %v11588_v54 = vld [vmem:[#allocation3 + $0xc2] sm:$0xff]  ;;  %v6253_v60 = vsel %vm2161_vm1, %v6221_v2, %v11411_v36  ;;  %v11660_v2 = vld [vmem:[#allocation3 + $0xd8] sm:$0xff] }
 0x5aa   : > { %v4804_v3 = vmax.f32 %v4726_v56, 0.0  ;;  %5253 = vrot.lane.b32.xlu0 %v4950_v63, %s8130_s26  ;;  %v6286_v26 = vsel %vm6281_vm13, %v6253_v60, %v11492_v46  ;;  %v12768_v60 = vld [vmem:[#allocation4_spill] sm:$0xff] }
 0x5ab   : > { %4893 = vst.msk [vmem:[#allocation3 + $0x111] sm:$0xff] %vm2808_vm6, %v4805_v10  ;;  %v11520_v12 = vpop.permute.xlu1 %5745  ;;  %v6318_v46 = vsel %vm2194_vm4, %v6286_v26, %v11490_v62 }
 0x5ac   : > { %4892 = vst.msk [vmem:[#allocation3 + $0x109] sm:$0xff] %vm2808_vm6, %v4804_v3  ;;  %v5998_v23 = vpop.permute.xlu0 %5997  ;;  %v6351_v16 = vsel %vm6346_vm14, %v6318_v46, %v11520_v12 }
 0x5ad   : > { %v6414_v20 = vsel %vm6411_vm15, %v6381_v40, %v5998_v23  ;;  %5887 = vrot.lane.b32.xlu1 %v11509_v8, %s8135_s13 }
 0x5ae   : > { %5381 = vrot.lane.b32.xlu0 %v4982_v58, %s8132_s29  ;;  %v6446_v35 = vsel %vm2271_vm5, %v6414_v20, %v6126_v0 }
 0x5af   : > { %v11530_v13 = vpop.permute.xlu1 %5243  ;;  %7950 = vmatprep.mubr.msk.f32.mxu0 %vm6488_vm0, %v6446_v35 }
 0x5b0   : > { %7951 = vmatmul.mubr.msk.f32.gmra.mrb[82].mxu0 %vm6488_vm0, %v6447_v15  ;;  %v6004_v43 = vpop.permute.xlu0 %6003 }
 0x5b1   : > { %5633 = vrot.lane.b32.xlu1 %v4950_v63, %s8133_s15 }
 0x5b2   : > { %5505 = vrot.lane.b32.xlu0 %v11536_v55, %s8140_s21 }
 0x5b3   : > { %v11540_v57 = vpop.permute.xlu1 %5371 }
 0x5b4   : > { %v11542_v21 = vpop.permute.xlu0 %5623 }
 0x5b5   : > { %6141 = vrot.lane.b32.xlu1 %v4982_v58, %s8136_s17 }
 0x5b6   : > { %5885 = vrot.lane.b32.xlu0 %v11536_v55, %s8135_s13 }
 0x5b7   : > { %v11547_v42 = vpop.permute.xlu1 %5751 }
 0x5b8   : > { %v6132_v61 = vpop.permute.xlu0 %6131 }
 0x5b9   : > { %5761 = vrot.lane.b32.xlu1 %v4982_v58, %s8141_s18 }
 0x5ba   : > { %6013 = vrot.lane.b32.xlu0 %v4950_v63, %s8142_s19  ;;  %v11603_v63 = vld [vmem:[#allocation3 + $0xc0] sm:$0xff] }
 0x5bb   : > { %v11551_v49 = vpop.permute.xlu1 %5495  ;;  %12767 = vst [vmem:[#allocation60_spill] sm:$0xff] %v11603_v63 }
 0x5bc   : > { %v11553_v11 = vpop.permute.xlu0 %5241 }
 0x5bd   : > { %5259 = vrot.lane.b32.xlu1 %v11555_v29, %s8130_s26 }
 0x5be   : > { %6019 = vrot.lane.b32.xlu0 %v11555_v29, %s8142_s19 }
 0x5bf   : > { %v5876_v39 = vpop.permute.xlu1 %5875 }
 0x5c0   : > { %v11564_v24 = vpop.permute.xlu0 %5369  ;;  %v6384_v10 = vsel %vm2227_vm3, %v6352_v34, %v5876_v39  ;;  %v11638_v39 = vld [vmem:[#allocation3 + $0xd9] sm:$0xff] }
 0x5c1   : > { %5387 = vrot.lane.b32.xlu1 %v11566_v51, %s8132_s29  ;;  %v6417_v31 = vsel %vm6411_vm15, %v6384_v10, %v6004_v43  ;;  %v11634_v43 = vld [vmem:[#allocation3 + $0xe1] sm:$0xff] }
 0x5c2   : > { %5257 = vrot.lane.b32.xlu0 %v4952_v52, %s8130_s26  ;;  %v6449_v20 = vsel %vm2271_vm5, %v6417_v31, %v6132_v61  ;;  %v11709_v31 = vld [vmem:[#allocation3 + $0xf0] sm:$0xff] }
 0x5c3   : > { %v11575_v9 = vpop.permute.xlu1 %5621 }
 0x5c4   : > { %v11577_v33 = vpop.permute.xlu0 %5493 }
 0x5c5   : > { %5511 = vrot.lane.b32.xlu1 %v11579_v38, %s8140_s21 }
 0x5c6   : > { %v7924_v0 = vpop.f32.mrb[102].mxu1  ;;  %5385 = vrot.lane.b32.xlu0 %v11588_v54, %s8132_s29 }
 0x5c7   : > { %v4741_v32 = vadd.f32 %v11369_v14, %v7924_v0  ;;  %v6130_v1 = vpop.permute.xlu1 %6129  ;;  %v4735_v56 = vpop.f32.mrb[103].mxu1  ;;  %v6224_v0 = vsel %vm2808_vm6, %v12768_v60, %v11453_v4 }
 0x5c8   : > { %v4736_v48 = vadd.f32 %v11369_v14, %v4735_v56  ;;  %v5874_v6 = vpop.permute.xlu0 %5873  ;;  %v11675_v56 = vld [vmem:[#allocation3 + $0xf1] sm:$0xff] }
 0x5c9   : > { %v4807_v36 = vmax.f32 %v4741_v32, 0.0  ;;  %5891 = vrot.lane.b32.xlu1 %v11579_v38, %s8135_s13  ;;  %v6383_v19 = vsel %vm2227_vm3, %v6351_v16, %v5874_v6  ;;  %v11669_v32 = vld [vmem:[#allocation3 + $0xf9] sm:$0xff] }
 0x5ca   : > { %v4806_v17 = vmax.f32 %v4736_v48, 0.0  ;;  %5509 = vrot.lane.b32.xlu0 %v11603_v63, %s8140_s21  ;;  %v11685_v6 = vld [vmem:[#allocation3 + $0xfa] sm:$0xff] }
 0x5cb   : > { %4895 = vst.msk [vmem:[#allocation3 + $0x129] sm:$0xff] %vm2808_vm6, %v4807_v36  ;;  %v11612_v3 = vpop.permute.xlu1 %5749 }
 0x5cc   : > { %4894 = vst.msk [vmem:[#allocation3 + $0x121] sm:$0xff] %vm2808_vm6, %v4806_v17  ;;  %v6002_v40 = vpop.permute.xlu0 %6001 }
 0x5cd   : > { %v6416_v62 = vsel %vm6411_vm15, %v6383_v19, %v6002_v40  ;;  %5637 = vrot.lane.b32.xlu1 %v4952_v52, %s8133_s15 }
 0x5ce   : > { %5889 = vrot.lane.b32.xlu0 %v11603_v63, %s8135_s13  ;;  %v6448_v12 = vsel %vm2271_vm5, %v6416_v62, %v6130_v1  ;;  %v6256_v1 = vsel %vm2161_vm1, %v6224_v0, %v11462_v22  ;;  %v6223_v22 = vsel %vm2808_vm6, %v11188_v50, %v11475_v41  ;;  %v11734_v0 = vld [vmem:[#allocation3 + $0x112] sm:$0xff]  ;;  %v6225_v63 = vsel %vm2808_vm6, %v11334_v59, %v11553_v11 }
 0x5cf   : > { %v11622_v23 = vpop.permute.xlu1 %5247  ;;  %7953 = vmatprep.mubr.msk.f32.mxu0 %vm6488_vm0, %v6448_v12  ;;  %v6289_v34 = vsel %vm6281_vm13, %v6256_v1, %v11551_v49  ;;  %v11694_v49 = vld [vmem:[#allocation3 + $0xf2] sm:$0xff]  ;;  %v6255_v36 = vsel %vm2161_vm1, %v6223_v22, %v11482_v28  ;;  %v11738_v1 = vld [vmem:[#allocation3 + $0x10a] sm:$0xff] }
 0x5d0   : > { %7954 = vmatmul.mubr.msk.f32.gmra.mrb[84].mxu0 %vm6488_vm0, %v6449_v20  ;;  %v6008_v58 = vpop.permute.xlu0 %6007  ;;  %v6321_v10 = vsel %vm2194_vm4, %v6289_v34, %v11542_v21  ;;  %v6288_v46 = vsel %vm6281_vm13, %v6255_v36, %v11577_v33  ;;  %v11704_v21 = vld [vmem:[#allocation3 + $0xf8] sm:$0xff] }
 0x5d1   : > { %6145 = vrot.lane.b32.xlu1 %v11588_v54, %s8136_s17  ;;  %v6354_v50 = vsel %vm6346_vm14, %v6321_v10, %v11547_v42  ;;  %v6320_v28 = vsel %vm2194_vm4, %v6288_v46, %v11575_v9  ;;  %v11719_v12 = vld [vmem:[#allocation3 + $0x111] sm:$0xff]  ;;  %v11724_v9 = vld [vmem:[#allocation3 + $0x109] sm:$0xff] }
 0x5d2   : > { %6017 = vrot.lane.b32.xlu0 %v4952_v52, %s8142_s19  ;;  %v6353_v33 = vsel %vm6346_vm14, %v6320_v28, %v11612_v3  ;;  %v11746_v10 = vld [vmem:[#allocation3 + $0x110] sm:$0xff] }
 0x5d3   : > { %v11630_v35 = vpop.permute.xlu1 %5375  ;;  %v11768_v28 = vld [vmem:[#allocation3 + $0x12a] sm:$0xff] }
 0x5d4   : > { %v11632_v15 = vpop.permute.xlu0 %5627 }
 0x5d5   : > { %5263 = vrot.lane.b32.xlu1 %v11634_v43, %s8130_s26 }
 0x5d6   : > { %5261 = vrot.lane.b32.xlu0 %v11638_v39, %s8130_s26 }
 0x5d7   : > { %v11642_v61 = vpop.permute.xlu1 %5755 }
 0x5d8   : > { %v6136_v27 = vpop.permute.xlu0 %6135 }
 0x5d9   : > { %5391 = vrot.lane.b32.xlu1 %v11644_v30, %s8132_s29 }
 0x5da   : > { %5389 = vrot.lane.b32.xlu0 %v11648_v25, %s8132_s29 }
 0x5db   : > { %v11652_v52 = vpop.permute.xlu1 %5499 }
 0x5dc   : > { %v11654_v5 = vpop.permute.xlu0 %5245 }
 0x5dd   : > { %5515 = vrot.lane.b32.xlu1 %v11656_v7, %s8140_s21 }
 0x5de   : > { %5513 = vrot.lane.b32.xlu0 %v11660_v2, %s8140_s21 }
 0x5df   : > { %v5880_v45 = vpop.permute.xlu1 %5879 }
 0x5e0   : > { %v11667_v26 = vpop.permute.xlu0 %5373  ;;  %v6386_v16 = vsel %vm2227_vm3, %v6354_v50, %v5880_v45  ;;  %v11760_v50 = vld [vmem:[#allocation3 + $0x121] sm:$0xff] }
 0x5e1   : > { %5267 = vrot.lane.b32.xlu1 %v11669_v32, %s8130_s26  ;;  %v6419_v19 = vsel %vm6411_vm15, %v6386_v16, %v6008_v58 }
 0x5e2   : > { %5265 = vrot.lane.b32.xlu0 %v11675_v56, %s8130_s26  ;;  %v6451_v58 = vsel %vm2271_vm5, %v6419_v19, %v6136_v27  ;;  %v11750_v27 = vld [vmem:[#allocation3 + $0x108] sm:$0xff] }
 0x5e3   : > { %v11681_v48 = vpop.permute.xlu1 %5625 }
 0x5e4   : > { %v11683_v4 = vpop.permute.xlu0 %5497 }
 0x5e5   : > { %5395 = vrot.lane.b32.xlu1 %v11685_v6, %s8132_s29 }
 0x5e6   : > { %5393 = vrot.lane.b32.xlu0 %v11694_v49, %s8132_s29 }
 0x5e7   : > { %v6134_v17 = vpop.permute.xlu1 %6133 }
 0x5e8   : > { %v5878_v41 = vpop.permute.xlu0 %5877 }
 0x5e9   : > { %5519 = vrot.lane.b32.xlu1 %v11704_v21, %s8140_s21  ;;  %v6385_v40 = vsel %vm2227_vm3, %v6353_v33, %v5878_v41  ;;  %v11772_v33 = vld [vmem:[#allocation3 + $0x122] sm:$0xff] }
 0x5ea   : > { %5517 = vrot.lane.b32.xlu0 %v11709_v31, %s8140_s21 }
 0x5eb   : > { %v5754_v42 = vpop.permute.xlu1 %5753 }
 0x5ec   : > { %v6006_v62 = vpop.permute.xlu0 %6005 }
 0x5ed   : > { %v6418_v20 = vsel %vm6411_vm15, %v6385_v40, %v6006_v62  ;;  %5271 = vrot.lane.b32.xlu1 %v11719_v12, %s8130_s26  ;;  %v6226_v40 = vsel %vm2808_vm6, %v11299_v18, %v11530_v13  ;;  %v6257_v18 = vsel %vm2161_vm1, %v6225_v63, %v11564_v24 }
 0x5ee   : > { %5269 = vrot.lane.b32.xlu0 %v11724_v9, %s8130_s26  ;;  %v6450_v3 = vsel %vm2271_vm5, %v6418_v20, %v6134_v17  ;;  %v11756_v17 = vld [vmem:[#allocation3 + $0x129] sm:$0xff]  ;;  %v6258_v20 = vsel %vm2161_vm1, %v6226_v40, %v11540_v57  ;;  %v6290_v13 = vsel %vm6281_vm13, %v6257_v18, %v11683_v4 }
 0x5ef   : > { %v11729_v45 = vpop.permute.xlu1 %5251  ;;  %7956 = vmatprep.mubr.msk.f32.mxu0 %vm6488_vm0, %v6450_v3  ;;  %v6291_v3 = vsel %vm6281_vm13, %v6258_v20, %v11652_v52  ;;  %v6322_v55 = vsel %vm2194_vm4, %v6290_v13, %v11681_v48 }
 0x5f0   : > { %7957 = vmatmul.mubr.msk.f32.gmra.mrb[86].mxu0 %vm6488_vm0, %v6451_v58  ;;  %v6012_v60 = vpop.permute.xlu0 %6011  ;;  %v6323_v8 = vsel %vm2194_vm4, %v6291_v3, %v11632_v15  ;;  %v6355_v59 = vsel %vm6346_vm14, %v6322_v55, %v5754_v42 }
 0x5f1   : > { %5399 = vrot.lane.b32.xlu1 %v11734_v0, %s8132_s29  ;;  %v6356_v52 = vsel %vm6346_vm14, %v6323_v8, %v11642_v61 }
 0x5f2   : > { %5397 = vrot.lane.b32.xlu0 %v11738_v1, %s8132_s29 }
 0x5f3   : > { %v11742_v34 = vpop.permute.xlu1 %5379 }
 0x5f4   : > { %v11744_v22 = vpop.permute.xlu0 %5631 }
 0x5f5   : > { %5523 = vrot.lane.b32.xlu1 %v11746_v10, %s8140_s21 }
 0x5f6   : > { %5521 = vrot.lane.b32.xlu0 %v11750_v27, %s8140_s21 }
 0x5f7   : > { %v11754_v36 = vpop.permute.xlu1 %5759 }
 0x5f8   : > { %v6140_v46 = vpop.permute.xlu0 %6139 }
 0x5f9   : > { %5275 = vrot.lane.b32.xlu1 %v11756_v17, %s8130_s26 }
 0x5fa   : > { %5273 = vrot.lane.b32.xlu0 %v11760_v50, %s8130_s26 }
 0x5fb   : > { %v11764_v41 = vpop.permute.xlu1 %5503 }
 0x5fc   : > { %v11766_v16 = vpop.permute.xlu0 %5249 }
 0x5fd   : > { %5403 = vrot.lane.b32.xlu1 %v11768_v28, %s8132_s29 }
 0x5fe   : > { %5401 = vrot.lane.b32.xlu0 %v11772_v33, %s8132_s29 }
 0x5ff   : > { %v5884_v19 = vpop.permute.xlu1 %5883 }
 0x600   : > { %v11779_v62 = vpop.permute.xlu0 %5377  ;;  %v6388_v20 = vsel %vm2227_vm3, %v6356_v52, %v5884_v19 }
 0x601   : > { %v6421_v15 = vsel %vm6411_vm15, %v6388_v20, %v6012_v60 }
 0x602   : > { %v6453_v55 = vsel %vm2271_vm5, %v6421_v15, %v6140_v46 }
 0x603   : > { %v11785_v58 = vpop.permute.xlu1 %5629 }
 0x604   : > { %v11787_v38 = vpop.permute.xlu0 %5501 }
 0x607   : > { %v6138_v57 = vpop.permute.xlu1 %6137 }
 0x608   : > { %v5882_v40 = vpop.permute.xlu0 %5881 }
 0x609   : > { %v6387_v24 = vsel %vm2227_vm3, %v6355_v59, %v5882_v40 }
 0x60b   : > { %v11804_v11 = vpop.permute.xlu1 %5757 }
 0x60c   : > { %v6010_v63 = vpop.permute.xlu0 %6009 }
 0x60d   : > { %v6420_v4 = vsel %vm6411_vm15, %v6387_v24, %v6010_v63 }
 0x60e   : > { %v7927_v3 = vpop.f32.mrb[104].mxu1  ;;  %v6452_v8 = vsel %vm2271_vm5, %v6420_v4, %v6138_v57 }
 0x60f   : > { %v4751_v61 = vadd.f32 %v11369_v14, %v7927_v3  ;;  %v11811_v19 = vpop.permute.xlu1 %5255  ;;  %v4745_v18 = vpop.f32.mrb[105].mxu1  ;;  %7959 = vmatprep.mubr.msk.f32.mxu0 %vm6488_vm0, %v6452_v8 }
 0x610   : > { %12769 = vst [vmem:[#allocation61_spill] sm:$0xff] %v11811_v19  ;;  %v4746_v48 = vadd.f32 %v11369_v14, %v4745_v18  ;;  %7960 = vmatmul.mubr.msk.f32.gmra.mrb[88].mxu0 %vm6488_vm0, %v6453_v55  ;;  %v11817_v42 = vpop.permute.xlu0 %6015 }
 0x611   : > { %v4809_v60 = vmax.f32 %v4751_v61, 0.0 }
 0x612   : > { %v4808_v13 = vmax.f32 %v4746_v48, 0.0 }
 0x613   : > { %4897 = vst.msk [vmem:[#allocation3 + $0x141] sm:$0xff] %vm2808_vm6, %v4809_v60  ;;  %v11820_v57 = vpop.permute.xlu1 %5383 }
 0x614   : > { %12770 = vst [vmem:[#allocation6_spill] sm:$0xff] %v11820_v57  ;;  %4896 = vst.msk [vmem:[#allocation3 + $0x139] sm:$0xff] %vm2808_vm6, %v4808_v13  ;;  %v11823_v52 = vpop.permute.xlu0 %5635 }
 0x616   : > { %v7930_v40 = vpop.f32.mrb[106].mxu1 }
 0x617   : > { %v4761_v20 = vadd.f32 %v11369_v14, %v7930_v40  ;;  %v11826_v46 = vpop.permute.xlu1 %5763  ;;  %v4755_v59 = vpop.f32.mrb[107].mxu1 }
 0x618   : > { %v4756_v15 = vadd.f32 %v11369_v14, %v4755_v59  ;;  %v11829_v24 = vpop.permute.xlu0 %6143  ;;  %v6228_v59 = vsel %vm2808_vm6, %v11375_v44, %v11622_v23 }
 0x619   : > { %v4811_v63 = vmax.f32 %v4761_v20, 0.0 }
 0x61a   : > { %v4810_v4 = vmax.f32 %v4756_v15, 0.0  ;;  %v11831_v3 = vld [vmem:[#allocation3 + $0x141] sm:$0xff] }
 0x61b   : > { %4899 = vst.msk [vmem:[#allocation3 + $0x159] sm:$0xff] %vm2808_vm6, %v4811_v63  ;;  %v11834_v8 = vpop.permute.xlu1 %5507  ;;  %5279 = vrot.lane.b32.xlu1 %v11831_v3, %s8130_s26  ;;  %v11838_v61 = vld [vmem:[#allocation3 + $0x139] sm:$0xff]  ;;  %v11845_v48 = vld [vmem:[#allocation3 + $0x142] sm:$0xff] }
 0x61c   : > { %4898 = vst.msk [vmem:[#allocation3 + $0x151] sm:$0xff] %vm2808_vm6, %v4810_v4  ;;  %5277 = vrot.lane.b32.xlu0 %v11838_v61, %s8130_s26  ;;  %v11843_v18 = vpop.permute.xlu0 %5253  ;;  %v11850_v20 = vld [vmem:[#allocation3 + $0x13a] sm:$0xff]  ;;  %v6260_v4 = vsel %vm2161_vm1, %v6228_v59, %v11630_v35 }
 0x61d   : > { %12771 = vst [vmem:[#allocation62_spill] sm:$0xff] %v11843_v18  ;;  %v6293_v57 = vsel %vm6281_vm13, %v6260_v4, %v11764_v41  ;;  %v6227_v41 = vsel %vm2808_vm6, %v11388_v53, %v11654_v5 }
 0x61e   : > { %v7933_v55 = vpop.f32.mrb[108].mxu1 }
 0x61f   : > { %v4771_v60 = vadd.f32 %v11369_v14, %v7933_v55  ;;  %v5888_v13 = vpop.permute.xlu1 %5887  ;;  %5407 = vrot.lane.b32.xlu1 %v11845_v48, %s8132_s29  ;;  %v4765_v40 = vpop.f32.mrb[109].mxu1 }
 0x620   : > { %v4766_v15 = vadd.f32 %v11369_v14, %v4765_v40  ;;  %5405 = vrot.lane.b32.xlu0 %v11850_v20, %s8132_s29  ;;  %v11858_v63 = vpop.permute.xlu0 %5381  ;;  %v6259_v40 = vsel %vm2161_vm1, %v6227_v41, %v11667_v26 }
 0x621   : > { %v4813_v55 = vmax.f32 %v4771_v60, 0.0  ;;  %v6325_v60 = vsel %vm2194_vm4, %v6293_v57, %v11744_v22 }
 0x622   : > { %v4812_v19 = vmax.f32 %v4766_v15, 0.0  ;;  %v11864_v18 = vld [vmem:[#allocation3 + $0x159] sm:$0xff]  ;;  %v6358_v5 = vsel %vm6346_vm14, %v6325_v60, %v11754_v36 }
 0x623   : > { %12772 = vst [vmem:[#allocation7_spill] sm:$0xff] %v11864_v18  ;;  %4901 = vst.msk [vmem:[#allocation3 + $0x171] sm:$0xff] %vm2808_vm6, %v4813_v55  ;;  %v11867_v44 = vpop.permute.xlu1 %5633  ;;  %5283 = vrot.lane.b32.xlu1 %v11864_v18, %s8130_s26  ;;  %v11871_v23 = vld [vmem:[#allocation3 + $0x151] sm:$0xff]  ;;  %v11883_v15 = vld [vmem:[#allocation3 + $0x15a] sm:$0xff] }
 0x624   : > { %4900 = vst.msk [vmem:[#allocation3 + $0x169] sm:$0xff] %vm2808_vm6, %v4812_v19  ;;  %5281 = vrot.lane.b32.xlu0 %v11871_v23, %s8130_s26  ;;  %v5506_v35 = vpop.permute.xlu0 %5505  ;;  %12773 = vst [vmem:[#allocation63_spill] sm:$0xff] %v11883_v15  ;;  %v6292_v19 = vsel %vm6281_vm13, %v6259_v40, %v11787_v38  ;;  %v11890_v53 = vld [vmem:[#allocation3 + $0x152] sm:$0xff]  ;;  %v6390_v38 = vsel %vm2227_vm3, %v6358_v5, %v5888_v13 }
 0x625   : > { %v6324_v41 = vsel %vm2194_vm4, %v6292_v19, %v11785_v58 }
 0x626   : > { %v7936_v59 = vpop.f32.mrb[110].mxu1 }
 0x627   : > { %v4781_v4 = vadd.f32 %v11369_v14, %v7936_v59  ;;  %v6142_v55 = vpop.permute.xlu1 %6141  ;;  %5411 = vrot.lane.b32.xlu1 %v11883_v15, %s8132_s29  ;;  %v4775_v18 = vpop.f32.mrb[111].mxu1  ;;  %v6357_v15 = vsel %vm6346_vm14, %v6324_v41, %v11804_v11 }
 0x628   : > { %v4776_v26 = vadd.f32 %v11369_v14, %v4775_v18  ;;  %5409 = vrot.lane.b32.xlu0 %v11890_v53, %s8132_s29  ;;  %v5886_v22 = vpop.permute.xlu0 %5885  ;;  %v6423_v18 = vsel %vm6411_vm15, %v6390_v38, %v11817_v42 }
 0x629   : > { %v4815_v57 = vmax.f32 %v4781_v4, 0.0  ;;  %v6389_v58 = vsel %vm2227_vm3, %v6357_v15, %v5886_v22  ;;  %v6455_v15 = vsel %vm2271_vm5, %v6423_v18, %v11829_v24 }
 0x62a   : > { %v4814_v40 = vmax.f32 %v4776_v26, 0.0  ;;  %v11900_v59 = vld [vmem:[#allocation3 + $0x171] sm:$0xff] }
 0x62b   : > { %4903 = vst.msk [vmem:[#allocation3 + $0x189] sm:$0xff] %vm2808_vm6, %v4815_v57  ;;  %v5762_v36 = vpop.permute.xlu1 %5761  ;;  %5287 = vrot.lane.b32.xlu1 %v11900_v59, %s8130_s26  ;;  %v11907_v14 = vld [vmem:[#allocation3 + $0x169] sm:$0xff]  ;;  %v11916_v60 = vld [vmem:[#allocation3 + $0x172] sm:$0xff] }
 0x62c   : > { %4902 = vst.msk [vmem:[#allocation3 + $0x181] sm:$0xff] %vm2808_vm6, %v4814_v40  ;;  %5285 = vrot.lane.b32.xlu0 %v11907_v14, %s8130_s26  ;;  %v6014_v13 = vpop.permute.xlu0 %6013  ;;  %v11924_v42 = vld [vmem:[#allocation3 + $0x16a] sm:$0xff] }
 0x62d   : > { %v6422_v11 = vsel %vm6411_vm15, %v6389_v58, %v6014_v13 }
 0x62e   : > { %v6454_v19 = vsel %vm2271_vm5, %v6422_v11, %v6142_v55 }
 0x62f   : > { %v11919_v4 = vpop.permute.xlu1 %5259  ;;  %5415 = vrot.lane.b32.xlu1 %v11916_v60, %s8132_s29  ;;  %7962 = vmatprep.mubr.msk.f32.mxu0 %vm6488_vm0, %v6454_v19  ;;  %v12027_v19 = vld [vmem:[%s12588_s8] ss:$0 sm:$0xff] }
 0x630   : > { %5413 = vrot.lane.b32.xlu0 %v11924_v42, %s8132_s29  ;;  %7963 = vmatmul.mubr.msk.f32.gmra.mrb[90].mxu0 %vm6488_vm0, %v6455_v15  ;;  %v11931_v5 = vpop.permute.xlu0 %6019 }
 0x633   : > { %v11933_v55 = vpop.permute.xlu1 %5387  ;;  %5765 = vrot.lane.b32.xlu1 %v11588_v54, %s8141_s18  ;;  %v6229_v54 = vsel %vm2808_vm6, %v11458_v37, %v11766_v16 }
 0x634   : > { %5639 = vrot.lane.b32.xlu0 %v11555_v29, %s8133_s15  ;;  %v11939_v26 = vpop.permute.xlu0 %5257  ;;  %v6261_v57 = vsel %vm2161_vm1, %v6229_v54, %v11779_v62 }
 0x637   : > { %v11941_v22 = vpop.permute.xlu1 %5511  ;;  %5767 = vrot.lane.b32.xlu1 %v11566_v51, %s8141_s18 }
 0x638   : > { %6147 = vrot.lane.b32.xlu0 %v11566_v51, %s8136_s17  ;;  %v11947_v24 = vpop.permute.xlu0 %5385  ;;  %v6294_v51 = vsel %vm6281_vm13, %v6261_v57, %v5506_v35 }
 0x639   : > { %v6326_v18 = vsel %vm2194_vm4, %v6294_v51, %v11867_v44 }
 0x63a   : > { %v6359_v58 = vsel %vm6346_vm14, %v6326_v18, %v5762_v36 }
 0x63b   : > { %v11949_v38 = vpop.permute.xlu1 %5891  ;;  %5895 = vrot.lane.b32.xlu1 %v11656_v7, %s8135_s13 }
 0x63c   : > { %5893 = vrot.lane.b32.xlu0 %v11660_v2, %s8135_s13  ;;  %v11955_v29 = vpop.permute.xlu0 %5509 }
 0x63f   : > { %v11963_v41 = vpop.permute.xlu1 %5637  ;;  %5641 = vrot.lane.b32.xlu1 %v11638_v39, %s8133_s15 }
 0x640   : > { %6021 = vrot.lane.b32.xlu0 %v11638_v39, %s8142_s19  ;;  %v5890_v40 = vpop.permute.xlu0 %5889 }
 0x641   : > { %v6391_v37 = vsel %vm2227_vm3, %v6359_v58, %v5890_v40 }
 0x643   : > { %6149 = vrot.lane.b32.xlu1 %v11648_v25, %s8136_s17  ;;  %v6146_v62 = vpop.permute.xlu1 %6145 }
 0x644   : > { %6023 = vrot.lane.b32.xlu0 %v11634_v43, %s8142_s19  ;;  %v6018_v16 = vpop.permute.xlu0 %6017 }
 0x645   : > { %v6424_v35 = vsel %vm6411_vm15, %v6391_v37, %v6018_v16  ;;  %v12074_v16 = vld [vmem:[#allocation3 + $0x120] sm:$0xff] }
 0x646   : > { %v6456_v39 = vsel %vm2271_vm5, %v6424_v35, %v6146_v62 }
 0x647   : > { %5769 = vrot.lane.b32.xlu1 %v11648_v25, %s8141_s18  ;;  %7965 = vmatprep.mubr.msk.f32.mxu0 %vm6488_vm0, %v6456_v39  ;;  %v11988_v44 = vpop.permute.xlu1 %5263 }
 0x648   : > { %5643 = vrot.lane.b32.xlu0 %v11634_v43, %s8133_s15  ;;  %v11990_v36 = vpop.permute.xlu0 %5261 }
 0x64b   : > { %5771 = vrot.lane.b32.xlu1 %v11644_v30, %s8141_s18  ;;  %v11996_v25 = vpop.permute.xlu1 %5391 }
 0x64c   : > { %6151 = vrot.lane.b32.xlu0 %v11644_v30, %s8136_s17  ;;  %v12000_v43 = vpop.permute.xlu0 %5389 }
 0x64f   : > { %5899 = vrot.lane.b32.xlu1 %v11704_v21, %s8135_s13  ;;  %v12008_v30 = vpop.permute.xlu1 %5515 }
 0x650   : > { %5897 = vrot.lane.b32.xlu0 %v11709_v31, %s8135_s13  ;;  %v12010_v13 = vpop.permute.xlu0 %5513 }
 0x653   : > { %5645 = vrot.lane.b32.xlu1 %v11675_v56, %s8133_s15  ;;  %v12016_v11 = vpop.permute.xlu1 %5267 }
 0x654   : > { %6025 = vrot.lane.b32.xlu0 %v11675_v56, %s8142_s19  ;;  %v12020_v56 = vpop.permute.xlu0 %5265 }
 0x657   : > { %6153 = vrot.lane.b32.xlu1 %v11694_v49, %s8136_s17 }
 0x658   : > { %6027 = vrot.lane.b32.xlu0 %v11669_v32, %s8142_s19  ;;  %v12044_v57 = vpop.permute.xlu0 %5393 }
 0x65b   : > { %5773 = vrot.lane.b32.xlu1 %v11694_v49, %s8141_s18 }
 0x65c   : > { %5647 = vrot.lane.b32.xlu0 %v11669_v32, %s8133_s15  ;;  %v12058_v58 = vpop.permute.xlu0 %5517 }
 0x65f   : > { %5775 = vrot.lane.b32.xlu1 %v11685_v6, %s8141_s18 }
 0x660   : > { %6155 = vrot.lane.b32.xlu0 %v11685_v6, %s8136_s17  ;;  %v12041_v6 = vpop.permute.xlu1 %5395 }
 0x663   : > { %5903 = vrot.lane.b32.xlu1 %v11746_v10, %s8135_s13  ;;  %v7949_v49 = vpop.f32.mrb[80].mxu0 }
 0x664   : > { %v6661_v32 = vadd.f32 %v7949_v49, %v12027_v19  ;;  %v6655_v15 = vpop.f32.mrb[81].mxu0  ;;  %5901 = vrot.lane.b32.xlu0 %v11750_v27, %s8135_s13  ;;  %v12054_v18 = vpop.permute.xlu1 %5519 }
 0x665   : > { %v6656_v54 = vadd.f32 %v12027_v19, %v6655_v15 }
 0x666   : > { %v6815_v51 = vmax.f32 %v6661_v32, 0.0 }
 0x667   : > { %v6814_v40 = vmax.f32 %v6656_v54, 0.0  ;;  %5649 = vrot.lane.b32.xlu1 %v11724_v9, %s8133_s15 }
 0x668   : > { %6847 = vst.msk [vmem:[%s12039_s25 + $0x8] sm:$0xff] %vm2808_vm6, %v6815_v51  ;;  %6029 = vrot.lane.b32.xlu0 %v11724_v9, %s8142_s19  ;;  %v12066_v37 = vpop.permute.xlu1 %5271  ;;  %v12068_v9 = vpop.permute.xlu0 %5269 }
 0x669   : > { %6846 = vst.msk [vmem:[%s12039_s25] sm:$0xff] %vm2808_vm6, %v6814_v40 }
 0x66b   : > { %6157 = vrot.lane.b32.xlu1 %v11738_v1, %s8136_s17 }
 0x66c   : > { %6031 = vrot.lane.b32.xlu0 %v11719_v12, %s8142_s19  ;;  %v12076_v62 = vpop.permute.xlu1 %5399 }
 0x66f   : > { %5777 = vrot.lane.b32.xlu1 %v11738_v1, %s8141_s18  ;;  %v12080_v1 = vpop.permute.xlu0 %5397 }
 0x670   : > { %5651 = vrot.lane.b32.xlu0 %v11719_v12, %s8133_s15  ;;  %v12084_v12 = vld [vmem:[#allocation3 + $0x128] sm:$0xff] }
 0x671   : > { %12774 = vst [vmem:[#allocation64_spill] sm:$0xff] %v12084_v12 }
 0x673   : > { %5779 = vrot.lane.b32.xlu1 %v11734_v0, %s8141_s18  ;;  %v12092_v35 = vpop.permute.xlu0 %5521 }
 0x674   : > { %6159 = vrot.lane.b32.xlu0 %v11734_v0, %s8136_s17  ;;  %v12090_v0 = vpop.permute.xlu1 %5523 }
 0x677   : > { %5525 = vrot.lane.b32.xlu1 %v12074_v16, %s8140_s21  ;;  %v12102_v32 = vpop.permute.xlu0 %5273 }
 0x678   : > { %5905 = vrot.lane.b32.xlu0 %v12074_v16, %s8135_s13  ;;  %v12098_v39 = vpop.permute.xlu1 %5275 }
 0x67b   : > { %6033 = vrot.lane.b32.xlu1 %v11760_v50, %s8142_s19 }
 0x67c   : > { %5907 = vrot.lane.b32.xlu0 %v12084_v12, %s8135_s13 }
 0x67f   : > { %5653 = vrot.lane.b32.xlu1 %v11760_v50, %s8133_s15 }
 0x680   : > { %5527 = vrot.lane.b32.xlu0 %v12084_v12, %s8140_s21  ;;  %v12114_v12 = vpop.permute.xlu1 %5403 }
 0x683   : > { %6161 = vrot.lane.b32.xlu1 %v11772_v33, %s8136_s17  ;;  %v7952_v49 = vpop.f32.mrb[82].mxu0 }
 0x684   : > { %v6671_v15 = vadd.f32 %v7952_v49, %v12027_v19  ;;  %v6665_v54 = vpop.f32.mrb[83].mxu0  ;;  %6035 = vrot.lane.b32.xlu0 %v11756_v17, %s8142_s19  ;;  %v12118_v49 = vpop.permute.xlu0 %5401 }
 0x685   : > { %v6666_v50 = vadd.f32 %v12027_v19, %v6665_v54 }
 0x686   : > { %v6817_v51 = vmax.f32 %v6671_v15, 0.0 }
 0x687   : > { %v6816_v40 = vmax.f32 %v6666_v50, 0.0  ;;  %5781 = vrot.lane.b32.xlu1 %v11772_v33, %s8141_s18  ;;  %v12126_v33 = vld [vmem:[#allocation3 + $0x138] sm:$0xff] }
 0x688   : > { %6849 = vst.msk [vmem:[%s12039_s25 + $0x18] sm:$0xff] %vm2808_vm6, %v6817_v51  ;;  %5655 = vrot.lane.b32.xlu0 %v11756_v17, %s8133_s15  ;;  %v12138_v51 = vld [vmem:[#allocation3 + $0x140] sm:$0xff] }
 0x689   : > { %6848 = vst.msk [vmem:[%s12039_s25 + $0x10] sm:$0xff] %vm2808_vm6, %v6816_v40 }
 0x68b   : > { %5783 = vrot.lane.b32.xlu1 %v11768_v28, %s8141_s18 }
 0x68c   : > { %6163 = vrot.lane.b32.xlu0 %v11768_v28, %s8136_s17 }
 0x68d   : > { %v12124_v15 = vpop.permute.xlu1 %5279 }
 0x68e   : > { %12775 = vst [vmem:[#allocation65_spill] sm:$0xff] %v12124_v15  ;;  %v12128_v54 = vpop.permute.xlu0 %5277 }
 0x68f   : > { %5529 = vrot.lane.b32.xlu1 %v12126_v33, %s8140_s21 }
 0x690   : > { %5909 = vrot.lane.b32.xlu0 %v12126_v33, %s8135_s13 }
 0x691   : > { %v12134_v17 = vpop.permute.xlu1 %5407 }
 0x692   : > { %12776 = vst [vmem:[#allocation8_spill] sm:$0xff] %v12134_v17  ;;  %v12136_v50 = vpop.permute.xlu0 %5405 }
 0x693   : > { %12777 = vst [vmem:[#allocation66_spill] sm:$0xff] %v12136_v50  ;;  %6037 = vrot.lane.b32.xlu1 %v11838_v61, %s8142_s19 }
 0x694   : > { %5911 = vrot.lane.b32.xlu0 %v12138_v51, %s8135_s13 }
 0x695   : > { %v12144_v28 = vpop.permute.xlu1 %5283 }
 0x696   : > { %12778 = vst [vmem:[#allocation9_spill] sm:$0xff] %v12144_v28  ;;  %v12146_v40 = vpop.permute.xlu0 %5281  ;;  %v6230_v28 = vsel %vm2808_vm6, %v11430_v47, %v11729_v45 }
 0x697   : > { %12779 = vst [vmem:[#allocation67_spill] sm:$0xff] %v12146_v40  ;;  %5657 = vrot.lane.b32.xlu1 %v11838_v61, %s8133_s15  ;;  %v6262_v40 = vsel %vm2161_vm1, %v6230_v28, %v11742_v34 }
 0x698   : > { %5531 = vrot.lane.b32.xlu0 %v12138_v51, %s8140_s21 }
 0x699   : > { %v12152_v17 = vpop.permute.xlu1 %5411 }
 0x69a   : > { %12780 = vst [vmem:[#allocation68_spill] sm:$0xff] %v12152_v17  ;;  %v12154_v15 = vpop.permute.xlu0 %5409  ;;  %v6295_v17 = vsel %vm6281_vm13, %v6262_v40, %v11834_v8  ;;  %v12189_v40 = vld [vmem:[#allocation3 + $0x150] sm:$0xff] }
 0x69b   : > { %12781 = vst [vmem:[#allocation69_spill] sm:$0xff] %v12154_v15  ;;  %6165 = vrot.lane.b32.xlu1 %v11850_v20, %s8136_s17  ;;  %v6327_v47 = vsel %vm2194_vm4, %v6295_v17, %v11823_v52 }
 0x69c   : > { %6039 = vrot.lane.b32.xlu0 %v11831_v3, %s8142_s19  ;;  %v6360_v28 = vsel %vm6346_vm14, %v6327_v47, %v11826_v46 }
 0x69d   : > { %v12160_v50 = vpop.permute.xlu1 %5287 }
 0x69e   : > { %12782 = vst [vmem:[#allocation12_spill] sm:$0xff] %v12160_v50  ;;  %v12165_v61 = vpop.permute.xlu0 %5285 }
 0x69f   : > { %5785 = vrot.lane.b32.xlu1 %v11850_v20, %s8141_s18 }
 0x6a0   : > { %5659 = vrot.lane.b32.xlu0 %v11831_v3, %s8133_s15 }
 0x6a1   : > { %v12175_v15 = vpop.permute.xlu1 %5415 }
 0x6a2   : > { %12783 = vst [vmem:[#allocation70_spill] sm:$0xff] %v12175_v15  ;;  %v12177_v50 = vpop.permute.xlu0 %5413  ;;  %v6392_v15 = vsel %vm2227_vm3, %v6360_v28, %v11949_v38 }
 0x6a3   : > { %12784 = vst [vmem:[#allocation13_spill] sm:$0xff] %v12177_v50  ;;  %5787 = vrot.lane.b32.xlu1 %v11845_v48, %s8141_s18  ;;  %v7955_v45 = vpop.f32.mrb[84].mxu0  ;;  %v6425_v46 = vsel %vm6411_vm15, %v6392_v15, %v11931_v5 }
 0x6a4   : > { %v6681_v34 = vadd.f32 %v7955_v45, %v12027_v19  ;;  %v6675_v20 = vpop.f32.mrb[85].mxu0  ;;  %6167 = vrot.lane.b32.xlu0 %v11845_v48, %s8136_s17  ;;  %v12203_v45 = vld [vmem:[#allocation3 + $0x158] sm:$0xff] }
 0x6a5   : > { %v6676_v3 = vadd.f32 %v12027_v19, %v6675_v20  ;;  %v5766_v8 = vpop.permute.xlu1 %5765 }
 0x6a6   : > { %v6819_v52 = vmax.f32 %v6681_v34, 0.0  ;;  %v5640_v17 = vpop.permute.xlu0 %5639 }
 0x6a7   : > { %v6818_v50 = vmax.f32 %v6676_v3, 0.0  ;;  %5533 = vrot.lane.b32.xlu1 %v12189_v40, %s8140_s21  ;;  %v12786_v3 = vld [vmem:[#allocation5_spill] sm:$0xff] }
 0x6a8   : > { %6851 = vst.msk [vmem:[%s12039_s25 + $0x28] sm:$0xff] %vm2808_vm6, %v6819_v52  ;;  %5913 = vrot.lane.b32.xlu0 %v12189_v40, %s8135_s13 }
 0x6a9   : > { %6850 = vst.msk [vmem:[%s12039_s25 + $0x20] sm:$0xff] %vm2808_vm6, %v6818_v50  ;;  %v5768_v48 = vpop.permute.xlu1 %5767  ;;  %v12785_v50 = vld [vmem:[#allocation62_spill] sm:$0xff] }
 0x6aa   : > { %v6148_v47 = vpop.permute.xlu0 %6147  ;;  %v6231_v28 = vsel %vm2808_vm6, %v12786_v3, %v12785_v50 }
 0x6ab   : > { %v6457_v38 = vsel %vm2271_vm5, %v6425_v46, %v6148_v47  ;;  %6041 = vrot.lane.b32.xlu1 %v11871_v23, %s8142_s19  ;;  %v6263_v5 = vsel %vm2161_vm1, %v6231_v28, %v11858_v63  ;;  %v12787_v63 = vld [vmem:[#allocation7_spill] sm:$0xff] }
 0x6ac   : > { %5915 = vrot.lane.b32.xlu0 %v12203_v45, %s8135_s13  ;;  %7966 = vmatmul.mubr.msk.f32.gmra.mrb[92].mxu0 %vm6488_vm0, %v6457_v38  ;;  %v6296_v15 = vsel %vm6281_vm13, %v6263_v5, %v11955_v29 }
 0x6ad   : > { %v5896_v34 = vpop.permute.xlu1 %5895  ;;  %v6328_v46 = vsel %vm2194_vm4, %v6296_v15, %v11963_v41  ;;  %v12788_v41 = vld [vmem:[#allocation61_spill] sm:$0xff] }
 0x6ae   : > { %v5894_v20 = vpop.permute.xlu0 %5893  ;;  %v6361_v38 = vsel %vm6346_vm14, %v6328_v46, %v5766_v8  ;;  %v12789_v8 = vld [vmem:[#allocation58_spill] sm:$0xff] }
 0x6af   : > { %5661 = vrot.lane.b32.xlu1 %v11871_v23, %s8133_s15  ;;  %v6393_v23 = vsel %vm2227_vm3, %v6361_v38, %v5894_v20  ;;  %v6232_v5 = vsel %vm2808_vm6, %v12789_v8, %v12788_v41  ;;  %v12790_v20 = vld [vmem:[#allocation6_spill] sm:$0xff] }
 0x6b0   : > { %5535 = vrot.lane.b32.xlu0 %v12203_v45, %s8140_s21  ;;  %v6264_v15 = vsel %vm2161_vm1, %v6232_v5, %v12790_v20  ;;  %v12263_v20 = vld [vmem:[#allocation3 + $0x170] sm:$0xff] }
 0x6b1   : > { %v5642_v52 = vpop.permute.xlu1 %5641 }
 0x6b2   : > { %v6022_v47 = vpop.permute.xlu0 %6021 }
 0x6b3   : > { %6169 = vrot.lane.b32.xlu1 %v11890_v53, %s8136_s17  ;;  %v6426_v50 = vsel %vm6411_vm15, %v6393_v23, %v6022_v47  ;;  %v6297_v47 = vsel %vm6281_vm13, %v6264_v15, %v11941_v22 }
 0x6b4   : > { %6043 = vrot.lane.b32.xlu0 %v12787_v63, %s8142_s19  ;;  %v6329_v23 = vsel %vm2194_vm4, %v6297_v47, %v5640_v17 }
 0x6b5   : > { %v6150_v3 = vpop.permute.xlu1 %6149 }
 0x6b6   : > { %v6458_v29 = vsel %vm2271_vm5, %v6426_v50, %v6150_v3  ;;  %v6024_v28 = vpop.permute.xlu0 %6023  ;;  %v6362_v50 = vsel %vm6346_vm14, %v6329_v23, %v5768_v48 }
 0x6b7   : > { %5789 = vrot.lane.b32.xlu1 %v11890_v53, %s8141_s18  ;;  %7968 = vmatprep.mubr.msk.f32.mxu0 %vm6488_vm0, %v6458_v29  ;;  %v12791_v53 = vld [vmem:[#allocation63_spill] sm:$0xff] }
 0x6b8   : > { %5663 = vrot.lane.b32.xlu0 %v12787_v63, %s8133_s15  ;;  %v6394_v63 = vsel %vm2227_vm3, %v6362_v50, %v5896_v34  ;;  %v12251_v29 = vld [vmem:[#allocation3 + $0x168] sm:$0xff]  ;;  %v12792_v34 = vld [vmem:[#allocation60_spill] sm:$0xff] }
 0x6b9   : > { %v5770_v46 = vpop.permute.xlu1 %5769  ;;  %v6427_v41 = vsel %vm6411_vm15, %v6394_v63, %v6024_v28  ;;  %v6233_v5 = vsel %vm2808_vm6, %v12792_v34, %v11939_v26 }
 0x6ba   : > { %v5644_v38 = vpop.permute.xlu0 %5643  ;;  %v6265_v15 = vsel %vm2161_vm1, %v6233_v5, %v11947_v24 }
 0x6bb   : > { %5791 = vrot.lane.b32.xlu1 %v12791_v53, %s8141_s18  ;;  %v6298_v26 = vsel %vm6281_vm13, %v6265_v15, %v12010_v13 }
 0x6bc   : > { %6171 = vrot.lane.b32.xlu0 %v12791_v53, %s8136_s17  ;;  %v6330_v63 = vsel %vm2194_vm4, %v6298_v26, %v5642_v52 }
 0x6bd   : > { %v5772_v3 = vpop.permute.xlu1 %5771 }
 0x6be   : > { %v6152_v8 = vpop.permute.xlu0 %6151 }
 0x6bf   : > { %v6459_v22 = vsel %vm2271_vm5, %v6427_v41, %v6152_v8  ;;  %5537 = vrot.lane.b32.xlu1 %v12251_v29, %s8140_s21 }
 0x6c0   : > { %5917 = vrot.lane.b32.xlu0 %v12251_v29, %s8135_s13  ;;  %7969 = vmatmul.mubr.msk.f32.gmra.mrb[94].mxu0 %vm6488_vm0, %v6459_v22  ;;  %v6363_v22 = vsel %vm6346_vm14, %v6330_v63, %v5770_v46 }
 0x6c1   : > { %v5900_v17 = vpop.permute.xlu1 %5899 }
 0x6c2   : > { %v5898_v48 = vpop.permute.xlu0 %5897 }
 0x6c3   : > { %6045 = vrot.lane.b32.xlu1 %v11907_v14, %s8142_s19  ;;  %v7958_v28 = vpop.f32.mrb[86].mxu0  ;;  %v6395_v34 = vsel %vm2227_vm3, %v6363_v22, %v5898_v48 }
 0x6c4   : > { %v6691_v47 = vadd.f32 %v7958_v28, %v12027_v19  ;;  %v6685_v23 = vpop.f32.mrb[87].mxu0  ;;  %5919 = vrot.lane.b32.xlu0 %v12263_v20, %s8135_s13 }
 0x6c5   : > { %v6686_v53 = vadd.f32 %v12027_v19, %v6685_v23  ;;  %v5646_v50 = vpop.permute.xlu1 %5645 }
 0x6c6   : > { %v6821_v41 = vmax.f32 %v6691_v47, 0.0  ;;  %v6026_v8 = vpop.permute.xlu0 %6025 }
 0x6c7   : > { %v6820_v24 = vmax.f32 %v6686_v53, 0.0  ;;  %5665 = vrot.lane.b32.xlu1 %v11907_v14, %s8133_s15  ;;  %v6428_v13 = vsel %vm6411_vm15, %v6395_v34, %v6026_v8  ;;  %v12793_v14 = vld [vmem:[#allocation59_spill] sm:$0xff] }
 0x6c8   : > { %6853 = vst.msk [vmem:[%s12039_s25 + $0x38] sm:$0xff] %vm2808_vm6, %v6821_v41  ;;  %5539 = vrot.lane.b32.xlu0 %v12263_v20, %s8140_s21  ;;  %v6234_v46 = vsel %vm2808_vm6, %v12793_v14, %v11919_v4  ;;  %v5157_v34 = vld [vmem:[#allocation3 + $0x181] sm:$0xff] }
 0x6c9   : > { %6852 = vst.msk [vmem:[%s12039_s25 + $0x30] sm:$0xff] %vm2808_vm6, %v6820_v24  ;;  %v6154_v52 = vpop.permute.xlu1 %6153  ;;  %v6266_v48 = vsel %vm2161_vm1, %v6234_v46, %v11933_v55 }
 0x6ca   : > { %v6460_v5 = vsel %vm2271_vm5, %v6428_v13, %v6154_v52  ;;  %v6028_v28 = vpop.permute.xlu0 %6027  ;;  %v6299_v47 = vsel %vm6281_vm13, %v6266_v48, %v12008_v30 }
 0x6cb   : > { %6173 = vrot.lane.b32.xlu1 %v11924_v42, %s8136_s17  ;;  %7971 = vmatprep.mubr.msk.f32.mxu0 %vm6488_vm0, %v6460_v5  ;;  %v6331_v26 = vsel %vm2194_vm4, %v6299_v47, %v5644_v38  ;;  %v5030_v38 = vld [vmem:[#allocation3 + $0x180] sm:$0xff] }
 0x6cc   : > { %6047 = vrot.lane.b32.xlu0 %v11900_v59, %s8142_s19  ;;  %v6364_v53 = vsel %vm6346_vm14, %v6331_v26, %v5772_v3 }
 0x6cd   : > { %v5774_v15 = vpop.permute.xlu1 %5773  ;;  %v6396_v4 = vsel %vm2227_vm3, %v6364_v53, %v5900_v17  ;;  %v5158_v53 = vld [vmem:[#allocation3 + $0x189] sm:$0xff] }
 0x6ce   : > { %v5648_v23 = vpop.permute.xlu0 %5647  ;;  %v6429_v55 = vsel %vm6411_vm15, %v6396_v4, %v6028_v28 }
 0x6cf   : > { %5793 = vrot.lane.b32.xlu1 %v11924_v42, %s8141_s18 }
 0x6d0   : > { %5667 = vrot.lane.b32.xlu0 %v11900_v59, %s8133_s15  ;;  %v6235_v59 = vsel %vm2808_vm6, %v11660_v2, %v11990_v36  ;;  %v5126_v2 = vld [vmem:[#allocation3 + $0x188] sm:$0xff] }
 0x6d1   : > { %v5776_v63 = vpop.permute.xlu1 %5775  ;;  %v6267_v3 = vsel %vm2161_vm1, %v6235_v59, %v12000_v43  ;;  %v5095_v59 = vld [vmem:[#allocation3 + $0x18a] sm:$0xff] }
 0x6d2   : > { %v6156_v41 = vpop.permute.xlu0 %6155  ;;  %v6300_v17 = vsel %vm6281_vm13, %v6267_v3, %v12058_v58  ;;  %v5128_v3 = vld [vmem:[#allocation3 + $0x1a0] sm:$0xff] }
 0x6d3   : > { %v6461_v8 = vsel %vm2271_vm5, %v6429_v55, %v6156_v41  ;;  %5795 = vrot.lane.b32.xlu1 %v11916_v60, %s8141_s18  ;;  %v6332_v22 = vsel %vm2194_vm4, %v6300_v17, %v5646_v50  ;;  %v6236_v50 = vsel %vm2808_vm6, %v11656_v7, %v11988_v44 }
 0x6d4   : > { %6175 = vrot.lane.b32.xlu0 %v11916_v60, %s8136_s17  ;;  %7972 = vmatmul.mubr.msk.f32.gmra.mrb[96].mxu0 %vm6488_vm0, %v6461_v8  ;;  %v6365_v13 = vsel %vm6346_vm14, %v6332_v22, %v5774_v15  ;;  %v6268_v28 = vsel %vm2161_vm1, %v6236_v50, %v11996_v25  ;;  %v5189_v15 = vld [vmem:[#allocation3 + $0x182] sm:$0xff]  ;;  %v5127_v22 = vld [vmem:[#allocation3 + $0x198] sm:$0xff] }
 0x6d5   : > { %v5904_v42 = vpop.permute.xlu1 %5903  ;;  %v6301_v46 = vsel %vm6281_vm13, %v6268_v28, %v12054_v18 }
 0x6d6   : > { %v5902_v30 = vpop.permute.xlu0 %5901  ;;  %v6333_v47 = vsel %vm2194_vm4, %v6301_v46, %v5648_v23  ;;  %v5191_v46 = vld [vmem:[#allocation3 + $0x19a] sm:$0xff] }
 0x6d7   : > { %5541 = vrot.lane.b32.xlu1 %v5030_v38, %s8140_s21  ;;  %v6397_v36 = vsel %vm2227_vm3, %v6365_v13, %v5902_v30  ;;  %v6366_v7 = vsel %vm6346_vm14, %v6333_v47, %v5776_v63 }
 0x6d8   : > { %5921 = vrot.lane.b32.xlu0 %v5030_v38, %s8135_s13  ;;  %v6398_v25 = vsel %vm2227_vm3, %v6366_v7, %v5904_v42 }
 0x6d9   : > { %v5650_v60 = vpop.permute.xlu1 %5649 }
 0x6da   : > { %v6030_v24 = vpop.permute.xlu0 %6029 }
 0x6db   : > { %6049 = vrot.lane.b32.xlu1 %v5157_v34, %s8142_s19  ;;  %v6430_v43 = vsel %vm6411_vm15, %v6397_v36, %v6030_v24 }
 0x6dc   : > { %5923 = vrot.lane.b32.xlu0 %v5126_v2, %s8135_s13 }
 0x6dd   : > { %v6158_v52 = vpop.permute.xlu1 %6157 }
 0x6de   : > { %v6462_v5 = vsel %vm2271_vm5, %v6430_v43, %v6158_v52  ;;  %v6032_v58 = vpop.permute.xlu0 %6031  ;;  %v5159_v52 = vld [vmem:[#allocation3 + $0x199] sm:$0xff] }
 0x6df   : > { %5669 = vrot.lane.b32.xlu1 %v5157_v34, %s8133_s15  ;;  %7974 = vmatprep.mubr.msk.f32.mxu0 %vm6488_vm0, %v6462_v5  ;;  %v6431_v23 = vsel %vm6411_vm15, %v6398_v25, %v6032_v58  ;;  %v6237_v34 = vsel %vm2808_vm6, %v11709_v31, %v12020_v56  ;;  %v5192_v56 = vld [vmem:[#allocation3 + $0x1a2] sm:$0xff] }
 0x6e0   : > { %5543 = vrot.lane.b32.xlu0 %v5126_v2, %s8140_s21  ;;  %v6269_v13 = vsel %vm2161_vm1, %v6237_v34, %v12044_v57  ;;  %v5160_v2 = vld [vmem:[#allocation3 + $0x1a1] sm:$0xff] }
 0x6e1   : > { %v5778_v14 = vpop.permute.xlu1 %5777  ;;  %v6302_v36 = vsel %vm6281_vm13, %v6269_v13, %v12092_v35 }
 0x6e2   : > { %v5652_v48 = vpop.permute.xlu0 %5651  ;;  %v6334_v5 = vsel %vm2194_vm4, %v6302_v36, %v5650_v60  ;;  %v6238_v60 = vsel %vm2808_vm6, %v11704_v21, %v12016_v11 }
 0x6e3   : > { %6177 = vrot.lane.b32.xlu1 %v5189_v15, %s8136_s17  ;;  %v7961_v26 = vpop.f32.mrb[88].mxu0  ;;  %v6367_v50 = vsel %vm6346_vm14, %v6334_v5, %v5778_v14  ;;  %v6270_v14 = vsel %vm2161_vm1, %v6238_v60, %v12041_v6 }
 0x6e4   : > { %v6701_v44 = vadd.f32 %v7961_v26, %v12027_v19  ;;  %v6695_v4 = vpop.f32.mrb[89].mxu0  ;;  %6051 = vrot.lane.b32.xlu0 %v5158_v53, %s8142_s19  ;;  %v6303_v26 = vsel %vm6281_vm13, %v6270_v14, %v12090_v0 }
 0x6e5   : > { %v6696_v18 = vadd.f32 %v12027_v19, %v6695_v4  ;;  %v5780_v55 = vpop.permute.xlu1 %5779  ;;  %v6335_v7 = vsel %vm2194_vm4, %v6303_v26, %v5652_v48 }
 0x6e6   : > { %v6823_v41 = vmax.f32 %v6701_v44, 0.0  ;;  %v6160_v8 = vpop.permute.xlu0 %6159  ;;  %v6368_v44 = vsel %vm6346_vm14, %v6335_v7, %v5780_v55 }
 0x6e7   : > { %v6822_v30 = vmax.f32 %v6696_v18, 0.0  ;;  %v6463_v38 = vsel %vm2271_vm5, %v6431_v23, %v6160_v8  ;;  %5797 = vrot.lane.b32.xlu1 %v5189_v15, %s8141_s18 }
 0x6e8   : > { %6855 = vst.msk [vmem:[%s12039_s25 + $0x48] sm:$0xff] %vm2808_vm6, %v6823_v41  ;;  %5671 = vrot.lane.b32.xlu0 %v5158_v53, %s8133_s15  ;;  %7975 = vmatmul.mubr.msk.f32.gmra.mrb[98].mxu0 %vm6488_vm0, %v6463_v38 }
 0x6e9   : > { %6854 = vst.msk [vmem:[%s12039_s25 + $0x40] sm:$0xff] %vm2808_vm6, %v6822_v30  ;;  %v5526_v63 = vpop.permute.xlu1 %5525 }
 0x6ea   : > { %v5906_v42 = vpop.permute.xlu0 %5905 }
 0x6eb   : > { %5799 = vrot.lane.b32.xlu1 %v5095_v59, %s8141_s18  ;;  %v6399_v31 = vsel %vm2227_vm3, %v6367_v50, %v5906_v42  ;;  %v6239_v42 = vsel %vm2808_vm6, %v11750_v27, %v12068_v9 }
 0x6ec   : > { %6179 = vrot.lane.b32.xlu0 %v5095_v59, %s8136_s17 }
 0x6ed   : > { %v6034_v17 = vpop.permute.xlu1 %6033 }
 0x6ee   : > { %v5908_v24 = vpop.permute.xlu0 %5907  ;;  %v6432_v57 = vsel %vm6411_vm15, %v6399_v31, %v6034_v17 }
 0x6ef   : > { %5927 = vrot.lane.b32.xlu1 %v5128_v3, %s8135_s13  ;;  %v6400_v4 = vsel %vm2227_vm3, %v6368_v44, %v5908_v24  ;;  %v6271_v3 = vsel %vm2161_vm1, %v6239_v42, %v12080_v1 }
 0x6f0   : > { %5925 = vrot.lane.b32.xlu0 %v5127_v22, %s8135_s13  ;;  %v6304_v17 = vsel %vm6281_vm13, %v6271_v3, %v5526_v63  ;;  %v6240_v63 = vsel %vm2808_vm6, %v11746_v10, %v12066_v37 }
 0x6f1   : > { %v5654_v43 = vpop.permute.xlu1 %5653 }
 0x6f2   : > { %v5528_v58 = vpop.permute.xlu0 %5527  ;;  %v6336_v24 = vsel %vm2194_vm4, %v6304_v17, %v5654_v43  ;;  %v6272_v43 = vsel %vm2161_vm1, %v6240_v63, %v12076_v62  ;;  %v6243_v17 = vsel %vm2808_vm6, %v12126_v33, %v12128_v54  ;;  %v12796_v33 = vld [vmem:[#allocation65_spill] sm:$0xff] }
 0x6f3   : > { %6055 = vrot.lane.b32.xlu1 %v5160_v2, %s8142_s19  ;;  %v6305_v5 = vsel %vm6281_vm13, %v6272_v43, %v5528_v58  ;;  %v6241_v58 = vsel %vm2808_vm6, %v12074_v16, %v12102_v32  ;;  %v12794_v16 = vld [vmem:[#allocation64_spill] sm:$0xff]  ;;  %v6244_v54 = vsel %vm2808_vm6, %v12138_v51, %v12796_v33 }
 0x6f4   : > { %6053 = vrot.lane.b32.xlu0 %v5159_v52, %s8142_s19  ;;  %v6273_v14 = vsel %vm2161_vm1, %v6241_v58, %v12118_v49  ;;  %v6242_v32 = vsel %vm2808_vm6, %v12794_v16, %v12098_v39 }
 0x6f5   : > { %v6162_v28 = vpop.permute.xlu1 %6161  ;;  %v6274_v49 = vsel %vm2161_vm1, %v6242_v32, %v12114_v12 }
 0x6f6   : > { %v6464_v35 = vsel %vm2271_vm5, %v6432_v57, %v6162_v28  ;;  %v6036_v15 = vpop.permute.xlu0 %6035 }
 0x6f7   : > { %6183 = vrot.lane.b32.xlu1 %v5192_v56, %s8136_s17  ;;  %7977 = vmatprep.mubr.msk.f32.mxu0 %vm6488_vm0, %v6464_v35  ;;  %v6433_v18 = vsel %vm6411_vm15, %v6400_v4, %v6036_v15 }
 0x6f8   : > { %6181 = vrot.lane.b32.xlu0 %v5191_v46, %s8136_s17 }
 0x6f9   : > { %v5782_v47 = vpop.permute.xlu1 %5781 }
 0x6fa   : > { %v5656_v53 = vpop.permute.xlu0 %5655  ;;  %v6369_v13 = vsel %vm6346_vm14, %v6336_v24, %v5782_v47 }
 0x6fb   : > { %v6337_v31 = vsel %vm2194_vm4, %v6305_v5, %v5656_v53  ;;  %v12797_v5 = vld [vmem:[#allocation8_spill] sm:$0xff] }
 0x6fd   : > { %v5784_v25 = vpop.permute.xlu1 %5783 }
 0x6fe   : > { %v6164_v21 = vpop.permute.xlu0 %6163  ;;  %v6370_v56 = vsel %vm6346_vm14, %v6337_v31, %v5784_v25 }
 0x6ff   : > { %v6465_v11 = vsel %vm2271_vm5, %v6433_v18, %v6164_v21 }
 0x700   : > { %7978 = vmatmul.mubr.msk.f32.gmra.mrb[100].mxu0 %vm6488_vm0, %v6465_v11 }
 0x701   : > { %v5530_v6 = vpop.permute.xlu1 %5529 }
 0x702   : > { %v5910_v23 = vpop.permute.xlu0 %5909  ;;  %v6306_v47 = vsel %vm6281_vm13, %v6273_v14, %v5530_v6 }
 0x703   : > { %v7964_v0 = vpop.f32.mrb[90].mxu0  ;;  %v6401_v2 = vsel %vm2227_vm3, %v6369_v13, %v5910_v23 }
 0x704   : > { %v6711_v41 = vadd.f32 %v7964_v0, %v12027_v19  ;;  %v6705_v48 = vpop.f32.mrb[91].mxu0 }
 0x705   : > { %v6706_v55 = vadd.f32 %v12027_v19, %v6705_v48  ;;  %v6038_v8 = vpop.permute.xlu1 %6037 }
 0x706   : > { %v6825_v30 = vmax.f32 %v6711_v41, 0.0  ;;  %v5912_v38 = vpop.permute.xlu0 %5911  ;;  %v6434_v27 = vsel %vm6411_vm15, %v6401_v2, %v6038_v8 }
 0x707   : > { %v6824_v59 = vmax.f32 %v6706_v55, 0.0  ;;  %v6402_v57 = vsel %vm2227_vm3, %v6370_v56, %v5912_v38 }
 0x708   : > { %6857 = vst.msk [vmem:[%s12039_s25 + $0x58] sm:$0xff] %vm2808_vm6, %v6825_v30 }
 0x709   : > { %6856 = vst.msk [vmem:[%s12039_s25 + $0x50] sm:$0xff] %vm2808_vm6, %v6824_v59  ;;  %v5658_v22 = vpop.permute.xlu1 %5657 }
 0x70a   : > { %v5532_v34 = vpop.permute.xlu0 %5531  ;;  %v6338_v53 = vsel %vm2194_vm4, %v6306_v47, %v5658_v22  ;;  %v12795_v22 = vld [vmem:[#allocation66_spill] sm:$0xff]  ;;  %v12798_v47 = vld [vmem:[#allocation67_spill] sm:$0xff] }
 0x70b   : > { %v6307_v23 = vsel %vm6281_vm13, %v6274_v49, %v5532_v34  ;;  %v6275_v24 = vsel %vm2161_vm1, %v6243_v17, %v12795_v22  ;;  %v6247_v22 = vsel %vm2808_vm6, %v12251_v29, %v12165_v61 }
 0x70d   : > { %v6166_v9 = vpop.permute.xlu1 %6165 }
 0x70e   : > { %v6466_v36 = vsel %vm2271_vm5, %v6434_v27, %v6166_v9  ;;  %v6040_v1 = vpop.permute.xlu0 %6039 }
 0x70f   : > { %7980 = vmatprep.mubr.msk.f32.mxu0 %vm6488_vm0, %v6466_v36  ;;  %v6435_v46 = vsel %vm6411_vm15, %v6402_v57, %v6040_v1 }
 0x711   : > { %v5786_v52 = vpop.permute.xlu1 %5785 }
 0x712   : > { %v5660_v50 = vpop.permute.xlu0 %5659  ;;  %v6371_v44 = vsel %vm6346_vm14, %v6338_v53, %v5786_v52  ;;  %v12799_v53 = vld [vmem:[#allocation69_spill] sm:$0xff] }
 0x713   : > { %v6339_v41 = vsel %vm2194_vm4, %v6307_v23, %v5660_v50  ;;  %v6276_v50 = vsel %vm2161_vm1, %v6244_v54, %v12797_v5 }
 0x715   : > { %v5788_v28 = vpop.permute.xlu1 %5787 }
 0x716   : > { %v6168_v35 = vpop.permute.xlu0 %6167  ;;  %v6372_v48 = vsel %vm6346_vm14, %v6339_v41, %v5788_v28 }
 0x717   : > { %v6467_v15 = vsel %vm2271_vm5, %v6435_v46, %v6168_v35 }
 0x718   : > { %7981 = vmatmul.mubr.msk.f32.gmra.mrb[102].mxu0 %vm6488_vm0, %v6467_v15 }
 0x719   : > { %v5534_v10 = vpop.permute.xlu1 %5533 }
 0x71a   : > { %v5914_v37 = vpop.permute.xlu0 %5913  ;;  %v6308_v34 = vsel %vm6281_vm13, %v6275_v24, %v5534_v10  ;;  %v12802_v24 = vld [vmem:[#allocation12_spill] sm:$0xff] }
 0x71b   : > { %v6403_v4 = vsel %vm2227_vm3, %v6371_v44, %v5914_v37 }
 0x71d   : > { %v6042_v62 = vpop.permute.xlu1 %6041 }
 0x71e   : > { %v5916_v60 = vpop.permute.xlu0 %5915  ;;  %v6436_v25 = vsel %vm6411_vm15, %v6403_v4, %v6042_v62 }
 0x71f   : > { %v6404_v55 = vsel %vm2227_vm3, %v6372_v48, %v5916_v60 }
 0x721   : > { %v5662_v26 = vpop.permute.xlu1 %5661 }
 0x722   : > { %v5536_v7 = vpop.permute.xlu0 %5535  ;;  %v6340_v2 = vsel %vm2194_vm4, %v6308_v34, %v5662_v26  ;;  %v6245_v26 = vsel %vm2808_vm6, %v12189_v40, %v12798_v47  ;;  %v12800_v40 = vld [vmem:[#allocation9_spill] sm:$0xff]  ;;  %v6248_v34 = vsel %vm2808_vm6, %v12263_v20, %v12802_v24 }
 0x723   : > { %v6309_v56 = vsel %vm6281_vm13, %v6276_v50, %v5536_v7  ;;  %v6277_v7 = vsel %vm2161_vm1, %v6245_v26, %v12799_v53  ;;  %v6246_v23 = vsel %vm2808_vm6, %v12203_v45, %v12800_v40 }
 0x725   : > { %v6170_v18 = vpop.permute.xlu1 %6169 }
 0x726   : > { %v6468_v21 = vsel %vm2271_vm5, %v6436_v25, %v6170_v18  ;;  %v6044_v11 = vpop.permute.xlu0 %6043 }
 0x727   : > { %7983 = vmatprep.mubr.msk.f32.mxu0 %vm6488_vm0, %v6468_v21  ;;  %v6437_v30 = vsel %vm6411_vm15, %v6404_v55, %v6044_v11 }
 0x729   : > { %v5790_v6 = vpop.permute.xlu1 %5789 }
 0x72a   : > { %v5664_v0 = vpop.permute.xlu0 %5663  ;;  %v6373_v9 = vsel %vm6346_vm14, %v6340_v2, %v5790_v6 }
 0x72b   : > { %v6341_v28 = vsel %vm2194_vm4, %v6309_v56, %v5664_v0  ;;  %v12801_v0 = vld [vmem:[#allocation68_spill] sm:$0xff] }
 0x72c   : > { %v6278_v41 = vsel %vm2161_vm1, %v6246_v23, %v12801_v0 }
 0x72d   : > { %v5792_v8 = vpop.permute.xlu1 %5791 }
 0x72e   : > { %v6172_v38 = vpop.permute.xlu0 %6171  ;;  %v6374_v46 = vsel %vm6346_vm14, %v6341_v28, %v5792_v8 }
 0x72f   : > { %v6469_v42 = vsel %vm2271_vm5, %v6437_v30, %v6172_v38 }
 0x730   : > { %7984 = vmatmul.mubr.msk.f32.gmra.mrb[104].mxu0 %vm6488_vm0, %v6469_v42 }
 0x731   : > { %v5538_v39 = vpop.permute.xlu1 %5537 }
 0x732   : > { %v5918_v12 = vpop.permute.xlu0 %5917  ;;  %v6310_v44 = vsel %vm6281_vm13, %v6277_v7, %v5538_v39 }
 0x733   : > { %v6405_v36 = vsel %vm2227_vm3, %v6373_v9, %v5918_v12  ;;  %v12804_v9 = vld [vmem:[#allocation70_spill] sm:$0xff] }
 0x735   : > { %v6046_v59 = vpop.permute.xlu1 %6045 }
 0x736   : > { %v5920_v3 = vpop.permute.xlu0 %5919  ;;  %v6438_v1 = vsel %vm6411_vm15, %v6405_v36, %v6046_v59  ;;  %v6280_v36 = vsel %vm2161_vm1, %v6248_v34, %v12804_v9 }
 0x737   : > { %v6406_v35 = vsel %vm2227_vm3, %v6374_v46, %v5920_v3 }
 0x739   : > { %v5666_v13 = vpop.permute.xlu1 %5665 }
 0x73a   : > { %v5540_v27 = vpop.permute.xlu0 %5539  ;;  %v6342_v25 = vsel %vm2194_vm4, %v6310_v44, %v5666_v13  ;;  %v12803_v13 = vld [vmem:[#allocation13_spill] sm:$0xff] }
 0x73b   : > { %v6311_v55 = vsel %vm6281_vm13, %v6278_v41, %v5540_v27  ;;  %v6279_v2 = vsel %vm2161_vm1, %v6247_v22, %v12803_v13 }
 0x73d   : > { %v6174_v63 = vpop.permute.xlu1 %6173 }
 0x73e   : > { %v6470_v43 = vsel %vm2271_vm5, %v6438_v1, %v6174_v63  ;;  %v6048_v52 = vpop.permute.xlu0 %6047 }
 0x73f   : > { %7986 = vmatprep.mubr.msk.f32.mxu0 %vm6488_vm0, %v6470_v43  ;;  %v6439_v10 = vsel %vm6411_vm15, %v6406_v35, %v6048_v52 }
 0x741   : > { %v5794_v31 = vpop.permute.xlu1 %5793 }
 0x742   : > { %v5668_v57 = vpop.permute.xlu0 %5667  ;;  %v6375_v21 = vsel %vm6346_vm14, %v6342_v25, %v5794_v31 }
 0x743   : > { %v6343_v30 = vsel %vm2194_vm4, %v6311_v55, %v5668_v57 }
 0x745   : > { %v5796_v15 = vpop.permute.xlu1 %5795 }
 0x746   : > { %v6176_v37 = vpop.permute.xlu0 %6175  ;;  %v6376_v38 = vsel %vm6346_vm14, %v6343_v30, %v5796_v15 }
 0x747   : > { %v6471_v62 = vsel %vm2271_vm5, %v6439_v10, %v6176_v37 }
 0x748   : > { %7987 = vmatmul.mubr.msk.f32.gmra.mrb[106].mxu0 %vm6488_vm0, %v6471_v62 }
 0x749   : > { %v5542_v51 = vpop.permute.xlu1 %5541 }
 0x74a   : > { %v5922_v60 = vpop.permute.xlu0 %5921  ;;  %v6312_v1 = vsel %vm6281_vm13, %v6279_v2, %v5542_v51 }
 0x74b   : > { %v6407_v11 = vsel %vm2227_vm3, %v6375_v21, %v5922_v60 }
 0x74d   : > { %v6050_v58 = vpop.permute.xlu1 %6049 }
 0x74e   : > { %v5924_v14 = vpop.permute.xlu0 %5923  ;;  %v6440_v16 = vsel %vm6411_vm15, %v6407_v11, %v6050_v58 }
 0x74f   : > { %v6408_v42 = vsel %vm2227_vm3, %v6376_v38, %v5924_v14 }
 0x751   : > { %v5670_v4 = vpop.permute.xlu1 %5669 }
 0x752   : > { %v5544_v18 = vpop.permute.xlu0 %5543  ;;  %v6344_v43 = vsel %vm2194_vm4, %v6312_v1, %v5670_v4 }
 0x753   : > { %v6313_v52 = vsel %vm6281_vm13, %v6280_v36, %v5544_v18 }
 0x755   : > { %v6178_v32 = vpop.permute.xlu1 %6177 }
 0x756   : > { %v6472_v49 = vsel %vm2271_vm5, %v6440_v16, %v6178_v32  ;;  %v6052_v6 = vpop.permute.xlu0 %6051 }
 0x757   : > { %7989 = vmatprep.mubr.msk.f32.mxu0 %vm6488_vm0, %v6472_v49  ;;  %v6441_v12 = vsel %vm6411_vm15, %v6408_v42, %v6052_v6 }
 0x759   : > { %v5798_v48 = vpop.permute.xlu1 %5797 }
 0x75a   : > { %v5672_v8 = vpop.permute.xlu0 %5671  ;;  %v6377_v61 = vsel %vm6346_vm14, %v6344_v43, %v5798_v48 }
 0x75b   : > { %v6345_v29 = vsel %vm2194_vm4, %v6313_v52, %v5672_v8 }
 0x75d   : > { %v5800_v39 = vpop.permute.xlu1 %5799 }
 0x75e   : > { %v6180_v59 = vpop.permute.xlu0 %6179  ;;  %v6378_v20 = vsel %vm6346_vm14, %v6345_v29, %v5800_v39 }
 0x75f   : > { %v6473_v3 = vsel %vm2271_vm5, %v6441_v12, %v6180_v59 }
 0x760   : > { %7990 = vmatmul.mubr.msk.f32.gmra.mrb[108].mxu0 %vm6488_vm0, %v6473_v3 }
 0x761   : > { %v5928_v45 = vpop.permute.xlu1 %5927 }
 0x762   : > { %v5926_v17 = vpop.permute.xlu0 %5925  ;;  %v6410_v5 = vsel %vm2227_vm3, %v6378_v20, %v5928_v45 }
 0x763   : > { %v6409_v33 = vsel %vm2227_vm3, %v6377_v61, %v5926_v17 }
 0x765   : > { %v6056_v27 = vpop.permute.xlu1 %6055 }
 0x766   : > { %v6054_v63 = vpop.permute.xlu0 %6053  ;;  %v6443_v56 = vsel %vm6411_vm15, %v6410_v5, %v6056_v27 }
 0x767   : > { %v6442_v50 = vsel %vm6411_vm15, %v6409_v33, %v6054_v63  ;;  %v8121_v33 = vld [vmem:[%s12588_s8] ss:$0 sm:$0xff] }
 0x769   : > { %v6184_v54 = vpop.permute.xlu1 %6183 }
 0x76a   : > { %v6182_v31 = vpop.permute.xlu0 %6181  ;;  %v6475_v28 = vsel %vm2271_vm5, %v6443_v56, %v6184_v54 }
 0x76b   : > { %v6474_v57 = vsel %vm2271_vm5, %v6442_v50, %v6182_v31 }
 0x76c   : > { %7992 = vmatprep.mubr.msk.f32.mxu0 %vm6488_vm0, %v6474_v57 }
 0x76d   : > { %7993 = vmatmul.mubr.msk.f32.gmra.mrb[110].mxu0 %vm6488_vm0, %v6475_v28 }
 0x77f   : > { %v7967_v46 = vpop.f32.mrb[92].mxu0 }
 0x780   : > { %v6721_v35 = vadd.f32 %v7967_v46, %v12027_v19  ;;  %v6715_v15 = vpop.f32.mrb[93].mxu0 }
 0x781   : > { %v6716_v10 = vadd.f32 %v12027_v19, %v6715_v15 }
 0x782   : > { %v6827_v37 = vmax.f32 %v6721_v35, 0.0 }
 0x783   : > { %v6826_v62 = vmax.f32 %v6716_v10, 0.0 }
 0x784   : > { %6859 = vst.msk [vmem:[%s12039_s25 + $0x68] sm:$0xff] %vm2808_vm6, %v6827_v37 }
 0x785   : > { %6858 = vst.msk [vmem:[%s12039_s25 + $0x60] sm:$0xff] %vm2808_vm6, %v6826_v62 }
 0x793   : > { %v7970_v51 = vpop.f32.mrb[94].mxu0 }
 0x794   : > { %v6731_v60 = vadd.f32 %v7970_v51, %v12027_v19  ;;  %v6725_v58 = vpop.f32.mrb[95].mxu0 }
 0x795   : > { %v6726_v14 = vadd.f32 %v12027_v19, %v6725_v58 }
 0x796   : > { %v6829_v47 = vmax.f32 %v6731_v60, 0.0 }
 0x797   : > { %v6828_v26 = vmax.f32 %v6726_v14, 0.0 }
 0x798   : > { %6861 = vst.msk [vmem:[%s12039_s25 + $0x78] sm:$0xff] %vm2808_vm6, %v6829_v47 }
 0x799   : > { %6860 = vst.msk [vmem:[%s12039_s25 + $0x70] sm:$0xff] %vm2808_vm6, %v6828_v26 }
 0x7a7   : > { %v7973_v53 = vpop.f32.mrb[96].mxu0 }
 0x7a8   : > { %v6741_v7 = vadd.f32 %v7973_v53, %v12027_v19  ;;  %v6735_v44 = vpop.f32.mrb[97].mxu0 }
 0x7a9   : > { %v6736_v4 = vadd.f32 %v12027_v19, %v6735_v44 }
 0x7aa   : > { %v6831_v25 = vmax.f32 %v6741_v7, 0.0 }
 0x7ab   : > { %v6830_v18 = vmax.f32 %v6736_v4, 0.0 }
 0x7ac   : > { %6863 = vst.msk [vmem:[%s12039_s25 + $0x88] sm:$0xff] %vm2808_vm6, %v6831_v25 }
 0x7ad   : > { %6862 = vst.msk [vmem:[%s12039_s25 + $0x80] sm:$0xff] %vm2808_vm6, %v6830_v18 }
 0x7bb   : > { %v7976_v21 = vpop.f32.mrb[98].mxu0 }
 0x7bc   : > { %v6751_v11 = vadd.f32 %v7976_v21, %v12027_v19  ;;  %v6745_v16 = vpop.f32.mrb[99].mxu0 }
 0x7bd   : > { %v6746_v32 = vadd.f32 %v12027_v19, %v6745_v16 }
 0x7be   : > { %v6833_v49 = vmax.f32 %v6751_v11, 0.0 }
 0x7bf   : > { %v6832_v6 = vmax.f32 %v6746_v32, 0.0 }
 0x7c0   : > { %6865 = vst.msk [vmem:[%s12039_s25 + $0x98] sm:$0xff] %vm2808_vm6, %v6833_v49 }
 0x7c1   : > { %6864 = vst.msk [vmem:[%s12039_s25 + $0x90] sm:$0xff] %vm2808_vm6, %v6832_v6 }
 0x7d3   : > { %v7979_v40 = vpop.f32.mrb[100].mxu0 }
 0x7d4   : > { %v6761_v23 = vadd.f32 %v7979_v40, %v12027_v19  ;;  %v6755_v0 = vpop.f32.mrb[101].mxu0 }
 0x7d5   : > { %v6756_v41 = vadd.f32 %v12027_v19, %v6755_v0 }
 0x7d6   : > { %v6835_v48 = vmax.f32 %v6761_v23, 0.0 }
 0x7d7   : > { %v6834_v55 = vmax.f32 %v6756_v41, 0.0 }
 0x7d8   : > { %6867 = vst.msk [vmem:[%s12039_s25 + $0xa8] sm:$0xff] %vm2808_vm6, %v6835_v48 }
 0x7d9   : > { %6866 = vst.msk [vmem:[%s12039_s25 + $0xa0] sm:$0xff] %vm2808_vm6, %v6834_v55 }
 0x7eb   : > { %v7982_v8 = vpop.f32.mrb[102].mxu0 }
 0x7ec   : > { %v6771_v30 = vadd.f32 %v7982_v8, %v12027_v19  ;;  %v6765_v38 = vpop.f32.mrb[103].mxu0 }
 0x7ed   : > { %v6766_v42 = vadd.f32 %v12027_v19, %v6765_v38 }
 0x7ee   : > { %v6837_v39 = vmax.f32 %v6771_v30, 0.0 }
 0x7ef   : > { %v6836_v12 = vmax.f32 %v6766_v42, 0.0 }
 0x7f0   : > { %6869 = vst.msk [vmem:[%s12039_s25 + $0xb8] sm:$0xff] %vm2808_vm6, %v6837_v39 }
 0x7f1   : > { %6868 = vst.msk [vmem:[%s12039_s25 + $0xb0] sm:$0xff] %vm2808_vm6, %v6836_v12 }
 0x803   : > { %v7985_v59 = vpop.f32.mrb[104].mxu0 }
 0x804   : > { %v6781_v3 = vadd.f32 %v7985_v59, %v12027_v19  ;;  %v6775_v45 = vpop.f32.mrb[105].mxu0 }
 0x805   : > { %v6776_v17 = vadd.f32 %v12027_v19, %v6775_v45 }
 0x806   : > { %v6839_v22 = vmax.f32 %v6781_v3, 0.0 }
 0x807   : > { %v6838_v24 = vmax.f32 %v6776_v17, 0.0 }
 0x808   : > { %6871 = vst.msk [vmem:[%s12039_s25 + $0xc8] sm:$0xff] %vm2808_vm6, %v6839_v22 }
 0x809   : > { %6870 = vst.msk [vmem:[%s12039_s25 + $0xc0] sm:$0xff] %vm2808_vm6, %v6838_v24 }
 0x81b   : > { %v7988_v34 = vpop.f32.mrb[106].mxu0 }
 0x81c   : > { %v6791_v13 = vadd.f32 %v7988_v34, %v12027_v19  ;;  %v6785_v2 = vpop.f32.mrb[107].mxu0 }
 0x81d   : > { %v6786_v27 = vadd.f32 %v12027_v19, %v6785_v2 }
 0x81e   : > { %v6841_v9 = vmax.f32 %v6791_v13, 0.0 }
 0x81f   : > { %v6840_v36 = vmax.f32 %v6786_v27, 0.0 }
 0x820   : > { %6873 = vst.msk [vmem:[%s12039_s25 + $0xd8] sm:$0xff] %vm2808_vm6, %v6841_v9 }
 0x821   : > { %6872 = vst.msk [vmem:[%s12039_s25 + $0xd0] sm:$0xff] %vm2808_vm6, %v6840_v36 }
 0x833   : > { %v7991_v1 = vpop.f32.mrb[108].mxu0 }
 0x834   : > { %v6801_v63 = vadd.f32 %v7991_v1, %v12027_v19  ;;  %v6795_v43 = vpop.f32.mrb[109].mxu0 }
 0x835   : > { %v6796_v52 = vadd.f32 %v12027_v19, %v6795_v43 }
 0x836   : > { %v6843_v61 = vmax.f32 %v6801_v63, 0.0 }
 0x837   : > { %v6842_v29 = vmax.f32 %v6796_v52, 0.0 }
 0x838   : > { %6875 = vst.msk [vmem:[%s12039_s25 + $0xe8] sm:$0xff] %vm2808_vm6, %v6843_v61 }
 0x839   : > { %6874 = vst.msk [vmem:[%s12039_s25 + $0xe0] sm:$0xff] %vm2808_vm6, %v6842_v29 }
 0x840   : > { %v7994_v20 = vpop.f32.mrb[110].mxu0 }
 0x841   : > { %v6811_v54 = vadd.f32 %v8121_v33, %v7994_v20  ;;  %v6805_v5 = vpop.f32.mrb[111].mxu0 }
 0x842   : > { %v6806_v50 = vadd.f32 %v8121_v33, %v6805_v5 }
 0x843   : > { %v6845_v31 = vmax.f32 %v6811_v54, 0.0 }
 0x844   : > { %v6844_v56 = vmax.f32 %v6806_v50, 0.0 }
 0x845   : > { %6877 = vst.msk [vmem:[%s12039_s25 + $0xf8] sm:$0xff] %vm2808_vm6, %v6845_v31 }
 0x846   : > { %6876 = vst.msk [vmem:[%s12039_s25 + $0xf0] sm:$0xff] %vm2808_vm6, %v6844_v56 }
 0x847 PF: > { %s19_s30 = sadd.s32 1, %s8128_s30  }
 0x848   : > { %p16_p4 = scmp.ge.s32.totalorder %s19_s30, 4  }
 0x84a   :  { %18 = sbr.rel (!%p16_p4) target bundleno = 1 (0x1), region = 96 }

</bundles_post_ra>
